<compile_context>
chip_gen: v7x
topology: tpu7x:2x2x1
jax: 0.10.0
libtpu: 0.0.40
codegen_flags: <defaults>
</compile_context>

<pallas_src>
import functools

import jax
import jax.numpy as jnp
import numpy as np
from jax import lax
from jax.experimental import pallas as pl
from jax.experimental.pallas import tpu as pltpu

PARAM_ORDER = ("vecs", "lam", "A", "Bstk", "tdA", "tdB", "u_flat",
               "WrT", "WkT", "WvT", "WgT", "WoT", "cWkT", "cWvT", "cWrT")


# ----------------------------- in-kernel helpers -----------------------------
def _layernorm(x, gamma, beta, eps=1e-5):
    m = jnp.mean(x, axis=-1, keepdims=True)
    v = jnp.mean((x - m) ** 2, axis=-1, keepdims=True)
    return (x - m) * lax.rsqrt(v + eps) * gamma + beta


def _inclusive_prefix_sum(a, L):
    # Exact f32 Hillis-Steele prefix sum along the token (sublane) axis.  Replaces the
    # HIGHEST-precision triangular MXU matmul of the previous version: log2(L) cheap
    # shift-and-add steps on the VPU, keeping the MXU free for the attention/state matmuls.
    acc = a
    d = 1
    while d < L:
        shifted = jnp.concatenate(
            [jnp.zeros((d, a.shape[1]), acc.dtype), acc[:L - d, :]], axis=0)
        acc = acc + shifted
        d *= 2
    return acc


# --------------------------------- the kernel --------------------------------
def block_kernel(x_ref, vecs_ref, lam_ref, A_ref, Bstk_ref, tdA_ref, tdB_ref, u_ref,
                 WrT_ref, WkT_ref, WvT_ref, WgT_ref, WoT_ref,
                 cWkT_ref, cWvT_ref, cWrT_ref,
                 out_ref,
                 state_s, xn1_carry, xn2_carry,
                 *, L, C, H, N):
    f32, bf16 = jnp.float32, jnp.bfloat16
    chunk = pl.program_id(1)

    # new batch element -> reset recurrent state and the time-shift halos (ZeroPad2d)
    @pl.when(chunk == 0)
    def _():
        state_s[...] = jnp.zeros_like(state_s)
        xn1_carry[...] = jnp.zeros_like(xn1_carry)
        xn2_carry[...] = jnp.zeros_like(xn2_carry)

    vecs = vecs_ref[...]
    g1, b1 = vecs[0:1], vecs[1:2]
    g2, b2 = vecs[2:3], vecs[3:4]
    miu_x, td_miu = vecs[4:5], vecs[5:6]
    lnx_g, lnx_b = vecs[6:7], vecs[7:8]
    miu_k, miu_r = vecs[8:9], vecs[9:10]

    x = x_ref[0].astype(f32)                                   # (L, C)

    # ------------------------------- TimeMix ---------------------------------
    xn = _layernorm(x, g1, b1)
    x_last = jnp.concatenate([xn1_carry[...], xn[:L - 1, :]], axis=0)
    xn1_carry[...] = xn[L - 1:L, :]                            # halo for next chunk
    dx = x_last - xn

    # ddlerp: lerp -> rank-32 LoRA per branch (no (L, 5C) materialisation, no
    # block-diagonal B with wasted FLOPs) -> lerp -> projection, one branch at a time.
    xx = xn + dx * miu_x
    hmat = jnp.tanh(jnp.dot(xx.astype(bf16), A_ref[...], preferred_element_type=f32))

    def ddlerp_branch(i):
        h_i = hmat[:, i * 32:(i + 1) * 32].astype(bf16)
        miu_i = lam_ref[i:i + 1, :] + jnp.dot(h_i, Bstk_ref[i],
                                              preferred_element_type=f32)
        return xn + dx * miu_i

    w = td_miu + jnp.dot(
        jnp.tanh(jnp.dot(ddlerp_branch(0).astype(bf16), tdA_ref[...],
                         preferred_element_type=f32)).astype(bf16),
        tdB_ref[...], preferred_element_type=f32)
    k = jnp.dot(ddlerp_branch(1).astype(bf16), WkT_ref[...], preferred_element_type=f32)
    v = jnp.dot(ddlerp_branch(2).astype(bf16), WvT_ref[...], preferred_element_type=f32)
    r = jnp.dot(ddlerp_branch(3).astype(bf16), WrT_ref[...], preferred_element_type=f32)
    g_lin = jnp.dot(ddlerp_branch(4).astype(bf16), WgT_ref[...],
                    preferred_element_type=f32)
    g = g_lin * jax.nn.sigmoid(g_lin)                          # silu

    # ---------------------- WKV6: one chunk of the recurrence -----------------
    ld = -jnp.exp(w)                                 # log(decay) = -exp(w)
    cum_in = _inclusive_prefix_sum(ld, L)            # inclusive prefix of log-decay
    cum_ex = cum_in - ld                             # exclusive prefix
    rq = r * jnp.exp(cum_ex)                         # r decayed from chunk start
    # NOTE: exp(-cum_in) grows with in-chunk position; safe for L <= ~128 with the
    # module's decay range, which is why the chunk picker targets 128.
    kq = k * jnp.exp(-cum_in)
    a_end = jnp.exp(cum_in[L - 1:L, :])              # total chunk decay      (1, C)
    ke = kq * a_end                                  # == k * exp(cum_in[-1] - cum_in)
    ruk = r * k * u_ref[...]                         # diag (bonus) term, per channel
    a_endT = jnp.transpose(a_end)                    # (C, 1)
    keT = jnp.transpose(ke)                          # (C, L) (single transpose per chunk)

    ti = lax.broadcasted_iota(jnp.int32, (L, L), 0)
    si = lax.broadcasted_iota(jnp.int32, (L, L), 1)
    smask = ti > si                                  # strictly-causal mask

    gn_eps = 1e-5 * H
    dn_nt = (((1,), (1,)), ((), ()))                 # A @ B^T without an explicit transpose

    y_heads = []
    for h in range(H):                               # static, small head loop
        sl = slice(h * N, (h + 1) * N)
        S0 = state_s[h]                              # (N, N) f32 carried state
        rq_h = rq[:, sl].astype(bf16)
        kq_h = kq[:, sl].astype(bf16)
        v_h = v[:, sl]
        v_hb = v_h.astype(bf16)

        att = lax.dot_general(rq_h, kq_h, dn_nt, preferred_element_type=f32)   # (L, L)
        att = jnp.where(smask, att, 0.0)
        ruk_h = jnp.sum(ruk[:, sl], axis=1, keepdims=True)                     # (L, 1)

        y_h = (jnp.dot(att.astype(bf16), v_hb, preferred_element_type=f32)
               + ruk_h * v_h
               + jnp.dot(rq_h, S0.astype(bf16), preferred_element_type=f32))

        state_s[h] = (a_endT[sl, :] * S0
                      + jnp.dot(keT[sl, :].astype(bf16), v_hb,
                                preferred_element_type=f32))

        # per-head GroupNorm statistics: exact f32 VPU reductions (no mask matmuls,
        # no sub-128-lane matmul outputs)
        m = jnp.mean(y_h, axis=-1, keepdims=True)
        yc = y_h - m
        var = jnp.mean(yc * yc, axis=-1, keepdims=True)
        y_heads.append(yc * lax.rsqrt(var + gn_eps))

    yn = (y_heads[0] if H == 1 else jnp.concatenate(y_heads, axis=1)) * lnx_g + lnx_b
    att_out = jnp.dot((yn * g).astype(bf16), WoT_ref[...], preferred_element_type=f32)
    x1 = x + att_out                                 # first residual

    # --------------------------------- ChannelMix -----------------------------
    xn2 = _layernorm(x1, g2, b2)
    x2_last = jnp.concatenate([xn2_carry[...], xn2[:L - 1, :]], axis=0)
    xn2_carry[...] = xn2[L - 1:L, :]
    # reproduces the module's literal lerp(x, x_last, miu) = x + x_last * miu
    kx = xn2 + x2_last * miu_k
    rx = xn2 + x2_last * miu_r
    kk = jnp.dot(kx.astype(bf16), cWkT_ref[...], preferred_element_type=f32)
    kk = jnp.square(jnp.maximum(kk, 0.0))            # relu(k)^2
    kv2 = jnp.dot(kk.astype(bf16), cWvT_ref[...], preferred_element_type=f32)
    r2 = jax.nn.sigmoid(jnp.dot(rx.astype(bf16), cWrT_ref[...],
                                preferred_element_type=f32))

    out_ref[0] = (x1 + r2 * kv2).astype(out_ref.dtype)


# --------------------------------- wrapper ------------------------------------
def _pick_chunk(T, target=128):
    # largest chunk <= target that divides T and keeps the (L, C) block sublane-aligned
    for L in range(min(T, target), 0, -1):
        if T % L == 0 and (L % 8 == 0 or L == T):
            return L
    return T


def _default_vmem_limit():
    # derive the scoped-VMEM limit per generation (64 MiB on v7x, 128 MiB on v5e/v6e)
    try:
        info = pltpu.get_tpu_info()
        cap = getattr(info, "vmem_capacity_bytes", None)
        if cap:
            return int(cap) * 3 // 4
    except Exception:
        pass
    return 48 * 1024 * 1024


def prepare_block_params(params):
    """Cheap, jit-friendly repack of the module parameters for the kernel."""
    bf16 = jnp.bfloat16
    return {
        "vecs": params["vecs"].astype(jnp.float32),
        "lam": params["lam"].astype(jnp.float32),          # (5, C)
        "A": params["A"].astype(bf16),                      # (C, 160)
        "Bstk": params["B"].astype(bf16),                   # (5, 32, C)
        "tdA": params["tdA"].astype(bf16),
        "tdB": params["tdB"].astype(bf16),
        "u_flat": params["u"].reshape(1, -1).astype(jnp.float32),
        "WrT": params["WrT"].astype(bf16),
        "WkT": params["WkT"].astype(bf16),
        "WvT": params["WvT"].astype(bf16),
        "WgT": params["WgT"].astype(bf16),
        "WoT": params["WoT"].astype(bf16),
        "cWkT": params["cWkT"].astype(bf16),
        "cWvT": params["cWvT"].astype(bf16),
        "cWrT": params["cWrT"].astype(bf16),
    }


def rwkv_block_forward(x, params, *, chunk=128):
    B, T, C = x.shape
    H, N = params["u"].shape
    L = _pick_chunk(T, chunk)
    kp = prepare_block_params(params)

    kernel = functools.partial(block_kernel, L=L, C=C, H=H, N=N)

    def _full_spec(a):
        nd = a.ndim
        return pl.BlockSpec(a.shape, lambda b, c, _nd=nd: (0,) * _nd)

    in_specs = [pl.BlockSpec((1, L, C), lambda b, c: (b, c, 0))]
    in_specs += [_full_spec(kp[k]) for k in PARAM_ORDER]
    out_spec = pl.BlockSpec((1, L, C), lambda b, c: (b, c, 0))

    # TODO(synk): when B == 1 the parallel batch axis has a single step, so v7x's second
    # TensorCore idles; splitting heads across cores would need cross-core state handling.
    return pl.pallas_call(
        kernel,
        out_shape=jax.ShapeDtypeStruct((B, T, C), x.dtype),
        grid=(B, T // L),
        in_specs=in_specs,
        out_specs=out_spec,
        scratch_shapes=[
            pltpu.VMEM((H, N, N), jnp.float32),   # WKV state carried across chunks
            pltpu.VMEM((1, C), jnp.float32),      # ln1 time-shift halo
            pltpu.VMEM((1, C), jnp.float32),      # ln2 time-shift halo
        ],
        compiler_params=pltpu.CompilerParams(
            dimension_semantics=("parallel", "arbitrary"),
            vmem_limit_bytes=_default_vmem_limit(),
        ),
    )(x, *(kp[k] for k in PARAM_ORDER))


# --------------------------- deterministic params -----------------------------
def init_params(key, C, F, H, N, n_blocks, block_id):
    r01 = block_id / (n_blocks - 1)
    r10 = 1.0 - block_id / n_blocks
    i = np.arange(C, dtype=np.float64)
    ddd = i / C
    miu_x = 1.0 - ddd ** r10
    lam = np.stack([1.0 - ddd ** r10,
                    1.0 - ddd ** r10,
                    1.0 - ddd ** (0.5 * r10),
                    1.0 - ddd ** (0.5 * r10),
                    1.0 - (ddd ** r10 + 0.3 * r01)], axis=0)
    decay_speed = -6.0 + 5.0 * (i / (C - 1)) ** (0.7 + 1.3 * r01)
    zig = ((i + 1) % 3 - 1) * 0.1
    u = (r01 * (1.0 - i / (C - 1)) + zig).reshape(H, N)
    miu_kr = 1.0 - ddd ** r10

    ones, zeros = np.ones(C), np.zeros(C)
    vecs = np.stack([ones, zeros,          # ln1 gamma / beta
                     ones, zeros,          # ln2 gamma / beta
                     miu_x, decay_speed,   # miu_x, time_decay_miu
                     ones, zeros,          # ln_x (GroupNorm) gamma / beta
                     miu_kr, miu_kr],      # channel-mix miu_k, miu_r
                    axis=0)

    ks = jax.random.split(key, 12)
    nrm = lambda k, shp, s: jax.random.normal(k, shp, jnp.float32) * s
    uni = lambda k, shp, lim: jax.random.uniform(k, shp, jnp.float32, -lim, lim)

    return {
        "vecs": jnp.asarray(vecs, jnp.float32),
        "lam": jnp.asarray(lam, jnp.float32),
        # A / time_decay_A are zeros in the module __init__; use small deterministic
        # random values instead so the LoRA matmul paths are actually exercised.
        "A": nrm(ks[0], (C, 32 * 5), 0.02),
        "B": uni(ks[1], (5, 32, C), 0.01),
        "tdA": nrm(ks[2], (C, 64), 0.02),
        "tdB": uni(ks[3], (64, C), 0.01),
        "u": jnp.asarray(u, jnp.float32),
        # nn.Linear stores (out, in) and applies x @ W.T; we pass W.T directly.
        "WrT": nrm(ks[4], (C, C), 0.05),
        "WkT": nrm(ks[5], (C, C), 0.05),
        "WvT": nrm(ks[6], (C, C), 0.05),
        "WoT": nrm(ks[7], (C, C), 0.05),
        "WgT": nrm(ks[8], (C, C), 0.05),
        "cWkT": nrm(ks[9], (C, F), 0.05),
        "cWvT": nrm(ks[10], (F, C), 0.05),
        "cWrT": nrm(ks[11], (C, C), 0.05),
    }


# ------------------------------ pure-JAX reference ----------------------------
def block_ref(x, p, H, N):
    f32 = jnp.float32
    x = x.astype(f32)
    vecs = p["vecs"]
    g1, b1, g2, b2 = vecs[0], vecs[1], vecs[2], vecs[3]
    miu_x, td_miu = vecs[4], vecs[5]
    lnx_g, lnx_b = vecs[6], vecs[7]
    miu_k, miu_r = vecs[8], vecs[9]
    B, T, C = x.shape

    def ln(z, g, b, eps=1e-5):
        m = z.mean(-1, keepdims=True)
        v = ((z - m) ** 2).mean(-1, keepdims=True)
        return (z - m) / jnp.sqrt(v + eps) * g + b

    def shift(z):
        return jnp.concatenate([jnp.zeros_like(z[:, :1]), z[:, :-1]], axis=1)

    xn = ln(x, g1, b1)
    xl = shift(xn)
    dx = xl - xn
    xx = xn + dx * miu_x
    h = jnp.tanh(xx @ p["A"]).reshape(B, T, 5, 32)
    mixes = [xn + dx * (p["lam"][i] + h[:, :, i] @ p["B"][i]) for i in range(5)]
    xw, xk, xv, xr, xg = mixes
    k = xk @ p["WkT"]; v = xv @ p["WvT"]; r = xr @ p["WrT"]
    gl = xg @ p["WgT"]; g = gl * jax.nn.sigmoid(gl)
    w = td_miu + jnp.tanh(xw @ p["tdA"]) @ p["tdB"]

    decay = jnp.exp(-jnp.exp(w))
    rr = r.reshape(B, T, H, N); kk = k.reshape(B, T, H, N)
    vv = v.reshape(B, T, H, N); dd = decay.reshape(B, T, H, N)
    u = p["u"]
    S = jnp.zeros((B, H, N, N), f32)
    ys = []
    for t in range(T):
        kv = kk[:, t, :, :, None] * vv[:, t, :, None, :]
        ys.append(jnp.einsum("bhj,bhji->bhi", rr[:, t],
                             u[None, :, :, None] * kv + S).reshape(B, C))
        S = dd[:, t, :, :, None] * S + kv
    y = jnp.stack(ys, axis=1)

    yg = y.reshape(B, T, H, N)
    m = yg.mean(-1, keepdims=True)
    var = ((yg - m) ** 2).mean(-1, keepdims=True)
    yn = ((yg - m) / jnp.sqrt(var + 1e-5 * H)).reshape(B, T, C) * lnx_g + lnx_b
    x1 = x + (yn * g) @ p["WoT"]

    xn2 = ln(x1, g2, b2)
    xl2 = shift(xn2)
    kx = xn2 + xl2 * miu_k
    rx = xn2 + xl2 * miu_r
    kkk = jnp.maximum(kx @ p["cWkT"], 0.0) ** 2
    kv2 = kkk @ p["cWvT"]
    r2 = jax.nn.sigmoid(rx @ p["cWrT"])
    return x1 + r2 * kv2


# ------------------------------------ main -------------------------------------
if __name__ == "__main__":
    # head_size is fixed at 64 in TimeMix -> embed_dim must be a multiple of 64.
    B, T, C, F = 2, 32, 128, 256
    n_blocks, block_id = 4, 1
    N = 64
    H = C // N

    key = jax.random.PRNGKey(0)
    kx, kp = jax.random.split(key)
    x = jax.random.normal(kx, (B, T, C), jnp.float32)
    params = init_params(kp, C, F, H, N, n_blocks, block_id)

    out = jax.jit(rwkv_block_forward)(x, params)
    out = jax.block_until_ready(out)

    with jax.default_matmul_precision("highest"):
        ref = jax.block_until_ready(block_ref(x, params, H, N))

    # TODO(synk): the CUDA wkv6 kernel uses bf16 I/O with f32 accumulation; the Pallas
    # kernel likewise feeds the MXU bf16 with f32 accumulators, hence the loose tolerance
    # vs. the f32 'highest'-precision reference.
    np.testing.assert_allclose(np.asarray(out), np.asarray(ref), rtol=2e-2, atol=3e-2)
    print("KERNEL_OK")
</pallas_src>

<mosaic_0001>
module attributes {stable_mosaic.version = 11 : i64} {
  func.func @block_kernel(%arg0: i32, %arg1: i32, %arg2: memref<1x32x128xf32, #tpu.memory_space<vmem>>, %arg3: memref<10x128xf32, #tpu.memory_space<vmem>>, %arg4: memref<5x128xf32, #tpu.memory_space<vmem>>, %arg5: memref<128x160xbf16, #tpu.memory_space<vmem>>, %arg6: memref<5x32x128xbf16, #tpu.memory_space<vmem>>, %arg7: memref<128x64xbf16, #tpu.memory_space<vmem>>, %arg8: memref<64x128xbf16, #tpu.memory_space<vmem>>, %arg9: memref<1x128xf32, #tpu.memory_space<vmem>>, %arg10: memref<128x128xbf16, #tpu.memory_space<vmem>>, %arg11: memref<128x128xbf16, #tpu.memory_space<vmem>>, %arg12: memref<128x128xbf16, #tpu.memory_space<vmem>>, %arg13: memref<128x128xbf16, #tpu.memory_space<vmem>>, %arg14: memref<128x128xbf16, #tpu.memory_space<vmem>>, %arg15: memref<128x256xbf16, #tpu.memory_space<vmem>>, %arg16: memref<256x128xbf16, #tpu.memory_space<vmem>>, %arg17: memref<128x128xbf16, #tpu.memory_space<vmem>>, %arg18: memref<1x32x128xf32, #tpu.memory_space<vmem>>, %arg19: memref<2x64x64xf32, #tpu.memory_space<vmem>>, %arg20: memref<1x128xf32, #tpu.memory_space<vmem>>, %arg21: memref<1x128xf32, #tpu.memory_space<vmem>>) attributes {dimension_semantics = [#tpu.dimension_semantics<parallel>, #tpu.dimension_semantics<arbitrary>], iteration_bounds = array<i64: 2, 1>, scalar_prefetch = 0 : i64, scratch_operands = 3 : i64, tpu.core_type = #tpu.core_type<tc>, window_params = [{transform_indices = @transform_0, window_bounds = array<i64: 1, 32, 128>}, {pipeline_mode = #tpu.pipeline_mode<synchronous>, transform_indices = @transform_1, window_bounds = array<i64: 10, 128>}, {pipeline_mode = #tpu.pipeline_mode<synchronous>, transform_indices = @transform_2, window_bounds = array<i64: 5, 128>}, {pipeline_mode = #tpu.pipeline_mode<synchronous>, transform_indices = @transform_3, window_bounds = array<i64: 128, 160>}, {pipeline_mode = #tpu.pipeline_mode<synchronous>, transform_indices = @transform_4, window_bounds = array<i64: 5, 32, 128>}, {pipeline_mode = #tpu.pipeline_mode<synchronous>, transform_indices = @transform_5, window_bounds = array<i64: 128, 64>}, {pipeline_mode = #tpu.pipeline_mode<synchronous>, transform_indices = @transform_6, window_bounds = array<i64: 64, 128>}, {pipeline_mode = #tpu.pipeline_mode<synchronous>, transform_indices = @transform_7, window_bounds = array<i64: 1, 128>}, {pipeline_mode = #tpu.pipeline_mode<synchronous>, transform_indices = @transform_8, window_bounds = array<i64: 128, 128>}, {pipeline_mode = #tpu.pipeline_mode<synchronous>, transform_indices = @transform_9, window_bounds = array<i64: 128, 128>}, {pipeline_mode = #tpu.pipeline_mode<synchronous>, transform_indices = @transform_10, window_bounds = array<i64: 128, 128>}, {pipeline_mode = #tpu.pipeline_mode<synchronous>, transform_indices = @transform_11, window_bounds = array<i64: 128, 128>}, {pipeline_mode = #tpu.pipeline_mode<synchronous>, transform_indices = @transform_12, window_bounds = array<i64: 128, 128>}, {pipeline_mode = #tpu.pipeline_mode<synchronous>, transform_indices = @transform_13, window_bounds = array<i64: 128, 256>}, {pipeline_mode = #tpu.pipeline_mode<synchronous>, transform_indices = @transform_14, window_bounds = array<i64: 256, 128>}, {pipeline_mode = #tpu.pipeline_mode<synchronous>, transform_indices = @transform_15, window_bounds = array<i64: 128, 128>}, {transform_indices = @transform_16, window_bounds = array<i64: 1, 32, 128>}]} {
    %c0_i32 = arith.constant 0 : i32
    %0 = arith.cmpi eq, %arg1, %c0_i32 : i32
    %1 = arith.extui %0 : i1 to i32
    %c0_i32_0 = arith.constant 0 : i32
    %2 = arith.cmpi ne, %1, %c0_i32_0 : i32
    scf.if %2 {
      %cst_130 = arith.constant 0.000000e+00 : f32
      %332 = vector.broadcast %cst_130 : f32 to vector<2x64x64xf32>
      %c0_131 = arith.constant 0 : index
      %c0_132 = arith.constant 0 : index
      %c0_133 = arith.constant 0 : index
      %333 = vector.load %arg19[%c0_131, %c0_132, %c0_133] : memref<2x64x64xf32, #tpu.memory_space<vmem>>, vector<2x64x64xf32>
      tpu.vector_store %arg19[%c0_131, %c0_132, %c0_133], %332 {strides = array<i32>} : memref<2x64x64xf32, #tpu.memory_space<vmem>>, vector<2x64x64xf32>,
      %cst_134 = arith.constant 0.000000e+00 : f32
      %334 = vector.broadcast %cst_134 : f32 to vector<1x128xf32>
      %c0_135 = arith.constant 0 : index
      %c0_136 = arith.constant 0 : index
      %335 = vector.load %arg20[%c0_135, %c0_136] : memref<1x128xf32, #tpu.memory_space<vmem>>, vector<1x128xf32>
      tpu.vector_store %arg20[%c0_135, %c0_136], %334 {strides = array<i32>} : memref<1x128xf32, #tpu.memory_space<vmem>>, vector<1x128xf32>,
      %cst_137 = arith.constant 0.000000e+00 : f32
      %336 = vector.broadcast %cst_137 : f32 to vector<1x128xf32>
      %c0_138 = arith.constant 0 : index
      %c0_139 = arith.constant 0 : index
      %337 = vector.load %arg21[%c0_138, %c0_139] : memref<1x128xf32, #tpu.memory_space<vmem>>, vector<1x128xf32>
      tpu.vector_store %arg21[%c0_138, %c0_139], %336 {strides = array<i32>} : memref<1x128xf32, #tpu.memory_space<vmem>>, vector<1x128xf32>,
    } else {
    }
    %c0 = arith.constant 0 : index
    %c0_1 = arith.constant 0 : index
    %3 = vector.load %arg3[%c0, %c0_1] : memref<10x128xf32, #tpu.memory_space<vmem>>, vector<10x128xf32>
    %4 = vector.extract_strided_slice %3 {offsets = [0, 0], sizes = [1, 128], strides = [1, 1]} : vector<10x128xf32> to vector<1x128xf32>
    %5 = vector.extract_strided_slice %3 {offsets = [1, 0], sizes = [1, 128], strides = [1, 1]} : vector<10x128xf32> to vector<1x128xf32>
    %6 = vector.extract_strided_slice %3 {offsets = [2, 0], sizes = [1, 128], strides = [1, 1]} : vector<10x128xf32> to vector<1x128xf32>
    %7 = vector.extract_strided_slice %3 {offsets = [3, 0], sizes = [1, 128], strides = [1, 1]} : vector<10x128xf32> to vector<1x128xf32>
    %8 = vector.extract_strided_slice %3 {offsets = [4, 0], sizes = [1, 128], strides = [1, 1]} : vector<10x128xf32> to vector<1x128xf32>
    %9 = vector.extract_strided_slice %3 {offsets = [5, 0], sizes = [1, 128], strides = [1, 1]} : vector<10x128xf32> to vector<1x128xf32>
    %10 = vector.extract_strided_slice %3 {offsets = [6, 0], sizes = [1, 128], strides = [1, 1]} : vector<10x128xf32> to vector<1x128xf32>
    %11 = vector.extract_strided_slice %3 {offsets = [7, 0], sizes = [1, 128], strides = [1, 1]} : vector<10x128xf32> to vector<1x128xf32>
    %12 = vector.extract_strided_slice %3 {offsets = [8, 0], sizes = [1, 128], strides = [1, 1]} : vector<10x128xf32> to vector<1x128xf32>
    %13 = vector.extract_strided_slice %3 {offsets = [9, 0], sizes = [1, 128], strides = [1, 1]} : vector<10x128xf32> to vector<1x128xf32>
    %c0_2 = arith.constant 0 : index
    %c0_3 = arith.constant 0 : index
    %c0_4 = arith.constant 0 : index
    %14 = vector.load %arg2[%c0_2, %c0_3, %c0_4] : memref<1x32x128xf32, #tpu.memory_space<vmem>>, vector<1x32x128xf32>
    %15 = vector.shape_cast %14 : vector<1x32x128xf32> to vector<32x128xf32>
    %cst = arith.constant dense<0.000000e+00> : vector<32xf32>
    %16 = vector.multi_reduction <add>, %15, %cst [1] : vector<32x128xf32> to vector<32xf32>
    %17 = vector.shape_cast %16 : vector<32xf32> to vector<32x1xf32>
    %cst_5 = arith.constant 1.280000e+02 : f32
    %18 = vector.broadcast %cst_5 : f32 to vector<32x1xf32>
    %19 = arith.divf %17, %18 : vector<32x1xf32>
    %20 = vector.broadcast %19 : vector<32x1xf32> to vector<32x128xf32>
    %21 = arith.subf %15, %20 : vector<32x128xf32>
    %22 = arith.mulf %21, %21 : vector<32x128xf32>
    %cst_6 = arith.constant dense<0.000000e+00> : vector<32xf32>
    %23 = vector.multi_reduction <add>, %22, %cst_6 [1] : vector<32x128xf32> to vector<32xf32>
    %24 = vector.shape_cast %23 : vector<32xf32> to vector<32x1xf32>
    %cst_7 = arith.constant 1.280000e+02 : f32
    %25 = vector.broadcast %cst_7 : f32 to vector<32x1xf32>
    %26 = arith.divf %24, %25 : vector<32x1xf32>
    %27 = vector.broadcast %19 : vector<32x1xf32> to vector<32x128xf32>
    %28 = arith.subf %15, %27 : vector<32x128xf32>
    %cst_8 = arith.constant 9.99999974E-6 : f32
    %29 = vector.broadcast %cst_8 : f32 to vector<32x1xf32>
    %30 = arith.addf %26, %29 : vector<32x1xf32>
    %31 = math.rsqrt %30 : vector<32x1xf32>
    %32 = vector.broadcast %31 : vector<32x1xf32> to vector<32x128xf32>
    %33 = arith.mulf %28, %32 : vector<32x128xf32>
    %34 = vector.broadcast %4 : vector<1x128xf32> to vector<32x128xf32>
    %35 = arith.mulf %33, %34 : vector<32x128xf32>
    %36 = vector.broadcast %5 : vector<1x128xf32> to vector<32x128xf32>
    %37 = arith.addf %35, %36 : vector<32x128xf32>
    %c0_9 = arith.constant 0 : index
    %c0_10 = arith.constant 0 : index
    %38 = vector.load %arg20[%c0_9, %c0_10] : memref<1x128xf32, #tpu.memory_space<vmem>>, vector<1x128xf32>
    %39 = vector.extract_strided_slice %37 {offsets = [0, 0], sizes = [31, 128], strides = [1, 1]} : vector<32x128xf32> to vector<31x128xf32>
    %40 = tpu.concatenate %38, %39 in 0 : vector<1x128xf32>, vector<31x128xf32> -> vector<32x128xf32>
    %41 = vector.extract_strided_slice %37 {offsets = [31, 0], sizes = [1, 128], strides = [1, 1]} : vector<32x128xf32> to vector<1x128xf32>
    %c0_11 = arith.constant 0 : index
    %c0_12 = arith.constant 0 : index
    %42 = vector.load %arg20[%c0_11, %c0_12] : memref<1x128xf32, #tpu.memory_space<vmem>>, vector<1x128xf32>
    tpu.vector_store %arg20[%c0_11, %c0_12], %41 {strides = array<i32>} : memref<1x128xf32, #tpu.memory_space<vmem>>, vector<1x128xf32>,
    %43 = arith.subf %40, %37 : vector<32x128xf32>
    %44 = vector.broadcast %8 : vector<1x128xf32> to vector<32x128xf32>
    %45 = arith.mulf %43, %44 : vector<32x128xf32>
    %46 = arith.addf %37, %45 : vector<32x128xf32>
    %47 = arith.truncf %46 : vector<32x128xf32> to vector<32x128xbf16>
    %c0_13 = arith.constant 0 : index
    %c0_14 = arith.constant 0 : index
    %48 = vector.load %arg5[%c0_13, %c0_14] : memref<128x160xbf16, #tpu.memory_space<vmem>>, vector<128x160xbf16>
    %cst_15 = arith.constant dense<0.000000e+00> : vector<32x160xf32>
    %49 = tpu.matmul %47, %48, %cst_15 {dimension_numbers = #tpu.dot_dimension_numbers<[1], [0], [0], [1], [0, 0, 1, 1], [], []>} : vector<32x128xbf16>, vector<128x160xbf16>, vector<32x160xf32> -> vector<32x160xf32>
    %50 = math.tanh %49 : vector<32x160xf32>
    %51 = vector.extract_strided_slice %50 {offsets = [0, 0], sizes = [32, 32], strides = [1, 1]} : vector<32x160xf32> to vector<32x32xf32>
    %52 = arith.truncf %51 : vector<32x32xf32> to vector<32x32xbf16>
    %c0_16 = arith.constant 0 : index
    %c0_17 = arith.constant 0 : index
    %53 = vector.load %arg4[%c0_16, %c0_17] : memref<5x128xf32, #tpu.memory_space<vmem>>, vector<1x128xf32>
    %c0_18 = arith.constant 0 : index
    %c0_19 = arith.constant 0 : index
    %c0_20 = arith.constant 0 : index
    %54 = vector.load %arg6[%c0_18, %c0_19, %c0_20] : memref<5x32x128xbf16, #tpu.memory_space<vmem>>, vector<1x32x128xbf16>
    %55 = vector.shape_cast %54 : vector<1x32x128xbf16> to vector<32x128xbf16>
    %cst_21 = arith.constant dense<0.000000e+00> : vector<32x128xf32>
    %56 = tpu.matmul %52, %55, %cst_21 {dimension_numbers = #tpu.dot_dimension_numbers<[1], [0], [0], [1], [0, 0, 1, 1], [], []>} : vector<32x32xbf16>, vector<32x128xbf16>, vector<32x128xf32> -> vector<32x128xf32>
    %57 = vector.broadcast %53 : vector<1x128xf32> to vector<32x128xf32>
    %58 = arith.addf %57, %56 : vector<32x128xf32>
    %59 = arith.mulf %43, %58 : vector<32x128xf32>
    %60 = arith.addf %37, %59 : vector<32x128xf32>
    %61 = arith.truncf %60 : vector<32x128xf32> to vector<32x128xbf16>
    %c0_22 = arith.constant 0 : index
    %c0_23 = arith.constant 0 : index
    %62 = vector.load %arg7[%c0_22, %c0_23] : memref<128x64xbf16, #tpu.memory_space<vmem>>, vector<128x64xbf16>
    %cst_24 = arith.constant dense<0.000000e+00> : vector<32x64xf32>
    %63 = tpu.matmul %61, %62, %cst_24 {dimension_numbers = #tpu.dot_dimension_numbers<[1], [0], [0], [1], [0, 0, 1, 1], [], []>} : vector<32x128xbf16>, vector<128x64xbf16>, vector<32x64xf32> -> vector<32x64xf32>
    %64 = math.tanh %63 : vector<32x64xf32>
    %65 = arith.truncf %64 : vector<32x64xf32> to vector<32x64xbf16>
    %c0_25 = arith.constant 0 : index
    %c0_26 = arith.constant 0 : index
    %66 = vector.load %arg8[%c0_25, %c0_26] : memref<64x128xbf16, #tpu.memory_space<vmem>>, vector<64x128xbf16>
    %cst_27 = arith.constant dense<0.000000e+00> : vector<32x128xf32>
    %67 = tpu.matmul %65, %66, %cst_27 {dimension_numbers = #tpu.dot_dimension_numbers<[1], [0], [0], [1], [0, 0, 1, 1], [], []>} : vector<32x64xbf16>, vector<64x128xbf16>, vector<32x128xf32> -> vector<32x128xf32>
    %68 = vector.broadcast %9 : vector<1x128xf32> to vector<32x128xf32>
    %69 = arith.addf %68, %67 : vector<32x128xf32>
    %70 = vector.extract_strided_slice %50 {offsets = [0, 32], sizes = [32, 32], strides = [1, 1]} : vector<32x160xf32> to vector<32x32xf32>
    %71 = arith.truncf %70 : vector<32x32xf32> to vector<32x32xbf16>
    %c1 = arith.constant 1 : index
    %c0_28 = arith.constant 0 : index
    %72 = vector.load %arg4[%c1, %c0_28] : memref<5x128xf32, #tpu.memory_space<vmem>>, vector<1x128xf32>
    %c1_29 = arith.constant 1 : index
    %c0_30 = arith.constant 0 : index
    %c0_31 = arith.constant 0 : index
    %73 = vector.load %arg6[%c1_29, %c0_30, %c0_31] : memref<5x32x128xbf16, #tpu.memory_space<vmem>>, vector<1x32x128xbf16>
    %74 = vector.shape_cast %73 : vector<1x32x128xbf16> to vector<32x128xbf16>
    %cst_32 = arith.constant dense<0.000000e+00> : vector<32x128xf32>
    %75 = tpu.matmul %71, %74, %cst_32 {dimension_numbers = #tpu.dot_dimension_numbers<[1], [0], [0], [1], [0, 0, 1, 1], [], []>} : vector<32x32xbf16>, vector<32x128xbf16>, vector<32x128xf32> -> vector<32x128xf32>
    %76 = vector.broadcast %72 : vector<1x128xf32> to vector<32x128xf32>
    %77 = arith.addf %76, %75 : vector<32x128xf32>
    %78 = arith.mulf %43, %77 : vector<32x128xf32>
    %79 = arith.addf %37, %78 : vector<32x128xf32>
    %80 = arith.truncf %79 : vector<32x128xf32> to vector<32x128xbf16>
    %c0_33 = arith.constant 0 : index
    %c0_34 = arith.constant 0 : index
    %81 = vector.load %arg11[%c0_33, %c0_34] : memref<128x128xbf16, #tpu.memory_space<vmem>>, vector<128x128xbf16>
    %cst_35 = arith.constant dense<0.000000e+00> : vector<32x128xf32>
    %82 = tpu.matmul %80, %81, %cst_35 {dimension_numbers = #tpu.dot_dimension_numbers<[1], [0], [0], [1], [0, 0, 1, 1], [], []>} : vector<32x128xbf16>, vector<128x128xbf16>, vector<32x128xf32> -> vector<32x128xf32>
    %83 = vector.extract_strided_slice %50 {offsets = [0, 64], sizes = [32, 32], strides = [1, 1]} : vector<32x160xf32> to vector<32x32xf32>
    %84 = arith.truncf %83 : vector<32x32xf32> to vector<32x32xbf16>
    %c2 = arith.constant 2 : index
    %c0_36 = arith.constant 0 : index
    %85 = vector.load %arg4[%c2, %c0_36] : memref<5x128xf32, #tpu.memory_space<vmem>>, vector<1x128xf32>
    %c2_37 = arith.constant 2 : index
    %c0_38 = arith.constant 0 : index
    %c0_39 = arith.constant 0 : index
    %86 = vector.load %arg6[%c2_37, %c0_38, %c0_39] : memref<5x32x128xbf16, #tpu.memory_space<vmem>>, vector<1x32x128xbf16>
    %87 = vector.shape_cast %86 : vector<1x32x128xbf16> to vector<32x128xbf16>
    %cst_40 = arith.constant dense<0.000000e+00> : vector<32x128xf32>
    %88 = tpu.matmul %84, %87, %cst_40 {dimension_numbers = #tpu.dot_dimension_numbers<[1], [0], [0], [1], [0, 0, 1, 1], [], []>} : vector<32x32xbf16>, vector<32x128xbf16>, vector<32x128xf32> -> vector<32x128xf32>
    %89 = vector.broadcast %85 : vector<1x128xf32> to vector<32x128xf32>
    %90 = arith.addf %89, %88 : vector<32x128xf32>
    %91 = arith.mulf %43, %90 : vector<32x128xf32>
    %92 = arith.addf %37, %91 : vector<32x128xf32>
    %93 = arith.truncf %92 : vector<32x128xf32> to vector<32x128xbf16>
    %c0_41 = arith.constant 0 : index
    %c0_42 = arith.constant 0 : index
    %94 = vector.load %arg12[%c0_41, %c0_42] : memref<128x128xbf16, #tpu.memory_space<vmem>>, vector<128x128xbf16>
    %cst_43 = arith.constant dense<0.000000e+00> : vector<32x128xf32>
    %95 = tpu.matmul %93, %94, %cst_43 {dimension_numbers = #tpu.dot_dimension_numbers<[1], [0], [0], [1], [0, 0, 1, 1], [], []>} : vector<32x128xbf16>, vector<128x128xbf16>, vector<32x128xf32> -> vector<32x128xf32>
    %96 = vector.extract_strided_slice %50 {offsets = [0, 96], sizes = [32, 32], strides = [1, 1]} : vector<32x160xf32> to vector<32x32xf32>
    %97 = arith.truncf %96 : vector<32x32xf32> to vector<32x32xbf16>
    %c3 = arith.constant 3 : index
    %c0_44 = arith.constant 0 : index
    %98 = vector.load %arg4[%c3, %c0_44] : memref<5x128xf32, #tpu.memory_space<vmem>>, vector<1x128xf32>
    %c3_45 = arith.constant 3 : index
    %c0_46 = arith.constant 0 : index
    %c0_47 = arith.constant 0 : index
    %99 = vector.load %arg6[%c3_45, %c0_46, %c0_47] : memref<5x32x128xbf16, #tpu.memory_space<vmem>>, vector<1x32x128xbf16>
    %100 = vector.shape_cast %99 : vector<1x32x128xbf16> to vector<32x128xbf16>
    %cst_48 = arith.constant dense<0.000000e+00> : vector<32x128xf32>
    %101 = tpu.matmul %97, %100, %cst_48 {dimension_numbers = #tpu.dot_dimension_numbers<[1], [0], [0], [1], [0, 0, 1, 1], [], []>} : vector<32x32xbf16>, vector<32x128xbf16>, vector<32x128xf32> -> vector<32x128xf32>
    %102 = vector.broadcast %98 : vector<1x128xf32> to vector<32x128xf32>
    %103 = arith.addf %102, %101 : vector<32x128xf32>
    %104 = arith.mulf %43, %103 : vector<32x128xf32>
    %105 = arith.addf %37, %104 : vector<32x128xf32>
    %106 = arith.truncf %105 : vector<32x128xf32> to vector<32x128xbf16>
    %c0_49 = arith.constant 0 : index
    %c0_50 = arith.constant 0 : index
    %107 = vector.load %arg10[%c0_49, %c0_50] : memref<128x128xbf16, #tpu.memory_space<vmem>>, vector<128x128xbf16>
    %cst_51 = arith.constant dense<0.000000e+00> : vector<32x128xf32>
    %108 = tpu.matmul %106, %107, %cst_51 {dimension_numbers = #tpu.dot_dimension_numbers<[1], [0], [0], [1], [0, 0, 1, 1], [], []>} : vector<32x128xbf16>, vector<128x128xbf16>, vector<32x128xf32> -> vector<32x128xf32>
    %109 = vector.extract_strided_slice %50 {offsets = [0, 128], sizes = [32, 32], strides = [1, 1]} : vector<32x160xf32> to vector<32x32xf32>
    %110 = arith.truncf %109 : vector<32x32xf32> to vector<32x32xbf16>
    %c4 = arith.constant 4 : index
    %c0_52 = arith.constant 0 : index
    %111 = vector.load %arg4[%c4, %c0_52] : memref<5x128xf32, #tpu.memory_space<vmem>>, vector<1x128xf32>
    %c4_53 = arith.constant 4 : index
    %c0_54 = arith.constant 0 : index
    %c0_55 = arith.constant 0 : index
    %112 = vector.load %arg6[%c4_53, %c0_54, %c0_55] : memref<5x32x128xbf16, #tpu.memory_space<vmem>>, vector<1x32x128xbf16>
    %113 = vector.shape_cast %112 : vector<1x32x128xbf16> to vector<32x128xbf16>
    %cst_56 = arith.constant dense<0.000000e+00> : vector<32x128xf32>
    %114 = tpu.matmul %110, %113, %cst_56 {dimension_numbers = #tpu.dot_dimension_numbers<[1], [0], [0], [1], [0, 0, 1, 1], [], []>} : vector<32x32xbf16>, vector<32x128xbf16>, vector<32x128xf32> -> vector<32x128xf32>
    %115 = vector.broadcast %111 : vector<1x128xf32> to vector<32x128xf32>
    %116 = arith.addf %115, %114 : vector<32x128xf32>
    %117 = arith.mulf %43, %116 : vector<32x128xf32>
    %118 = arith.addf %37, %117 : vector<32x128xf32>
    %119 = arith.truncf %118 : vector<32x128xf32> to vector<32x128xbf16>
    %c0_57 = arith.constant 0 : index
    %c0_58 = arith.constant 0 : index
    %120 = vector.load %arg13[%c0_57, %c0_58] : memref<128x128xbf16, #tpu.memory_space<vmem>>, vector<128x128xbf16>
    %cst_59 = arith.constant dense<0.000000e+00> : vector<32x128xf32>
    %121 = tpu.matmul %119, %120, %cst_59 {dimension_numbers = #tpu.dot_dimension_numbers<[1], [0], [0], [1], [0, 0, 1, 1], [], []>} : vector<32x128xbf16>, vector<128x128xbf16>, vector<32x128xf32> -> vector<32x128xf32>
    %122 = arith.negf %121 : vector<32x128xf32>
    %123 = math.exp %122 : vector<32x128xf32>
    %cst_60 = arith.constant 1.000000e+00 : f32
    %124 = vector.broadcast %cst_60 : f32 to vector<32x128xf32>
    %125 = arith.addf %124, %123 : vector<32x128xf32>
    %126 = arith.divf %124, %125 : vector<32x128xf32>
    %127 = arith.mulf %121, %126 : vector<32x128xf32>
    %128 = math.exp %69 : vector<32x128xf32>
    %cst_61 = arith.constant 0.000000e+00 : f32
    %129 = vector.broadcast %cst_61 : f32 to vector<32x128xf32>
    %130 = arith.subf %129, %128 : vector<32x128xf32>
    %cst_62 = arith.constant 0.000000e+00 : f32
    %131 = vector.broadcast %cst_62 : f32 to vector<1x128xf32>
    %132 = vector.extract_strided_slice %130 {offsets = [0, 0], sizes = [31, 128], strides = [1, 1]} : vector<32x128xf32> to vector<31x128xf32>
    %133 = tpu.concatenate %131, %132 in 0 : vector<1x128xf32>, vector<31x128xf32> -> vector<32x128xf32>
    %134 = arith.addf %130, %133 : vector<32x128xf32>
    %cst_63 = arith.constant 0.000000e+00 : f32
    %135 = vector.broadcast %cst_63 : f32 to vector<2x128xf32>
    %136 = vector.extract_strided_slice %134 {offsets = [0, 0], sizes = [30, 128], strides = [1, 1]} : vector<32x128xf32> to vector<30x128xf32>
    %137 = tpu.concatenate %135, %136 in 0 : vector<2x128xf32>, vector<30x128xf32> -> vector<32x128xf32>
    %138 = arith.addf %134, %137 : vector<32x128xf32>
    %cst_64 = arith.constant 0.000000e+00 : f32
    %139 = vector.broadcast %cst_64 : f32 to vector<4x128xf32>
    %140 = vector.extract_strided_slice %138 {offsets = [0, 0], sizes = [28, 128], strides = [1, 1]} : vector<32x128xf32> to vector<28x128xf32>
    %141 = tpu.concatenate %139, %140 in 0 : vector<4x128xf32>, vector<28x128xf32> -> vector<32x128xf32>
    %142 = arith.addf %138, %141 : vector<32x128xf32>
    %cst_65 = arith.constant 0.000000e+00 : f32
    %143 = vector.broadcast %cst_65 : f32 to vector<8x128xf32>
    %144 = vector.extract_strided_slice %142 {offsets = [0, 0], sizes = [24, 128], strides = [1, 1]} : vector<32x128xf32> to vector<24x128xf32>
    %145 = tpu.concatenate %143, %144 in 0 : vector<8x128xf32>, vector<24x128xf32> -> vector<32x128xf32>
    %146 = arith.addf %142, %145 : vector<32x128xf32>
    %cst_66 = arith.constant 0.000000e+00 : f32
    %147 = vector.broadcast %cst_66 : f32 to vector<16x128xf32>
    %148 = vector.extract_strided_slice %146 {offsets = [0, 0], sizes = [16, 128], strides = [1, 1]} : vector<32x128xf32> to vector<16x128xf32>
    %149 = tpu.concatenate %147, %148 in 0 : vector<16x128xf32>, vector<16x128xf32> -> vector<32x128xf32>
    %150 = arith.addf %146, %149 : vector<32x128xf32>
    %151 = arith.subf %150, %130 : vector<32x128xf32>
    %152 = math.exp %151 : vector<32x128xf32>
    %153 = arith.mulf %108, %152 : vector<32x128xf32>
    %cst_67 = arith.constant 0.000000e+00 : f32
    %154 = vector.broadcast %cst_67 : f32 to vector<32x128xf32>
    %155 = arith.subf %154, %150 : vector<32x128xf32>
    %156 = math.exp %155 : vector<32x128xf32>
    %157 = arith.mulf %82, %156 : vector<32x128xf32>
    %158 = vector.extract_strided_slice %150 {offsets = [31, 0], sizes = [1, 128], strides = [1, 1]} : vector<32x128xf32> to vector<1x128xf32>
    %159 = math.exp %158 : vector<1x128xf32>
    %160 = vector.broadcast %159 : vector<1x128xf32> to vector<32x128xf32>
    %161 = arith.mulf %157, %160 : vector<32x128xf32>
    %162 = arith.mulf %108, %82 : vector<32x128xf32>
    %c0_68 = arith.constant 0 : index
    %c0_69 = arith.constant 0 : index
    %163 = vector.load %arg9[%c0_68, %c0_69] : memref<1x128xf32, #tpu.memory_space<vmem>>, vector<1x128xf32>
    %164 = vector.broadcast %163 : vector<1x128xf32> to vector<32x128xf32>
    %165 = arith.mulf %162, %164 : vector<32x128xf32>
    %166 = tpu.transpose %159, [1, 0] : vector<1x128xf32> -> vector<128x1xf32>
    %167 = tpu.transpose %161, [1, 0] : vector<32x128xf32> -> vector<128x32xf32>
    %168 = tpu.iota {dimensions = array<i32: 0>} : vector<32x32xi32>
    %169 = tpu.iota {dimensions = array<i32: 1>} : vector<32x32xi32>
    %170 = arith.cmpi sgt, %168, %169 : vector<32x32xi32>
    %c0_70 = arith.constant 0 : index
    %c0_71 = arith.constant 0 : index
    %c0_72 = arith.constant 0 : index
    %171 = vector.load %arg19[%c0_70, %c0_71, %c0_72] : memref<2x64x64xf32, #tpu.memory_space<vmem>>, vector<1x64x64xf32>
    %172 = vector.shape_cast %171 : vector<1x64x64xf32> to vector<64x64xf32>
    %173 = vector.extract_strided_slice %153 {offsets = [0, 0], sizes = [32, 64], strides = [1, 1]} : vector<32x128xf32> to vector<32x64xf32>
    %174 = arith.truncf %173 : vector<32x64xf32> to vector<32x64xbf16>
    %175 = vector.extract_strided_slice %157 {offsets = [0, 0], sizes = [32, 64], strides = [1, 1]} : vector<32x128xf32> to vector<32x64xf32>
    %176 = arith.truncf %175 : vector<32x64xf32> to vector<32x64xbf16>
    %177 = vector.extract_strided_slice %95 {offsets = [0, 0], sizes = [32, 64], strides = [1, 1]} : vector<32x128xf32> to vector<32x64xf32>
    %178 = arith.truncf %177 : vector<32x64xf32> to vector<32x64xbf16>
    %cst_73 = arith.constant dense<0.000000e+00> : vector<32x32xf32>
    %179 = tpu.matmul %174, %176, %cst_73 {dimension_numbers = #tpu.dot_dimension_numbers<[1], [1], [0], [0], [0, 0, 1, 0], [], []>} : vector<32x64xbf16>, vector<32x64xbf16>, vector<32x32xf32> -> vector<32x32xf32>
    %cst_74 = arith.constant 0.000000e+00 : f32
    %180 = vector.broadcast %cst_74 : f32 to vector<32x32xf32>
    %181 = arith.select %170, %179, %180 : vector<32x32xi1>, vector<32x32xf32>
    %182 = vector.extract_strided_slice %165 {offsets = [0, 0], sizes = [32, 64], strides = [1, 1]} : vector<32x128xf32> to vector<32x64xf32>
    %cst_75 = arith.constant dense<0.000000e+00> : vector<32xf32>
    %183 = vector.multi_reduction <add>, %182, %cst_75 [1] : vector<32x64xf32> to vector<32xf32>
    %184 = vector.shape_cast %183 : vector<32xf32> to vector<32x1xf32>
    %185 = arith.truncf %181 : vector<32x32xf32> to vector<32x32xbf16>
    %cst_76 = arith.constant dense<0.000000e+00> : vector<32x64xf32>
    %186 = tpu.matmul %185, %178, %cst_76 {dimension_numbers = #tpu.dot_dimension_numbers<[1], [0], [0], [1], [0, 0, 1, 1], [], []>} : vector<32x32xbf16>, vector<32x64xbf16>, vector<32x64xf32> -> vector<32x64xf32>
    %187 = vector.broadcast %184 : vector<32x1xf32> to vector<32x64xf32>
    %188 = arith.mulf %187, %177 : vector<32x64xf32>
    %189 = arith.addf %186, %188 : vector<32x64xf32>
    %190 = arith.truncf %172 : vector<64x64xf32> to vector<64x64xbf16>
    %cst_77 = arith.constant dense<0.000000e+00> : vector<32x64xf32>
    %191 = tpu.matmul %174, %190, %cst_77 {dimension_numbers = #tpu.dot_dimension_numbers<[1], [0], [0], [1], [0, 0, 1, 1], [], []>} : vector<32x64xbf16>, vector<64x64xbf16>, vector<32x64xf32> -> vector<32x64xf32>
    %192 = arith.addf %189, %191 : vector<32x64xf32>
    %193 = vector.extract_strided_slice %166 {offsets = [0, 0], sizes = [64, 1], strides = [1, 1]} : vector<128x1xf32> to vector<64x1xf32>
    %194 = vector.broadcast %193 : vector<64x1xf32> to vector<64x64xf32>
    %195 = arith.mulf %194, %172 : vector<64x64xf32>
    %196 = vector.extract_strided_slice %167 {offsets = [0, 0], sizes = [64, 32], strides = [1, 1]} : vector<128x32xf32> to vector<64x32xf32>
    %197 = arith.truncf %196 : vector<64x32xf32> to vector<64x32xbf16>
    %cst_78 = arith.constant dense<0.000000e+00> : vector<64x64xf32>
    %198 = tpu.matmul %197, %178, %cst_78 {dimension_numbers = #tpu.dot_dimension_numbers<[1], [0], [0], [1], [0, 0, 1, 1], [], []>} : vector<64x32xbf16>, vector<32x64xbf16>, vector<64x64xf32> -> vector<64x64xf32>
    %199 = arith.addf %195, %198 : vector<64x64xf32>
    %c0_79 = arith.constant 0 : index
    %c0_80 = arith.constant 0 : index
    %c0_81 = arith.constant 0 : index
    %200 = vector.load %arg19[%c0_79, %c0_80, %c0_81] : memref<2x64x64xf32, #tpu.memory_space<vmem>>, vector<1x64x64xf32>
    %201 = vector.shape_cast %200 : vector<1x64x64xf32> to vector<64x64xf32>
    %202 = vector.shape_cast %199 : vector<64x64xf32> to vector<1x64x64xf32>
    tpu.vector_store %arg19[%c0_79, %c0_80, %c0_81], %202 {strides = array<i32>} : memref<2x64x64xf32, #tpu.memory_space<vmem>>, vector<1x64x64xf32>,
    %cst_82 = arith.constant dense<0.000000e+00> : vector<32xf32>
    %203 = vector.multi_reduction <add>, %192, %cst_82 [1] : vector<32x64xf32> to vector<32xf32>
    %204 = vector.shape_cast %203 : vector<32xf32> to vector<32x1xf32>
    %cst_83 = arith.constant 6.400000e+01 : f32
    %205 = vector.broadcast %cst_83 : f32 to vector<32x1xf32>
    %206 = arith.divf %204, %205 : vector<32x1xf32>
    %207 = vector.broadcast %206 : vector<32x1xf32> to vector<32x64xf32>
    %208 = arith.subf %192, %207 : vector<32x64xf32>
    %209 = arith.mulf %208, %208 : vector<32x64xf32>
    %cst_84 = arith.constant dense<0.000000e+00> : vector<32xf32>
    %210 = vector.multi_reduction <add>, %209, %cst_84 [1] : vector<32x64xf32> to vector<32xf32>
    %211 = vector.shape_cast %210 : vector<32xf32> to vector<32x1xf32>
    %cst_85 = arith.constant 6.400000e+01 : f32
    %212 = vector.broadcast %cst_85 : f32 to vector<32x1xf32>
    %213 = arith.divf %211, %212 : vector<32x1xf32>
    %cst_86 = arith.constant 2.000000e-05 : f32
    %214 = vector.broadcast %cst_86 : f32 to vector<32x1xf32>
    %215 = arith.addf %213, %214 : vector<32x1xf32>
    %216 = math.rsqrt %215 : vector<32x1xf32>
    %217 = vector.broadcast %216 : vector<32x1xf32> to vector<32x64xf32>
    %218 = arith.mulf %208, %217 : vector<32x64xf32>
    %c1_87 = arith.constant 1 : index
    %c0_88 = arith.constant 0 : index
    %c0_89 = arith.constant 0 : index
    %219 = vector.load %arg19[%c1_87, %c0_88, %c0_89] : memref<2x64x64xf32, #tpu.memory_space<vmem>>, vector<1x64x64xf32>
    %220 = vector.shape_cast %219 : vector<1x64x64xf32> to vector<64x64xf32>
    %221 = vector.extract_strided_slice %153 {offsets = [0, 64], sizes = [32, 64], strides = [1, 1]} : vector<32x128xf32> to vector<32x64xf32>
    %222 = arith.truncf %221 : vector<32x64xf32> to vector<32x64xbf16>
    %223 = vector.extract_strided_slice %157 {offsets = [0, 64], sizes = [32, 64], strides = [1, 1]} : vector<32x128xf32> to vector<32x64xf32>
    %224 = arith.truncf %223 : vector<32x64xf32> to vector<32x64xbf16>
    %225 = vector.extract_strided_slice %95 {offsets = [0, 64], sizes = [32, 64], strides = [1, 1]} : vector<32x128xf32> to vector<32x64xf32>
    %226 = arith.truncf %225 : vector<32x64xf32> to vector<32x64xbf16>
    %cst_90 = arith.constant dense<0.000000e+00> : vector<32x32xf32>
    %227 = tpu.matmul %222, %224, %cst_90 {dimension_numbers = #tpu.dot_dimension_numbers<[1], [1], [0], [0], [0, 0, 1, 0], [], []>} : vector<32x64xbf16>, vector<32x64xbf16>, vector<32x32xf32> -> vector<32x32xf32>
    %cst_91 = arith.constant 0.000000e+00 : f32
    %228 = vector.broadcast %cst_91 : f32 to vector<32x32xf32>
    %229 = arith.select %170, %227, %228 : vector<32x32xi1>, vector<32x32xf32>
    %230 = vector.extract_strided_slice %165 {offsets = [0, 64], sizes = [32, 64], strides = [1, 1]} : vector<32x128xf32> to vector<32x64xf32>
    %cst_92 = arith.constant dense<0.000000e+00> : vector<32xf32>
    %231 = vector.multi_reduction <add>, %230, %cst_92 [1] : vector<32x64xf32> to vector<32xf32>
    %232 = vector.shape_cast %231 : vector<32xf32> to vector<32x1xf32>
    %233 = arith.truncf %229 : vector<32x32xf32> to vector<32x32xbf16>
    %cst_93 = arith.constant dense<0.000000e+00> : vector<32x64xf32>
    %234 = tpu.matmul %233, %226, %cst_93 {dimension_numbers = #tpu.dot_dimension_numbers<[1], [0], [0], [1], [0, 0, 1, 1], [], []>} : vector<32x32xbf16>, vector<32x64xbf16>, vector<32x64xf32> -> vector<32x64xf32>
    %235 = vector.broadcast %232 : vector<32x1xf32> to vector<32x64xf32>
    %236 = arith.mulf %235, %225 : vector<32x64xf32>
    %237 = arith.addf %234, %236 : vector<32x64xf32>
    %238 = arith.truncf %220 : vector<64x64xf32> to vector<64x64xbf16>
    %cst_94 = arith.constant dense<0.000000e+00> : vector<32x64xf32>
    %239 = tpu.matmul %222, %238, %cst_94 {dimension_numbers = #tpu.dot_dimension_numbers<[1], [0], [0], [1], [0, 0, 1, 1], [], []>} : vector<32x64xbf16>, vector<64x64xbf16>, vector<32x64xf32> -> vector<32x64xf32>
    %240 = arith.addf %237, %239 : vector<32x64xf32>
    %241 = vector.extract_strided_slice %166 {offsets = [64, 0], sizes = [64, 1], strides = [1, 1]} : vector<128x1xf32> to vector<64x1xf32>
    %242 = vector.broadcast %241 : vector<64x1xf32> to vector<64x64xf32>
    %243 = arith.mulf %242, %220 : vector<64x64xf32>
    %244 = vector.extract_strided_slice %167 {offsets = [64, 0], sizes = [64, 32], strides = [1, 1]} : vector<128x32xf32> to vector<64x32xf32>
    %245 = arith.truncf %244 : vector<64x32xf32> to vector<64x32xbf16>
    %cst_95 = arith.constant dense<0.000000e+00> : vector<64x64xf32>
    %246 = tpu.matmul %245, %226, %cst_95 {dimension_numbers = #tpu.dot_dimension_numbers<[1], [0], [0], [1], [0, 0, 1, 1], [], []>} : vector<64x32xbf16>, vector<32x64xbf16>, vector<64x64xf32> -> vector<64x64xf32>
    %247 = arith.addf %243, %246 : vector<64x64xf32>
    %c1_96 = arith.constant 1 : index
    %c0_97 = arith.constant 0 : index
    %c0_98 = arith.constant 0 : index
    %248 = vector.load %arg19[%c1_96, %c0_97, %c0_98] : memref<2x64x64xf32, #tpu.memory_space<vmem>>, vector<1x64x64xf32>
    %249 = vector.shape_cast %248 : vector<1x64x64xf32> to vector<64x64xf32>
    %250 = vector.shape_cast %247 : vector<64x64xf32> to vector<1x64x64xf32>
    tpu.vector_store %arg19[%c1_96, %c0_97, %c0_98], %250 {strides = array<i32>} : memref<2x64x64xf32, #tpu.memory_space<vmem>>, vector<1x64x64xf32>,
    %cst_99 = arith.constant dense<0.000000e+00> : vector<32xf32>
    %251 = vector.multi_reduction <add>, %240, %cst_99 [1] : vector<32x64xf32> to vector<32xf32>
    %252 = vector.shape_cast %251 : vector<32xf32> to vector<32x1xf32>
    %cst_100 = arith.constant 6.400000e+01 : f32
    %253 = vector.broadcast %cst_100 : f32 to vector<32x1xf32>
    %254 = arith.divf %252, %253 : vector<32x1xf32>
    %255 = vector.broadcast %254 : vector<32x1xf32> to vector<32x64xf32>
    %256 = arith.subf %240, %255 : vector<32x64xf32>
    %257 = arith.mulf %256, %256 : vector<32x64xf32>
    %cst_101 = arith.constant dense<0.000000e+00> : vector<32xf32>
    %258 = vector.multi_reduction <add>, %257, %cst_101 [1] : vector<32x64xf32> to vector<32xf32>
    %259 = vector.shape_cast %258 : vector<32xf32> to vector<32x1xf32>
    %cst_102 = arith.constant 6.400000e+01 : f32
    %260 = vector.broadcast %cst_102 : f32 to vector<32x1xf32>
    %261 = arith.divf %259, %260 : vector<32x1xf32>
    %cst_103 = arith.constant 2.000000e-05 : f32
    %262 = vector.broadcast %cst_103 : f32 to vector<32x1xf32>
    %263 = arith.addf %261, %262 : vector<32x1xf32>
    %264 = math.rsqrt %263 : vector<32x1xf32>
    %265 = vector.broadcast %264 : vector<32x1xf32> to vector<32x64xf32>
    %266 = arith.mulf %256, %265 : vector<32x64xf32>
    %267 = tpu.concatenate %218, %266 in 1 : vector<32x64xf32>, vector<32x64xf32> -> vector<32x128xf32>
    %268 = vector.broadcast %10 : vector<1x128xf32> to vector<32x128xf32>
    %269 = arith.mulf %267, %268 : vector<32x128xf32>
    %270 = vector.broadcast %11 : vector<1x128xf32> to vector<32x128xf32>
    %271 = arith.addf %269, %270 : vector<32x128xf32>
    %272 = arith.mulf %271, %127 : vector<32x128xf32>
    %273 = arith.truncf %272 : vector<32x128xf32> to vector<32x128xbf16>
    %c0_104 = arith.constant 0 : index
    %c0_105 = arith.constant 0 : index
    %274 = vector.load %arg14[%c0_104, %c0_105] : memref<128x128xbf16, #tpu.memory_space<vmem>>, vector<128x128xbf16>
    %cst_106 = arith.constant dense<0.000000e+00> : vector<32x128xf32>
    %275 = tpu.matmul %273, %274, %cst_106 {dimension_numbers = #tpu.dot_dimension_numbers<[1], [0], [0], [1], [0, 0, 1, 1], [], []>} : vector<32x128xbf16>, vector<128x128xbf16>, vector<32x128xf32> -> vector<32x128xf32>
    %276 = arith.addf %15, %275 : vector<32x128xf32>
    %cst_107 = arith.constant dense<0.000000e+00> : vector<32xf32>
    %277 = vector.multi_reduction <add>, %276, %cst_107 [1] : vector<32x128xf32> to vector<32xf32>
    %278 = vector.shape_cast %277 : vector<32xf32> to vector<32x1xf32>
    %cst_108 = arith.constant 1.280000e+02 : f32
    %279 = vector.broadcast %cst_108 : f32 to vector<32x1xf32>
    %280 = arith.divf %278, %279 : vector<32x1xf32>
    %281 = vector.broadcast %280 : vector<32x1xf32> to vector<32x128xf32>
    %282 = arith.subf %276, %281 : vector<32x128xf32>
    %283 = arith.mulf %282, %282 : vector<32x128xf32>
    %cst_109 = arith.constant dense<0.000000e+00> : vector<32xf32>
    %284 = vector.multi_reduction <add>, %283, %cst_109 [1] : vector<32x128xf32> to vector<32xf32>
    %285 = vector.shape_cast %284 : vector<32xf32> to vector<32x1xf32>
    %cst_110 = arith.constant 1.280000e+02 : f32
    %286 = vector.broadcast %cst_110 : f32 to vector<32x1xf32>
    %287 = arith.divf %285, %286 : vector<32x1xf32>
    %288 = vector.broadcast %280 : vector<32x1xf32> to vector<32x128xf32>
    %289 = arith.subf %276, %288 : vector<32x128xf32>
    %cst_111 = arith.constant 9.99999974E-6 : f32
    %290 = vector.broadcast %cst_111 : f32 to vector<32x1xf32>
    %291 = arith.addf %287, %290 : vector<32x1xf32>
    %292 = math.rsqrt %291 : vector<32x1xf32>
    %293 = vector.broadcast %292 : vector<32x1xf32> to vector<32x128xf32>
    %294 = arith.mulf %289, %293 : vector<32x128xf32>
    %295 = vector.broadcast %6 : vector<1x128xf32> to vector<32x128xf32>
    %296 = arith.mulf %294, %295 : vector<32x128xf32>
    %297 = vector.broadcast %7 : vector<1x128xf32> to vector<32x128xf32>
    %298 = arith.addf %296, %297 : vector<32x128xf32>
    %c0_112 = arith.constant 0 : index
    %c0_113 = arith.constant 0 : index
    %299 = vector.load %arg21[%c0_112, %c0_113] : memref<1x128xf32, #tpu.memory_space<vmem>>, vector<1x128xf32>
    %300 = vector.extract_strided_slice %298 {offsets = [0, 0], sizes = [31, 128], strides = [1, 1]} : vector<32x128xf32> to vector<31x128xf32>
    %301 = tpu.concatenate %299, %300 in 0 : vector<1x128xf32>, vector<31x128xf32> -> vector<32x128xf32>
    %302 = vector.extract_strided_slice %298 {offsets = [31, 0], sizes = [1, 128], strides = [1, 1]} : vector<32x128xf32> to vector<1x128xf32>
    %c0_114 = arith.constant 0 : index
    %c0_115 = arith.constant 0 : index
    %303 = vector.load %arg21[%c0_114, %c0_115] : memref<1x128xf32, #tpu.memory_space<vmem>>, vector<1x128xf32>
    tpu.vector_store %arg21[%c0_114, %c0_115], %302 {strides = array<i32>} : memref<1x128xf32, #tpu.memory_space<vmem>>, vector<1x128xf32>,
    %304 = vector.broadcast %12 : vector<1x128xf32> to vector<32x128xf32>
    %305 = arith.mulf %301, %304 : vector<32x128xf32>
    %306 = arith.addf %298, %305 : vector<32x128xf32>
    %307 = vector.broadcast %13 : vector<1x128xf32> to vector<32x128xf32>
    %308 = arith.mulf %301, %307 : vector<32x128xf32>
    %309 = arith.addf %298, %308 : vector<32x128xf32>
    %310 = arith.truncf %306 : vector<32x128xf32> to vector<32x128xbf16>
    %c0_116 = arith.constant 0 : index
    %c0_117 = arith.constant 0 : index
    %311 = vector.load %arg15[%c0_116, %c0_117] : memref<128x256xbf16, #tpu.memory_space<vmem>>, vector<128x256xbf16>
    %cst_118 = arith.constant dense<0.000000e+00> : vector<32x256xf32>
    %312 = tpu.matmul %310, %311, %cst_118 {dimension_numbers = #tpu.dot_dimension_numbers<[1], [0], [0], [1], [0, 0, 1, 1], [], []>} : vector<32x128xbf16>, vector<128x256xbf16>, vector<32x256xf32> -> vector<32x256xf32>
    %cst_119 = arith.constant 0.000000e+00 : f32
    %313 = vector.broadcast %cst_119 : f32 to vector<32x256xf32>
    %314 = arith.maximumf %312, %313 : vector<32x256xf32>
    %315 = arith.mulf %314, %314 : vector<32x256xf32>
    %316 = arith.truncf %315 : vector<32x256xf32> to vector<32x256xbf16>
    %c0_120 = arith.constant 0 : index
    %c0_121 = arith.constant 0 : index
    %317 = vector.load %arg16[%c0_120, %c0_121] : memref<256x128xbf16, #tpu.memory_space<vmem>>, vector<256x128xbf16>
    %cst_122 = arith.constant dense<0.000000e+00> : vector<32x128xf32>
    %318 = tpu.matmul %316, %317, %cst_122 {dimension_numbers = #tpu.dot_dimension_numbers<[1], [0], [0], [1], [0, 0, 1, 1], [], []>} : vector<32x256xbf16>, vector<256x128xbf16>, vector<32x128xf32> -> vector<32x128xf32>
    %319 = arith.truncf %309 : vector<32x128xf32> to vector<32x128xbf16>
    %c0_123 = arith.constant 0 : index
    %c0_124 = arith.constant 0 : index
    %320 = vector.load %arg17[%c0_123, %c0_124] : memref<128x128xbf16, #tpu.memory_space<vmem>>, vector<128x128xbf16>
    %cst_125 = arith.constant dense<0.000000e+00> : vector<32x128xf32>
    %321 = tpu.matmul %319, %320, %cst_125 {dimension_numbers = #tpu.dot_dimension_numbers<[1], [0], [0], [1], [0, 0, 1, 1], [], []>} : vector<32x128xbf16>, vector<128x128xbf16>, vector<32x128xf32> -> vector<32x128xf32>
    %322 = arith.negf %321 : vector<32x128xf32>
    %323 = math.exp %322 : vector<32x128xf32>
    %cst_126 = arith.constant 1.000000e+00 : f32
    %324 = vector.broadcast %cst_126 : f32 to vector<32x128xf32>
    %325 = arith.addf %324, %323 : vector<32x128xf32>
    %326 = arith.divf %324, %325 : vector<32x128xf32>
    %327 = arith.mulf %326, %318 : vector<32x128xf32>
    %328 = arith.addf %276, %327 : vector<32x128xf32>
    %c0_127 = arith.constant 0 : index
    %c0_128 = arith.constant 0 : index
    %c0_129 = arith.constant 0 : index
    %329 = vector.load %arg18[%c0_127, %c0_128, %c0_129] : memref<1x32x128xf32, #tpu.memory_space<vmem>>, vector<1x32x128xf32>
    %330 = vector.shape_cast %329 : vector<1x32x128xf32> to vector<32x128xf32>
    %331 = vector.shape_cast %328 : vector<32x128xf32> to vector<1x32x128xf32>
    tpu.vector_store %arg18[%c0_127, %c0_128, %c0_129], %331 {strides = array<i32>} : memref<1x32x128xf32, #tpu.memory_space<vmem>>, vector<1x32x128xf32>,
    return
  }
  func.func @transform_0(%arg0: i32, %arg1: i32) -> (i32, i32, i32) {
    %c0_i32 = arith.constant 0 : i32
    %c0_i32_0 = arith.constant 0 : i32
    return %arg0, %arg1, %c0_i32 : i32, i32, i32
  }
  func.func @transform_1(%arg0: i32, %arg1: i32) -> (i32, i32) {
    %c0_i32 = arith.constant 0 : i32
    %c0_i32_0 = arith.constant 0 : i32
    %c0_i32_1 = arith.constant 0 : i32
    return %c0_i32, %c0_i32_0 : i32, i32
  }
  func.func @transform_2(%arg0: i32, %arg1: i32) -> (i32, i32) {
    %c0_i32 = arith.constant 0 : i32
    %c0_i32_0 = arith.constant 0 : i32
    %c0_i32_1 = arith.constant 0 : i32
    return %c0_i32, %c0_i32_0 : i32, i32
  }
  func.func @transform_3(%arg0: i32, %arg1: i32) -> (i32, i32) {
    %c0_i32 = arith.constant 0 : i32
    %c0_i32_0 = arith.constant 0 : i32
    %c0_i32_1 = arith.constant 0 : i32
    return %c0_i32, %c0_i32_0 : i32, i32
  }
  func.func @transform_4(%arg0: i32, %arg1: i32) -> (i32, i32, i32) {
    %c0_i32 = arith.constant 0 : i32
    %c0_i32_0 = arith.constant 0 : i32
    %c0_i32_1 = arith.constant 0 : i32
    %c0_i32_2 = arith.constant 0 : i32
    return %c0_i32, %c0_i32_0, %c0_i32_1 : i32, i32, i32
  }
  func.func @transform_5(%arg0: i32, %arg1: i32) -> (i32, i32) {
    %c0_i32 = arith.constant 0 : i32
    %c0_i32_0 = arith.constant 0 : i32
    %c0_i32_1 = arith.constant 0 : i32
    return %c0_i32, %c0_i32_0 : i32, i32
  }
  func.func @transform_6(%arg0: i32, %arg1: i32) -> (i32, i32) {
    %c0_i32 = arith.constant 0 : i32
    %c0_i32_0 = arith.constant 0 : i32
    %c0_i32_1 = arith.constant 0 : i32
    return %c0_i32, %c0_i32_0 : i32, i32
  }
  func.func @transform_7(%arg0: i32, %arg1: i32) -> (i32, i32) {
    %c0_i32 = arith.constant 0 : i32
    %c0_i32_0 = arith.constant 0 : i32
    %c0_i32_1 = arith.constant 0 : i32
    return %c0_i32, %c0_i32_0 : i32, i32
  }
  func.func @transform_8(%arg0: i32, %arg1: i32) -> (i32, i32) {
    %c0_i32 = arith.constant 0 : i32
    %c0_i32_0 = arith.constant 0 : i32
    %c0_i32_1 = arith.constant 0 : i32
    return %c0_i32, %c0_i32_0 : i32, i32
  }
  func.func @transform_9(%arg0: i32, %arg1: i32) -> (i32, i32) {
    %c0_i32 = arith.constant 0 : i32
    %c0_i32_0 = arith.constant 0 : i32
    %c0_i32_1 = arith.constant 0 : i32
    return %c0_i32, %c0_i32_0 : i32, i32
  }
  func.func @transform_10(%arg0: i32, %arg1: i32) -> (i32, i32) {
    %c0_i32 = arith.constant 0 : i32
    %c0_i32_0 = arith.constant 0 : i32
    %c0_i32_1 = arith.constant 0 : i32
    return %c0_i32, %c0_i32_0 : i32, i32
  }
  func.func @transform_11(%arg0: i32, %arg1: i32) -> (i32, i32) {
    %c0_i32 = arith.constant 0 : i32
    %c0_i32_0 = arith.constant 0 : i32
    %c0_i32_1 = arith.constant 0 : i32
    return %c0_i32, %c0_i32_0 : i32, i32
  }
  func.func @transform_12(%arg0: i32, %arg1: i32) -> (i32, i32) {
    %c0_i32 = arith.constant 0 : i32
    %c0_i32_0 = arith.constant 0 : i32
    %c0_i32_1 = arith.constant 0 : i32
    return %c0_i32, %c0_i32_0 : i32, i32
  }
  func.func @transform_13(%arg0: i32, %arg1: i32) -> (i32, i32) {
    %c0_i32 = arith.constant 0 : i32
    %c0_i32_0 = arith.constant 0 : i32
    %c0_i32_1 = arith.constant 0 : i32
    return %c0_i32, %c0_i32_0 : i32, i32
  }
  func.func @transform_14(%arg0: i32, %arg1: i32) -> (i32, i32) {
    %c0_i32 = arith.constant 0 : i32
    %c0_i32_0 = arith.constant 0 : i32
    %c0_i32_1 = arith.constant 0 : i32
    return %c0_i32, %c0_i32_0 : i32, i32
  }
  func.func @transform_15(%arg0: i32, %arg1: i32) -> (i32, i32) {
    %c0_i32 = arith.constant 0 : i32
    %c0_i32_0 = arith.constant 0 : i32
    %c0_i32_1 = arith.constant 0 : i32
    return %c0_i32, %c0_i32_0 : i32, i32
  }
  func.func @transform_16(%arg0: i32, %arg1: i32) -> (i32, i32, i32) {
    %c0_i32 = arith.constant 0 : i32
    %c0_i32_0 = arith.constant 0 : i32
    return %arg0, %arg1, %c0_i32 : i32, i32, i32
  }
}

</mosaic_0001>

<bundles_post_ra>
// kernel: rwkv_block_forward.1
= control target key start
LH: loop header
LB: loop body
LE: loop exit
PB: predicated region body
PF: predicated region fallthrough
CT: control target
= control target key end

     0   :  { %s6289_s0 = inlined_call_operand.vmem [shape: f32[2,32,128], index: 0, kind: input, shape index: {}]   ;;  %s6290_s1 = inlined_call_operand.vmem [shape: f32[10,128], index: 1, kind: input, shape index: {}]   ;;  %s6291_s2 = inlined_call_operand.vmem [shape: f32[5,128], index: 2, kind: input, shape index: {}]   ;;  %s6292_s3 = inlined_call_operand.vmem [shape: bf16[128,160], index: 3, kind: input, shape index: {}]   ;;  %s6293_s4 = inlined_call_operand.vmem [shape: bf16[5,32,128], index: 4, kind: input, shape index: {}]   ;;  %s6294_s5 = inlined_call_operand.vmem [shape: bf16[128,64], index: 5, kind: input, shape index: {}]   ;;  %s6295_s6 = inlined_call_operand.vmem [shape: bf16[64,128], index: 6, kind: input, shape index: {}]   ;;  %s6296_s7 = inlined_call_operand.vmem [shape: f32[1,128], index: 7, kind: input, shape index: {}]   ;;  %s6297_s8 = inlined_call_operand.vmem [shape: bf16[128,128], index: 8, kind: input, shape index: {}]   ;;  %s6298_s9 = inlined_call_operand.vmem [shape: bf16[128,128], index: 9, kind: input, shape index: {}]   ;;  %s6299_s10 = inlined_call_operand.vmem [shape: bf16[128,128], index: 10, kind: input, shape index: {}]   ;;  %s6300_s11 = inlined_call_operand.vmem [shape: bf16[128,128], index: 11, kind: input, shape index: {}]   ;;  %s6301_s12 = inlined_call_operand.vmem [shape: bf16[128,128], index: 12, kind: input, shape index: {}]   ;;  %s6302_s13 = inlined_call_operand.vmem [shape: bf16[128,256], index: 13, kind: input, shape index: {}]   ;;  %s6303_s14 = inlined_call_operand.vmem [shape: bf16[256,128], index: 14, kind: input, shape index: {}]   ;;  %s6304_s15 = inlined_call_operand.vmem [shape: bf16[128,128], index: 15, kind: input, shape index: {}]   ;;  %s6305_s16 = inlined_call_operand.hbm [shape: f32[2,32,128], index: 16, kind: output, shape index: {}]  }
   0x1   :  { %6311 = sst [smem:[#allocation13_spill]] %s6289_s0 }
   0x2   :  { %6312 = sst [smem:[#allocation14_spill]] %s6290_s1 }
   0x3   :  { %6313 = sst [smem:[#allocation15_spill]] %s6305_s16 }
   0x4   :  { %21 = vsyncpa [#allocation6], 0 }
   0x5   :  { %23 = vsyncpa [#allocation6 + $0x1], 0  ;;  %s5093_s21 = smov 0   ;;  %s5095_s22 = smov 0  }
   0x6   :  { %s5097_s23 = smov 0   ;;  %s5099_s24 = smov 0  }
   0x7   :  { %s5101_s25 = smov 0   ;;  %s5103_s26 = smov 0  }
   0x8 LB: > { %6314 = sst [smem:[#allocation8_spill]] %s4978_s21  ;;  %s3936_s27 = sadd.s32 4294967295, %s4998_s26   ;;  %s4998_s26 = sphi %s5103_s26, %s29_s26   ;;  %s4994_s25 = sphi %s5101_s25, %s6328_s25   ;;  %s4990_s24 = sphi %s5099_s24, %s6327_s24   ;;  %s4986_s23 = sphi %s5097_s23, %s6326_s23   ;;  %s4982_s22 = sphi %s5095_s22, %s6330_s22   ;;  %s4978_s21 = sphi %s5093_s21, %s6329_s21  }
   0x9   : > { %6315 = sst [smem:[#allocation9_spill]] %s4986_s23  ;;  %s3937_s28 = sadd.s32 4294967294, %s4998_s26  }
   0xa   : > { %6316 = sst [smem:[#allocation10_spill]] %s4994_s25  ;;  %s41_s29 = sadd.s32 1, %s4994_s25 }
   0xb   : > { %s393_s30 = sadd.s32 1, %s4986_s23  ;;  %p43_p0 = scmp.ge.s32.totalorder %s41_s29, 2 }
   0xc   : > { %p403_p1 = scmp.ne.s32.totalorder %s4986_s23, %s4982_s22  ;;  %p404_p2 = scmp.eq.s32.totalorder %s3936_s27, 1 }
   0xd   : > { %p409_p3 = scmp.ne.s32.totalorder %s4982_s22, %s4978_s21  ;;  %s6332_s29 = smov (%p43_p0, %s41_s29), 0 }
   0xe   : > { %6317 = sst [smem:[#allocation11_spill]] %s6332_s29  ;;  %p5133_p4 = por %p404_p2, %p403_p1 }
   0xf   : > { %p410_p5 = scmp.eq.s32.totalorder %s3937_s28, 1  ;;  %s388_s17 = ssub.s32 %s4994_s25, %s6332_s29 }
  0x10   : > { %p3940_p6 = scmp.ge.s32.totalorder %s4998_s26, 1  ;;  %p391_p7 = scmp.eq.s32.totalorder %s388_s17, 0 }
  0x11   : > { %p5140_p8 = por %p410_p5, %p409_p3  ;;  %p486_p9 = scmp.lt.s32.totalorder %s4998_s26, 3 }
  0x12   : > { %s5146_s19 = scalar_select %p391_p7, %s4986_s23, %s393_s30  }
  0x13   : > { %p487_p10 = pnand %p3940_p6, %p486_p9 }
  0x14   : > { %6320 = sst [smem:[#allocation12_spill]] %s5146_s19  ;;  %p541_p11 = scmp.lt.s32.totalorder (!%p487_p10), %s4990_s24, 1  ;;  %v4651_v20 = vld [vmem:[%s6292_s3 + $0x4] ss:$8 sps:$4 sm:$0xff] (!%p487_p10)   ;;  %v4653_v21 = vld [vmem:[%s6292_s3] ss:$8 sps:$4 sm:$0xff] (!%p487_p10)   ;;  %v626_v40 = vlaneseq (!%p487_p10) }
  0x15   : > { %490 = sbr.rel (%p487_p10) target bundleno = 3544 (0xdd8), region = 84  ;;  %s6321_s28 = sld [smem:[#allocation13_spill]] (!%p487_p10)  ;;  %775 = vmatprep.subr.bf16.mxu0 (!%p487_p10), %v4651_v20  ;;  %v4654_v22 = vld [vmem:[%s6292_s3 + $0x14] ss:$8 sps:$4 sm:$0xff] (!%p487_p10)   ;;  %v4656_v23 = vld [vmem:[%s6292_s3 + $0x10] ss:$8 sps:$4 sm:$0xff] (!%p487_p10)  }
  0x16   : > { %776 = vmatpush1.bf16.msra.mxu0 (!%p487_p10), %v4653_v21  ;;  %v4657_v24 = vld [vmem:[%s6292_s3 + $0x24] ss:$8 sps:$4 sm:$0xff] (!%p487_p10)   ;;  %v4659_v25 = vld [vmem:[%s6292_s3 + $0x20] ss:$8 sps:$4 sm:$0xff] (!%p487_p10)   ;;  %v4660_v26 = vld [vmem:[%s6292_s3 + $0x34] ss:$8 sps:$4 sm:$0xff] (!%p487_p10)  }
  0x17   : > { %777 = vmatprep.subr.bf16.mxu0 (!%p487_p10), %v4654_v22  ;;  %v4662_v27 = vld [vmem:[%s6292_s3 + $0x30] ss:$8 sps:$4 sm:$0xff] (!%p487_p10)   ;;  %v5000_v28 = vmov (!%p487_p10), 0.0   ;;  %v4663_v29 = vld [vmem:[%s6292_s3 + $0x44] ss:$8 sps:$4 sm:$0xff] (!%p487_p10)   ;;  %v5001_v36 = vmov (!%p487_p10), 0  }
  0x18   : > { %573 = vst [vmem:[#allocation3] sm:$0x1] (!%p487_p10), %v5000_v28  ;;  %574 = vst [vmem:[#allocation4] sm:$0x1] (!%p487_p10), %v5000_v28  ;;  %v4665_v30 = vld [vmem:[%s6292_s3 + $0x40] ss:$8 sps:$4 sm:$0xff] (!%p487_p10)   ;;  %807 = vmatprep.mubr.bf16.mxu0 (!%p487_p10), %v5001_v36 }
  0x19   : > { %v4666_v31 = vld [vmem:[%s6292_s3 + $0x54] ss:$8 sps:$4 sm:$0xff] (!%p487_p10)   ;;  %v4668_v32 = vld [vmem:[%s6292_s3 + $0x50] ss:$8 sps:$4 sm:$0xff] (!%p487_p10)   ;;  %v4669_v33 = vld [vmem:[%s6292_s3 + $0x64] ss:$8 sps:$4 sm:$0xff] (!%p487_p10)  }
  0x1a   : > { %778 = vmatpush1.bf16.msra.mxu0 (!%p487_p10), %v4656_v23  ;;  %v4671_v34 = vld [vmem:[%s6292_s3 + $0x60] ss:$8 sps:$4 sm:$0xff] (!%p487_p10)   ;;  %v4672_v35 = vld [vmem:[%s6292_s3 + $0x74] ss:$8 sps:$4 sm:$0xff] (!%p487_p10)   ;;  %v4674_v37 = vld [vmem:[%s6292_s3 + $0x70] ss:$8 sps:$4 sm:$0xff] (!%p487_p10)  }
  0x1b   : > { %779 = vmatprep.subr.bf16.mxu0 (!%p487_p10), %v4657_v24  ;;  %v5227_v46 = vshrl.u32 (!%p487_p10), %v626_v40, 7  ;;  %s6322_s1 = sld [smem:[#allocation14_spill]] (!%p487_p10)  ;;  %vm647_vm0 = vcmask (!%p487_p10), 1040384   ;;  %vm855_vm1 = vcmask (!%p487_p10), 261120   ;;  %s5002_s19 = smov (!%p487_p10), 96   ;;  %vm556_vm2 = vcmask (!%p487_p10), 523264  }
  0x1c   : > { %s542_s20 = scalar_select %p541_p11, %s4990_s24, 1  ;;  %557 = vst.msk [vmem:[#allocation2] sm:$0xff] %vm556_vm2, %v5000_v28  ;;  %558 = vst.msk [vmem:[#allocation2 + $0x8] sm:$0xff] %vm556_vm2, %v5000_v28  ;;  %vm2040_vm3 = vcmask 1041408   ;;  %vm2061_vm4 = vcmask 1043456  }
  0x1d   : > { %v628_v51 = vsub.s32 0, %v5227_v46  ;;  %v636_v54 = vsub.s32 1, %v5227_v46  ;;  %s5004_s23 = smov 32   ;;  %559 = vst.msk [vmem:[#allocation2 + $0x10] sm:$0xff] %vm556_vm2, %v5000_v28  ;;  %560 = vst.msk [vmem:[#allocation2 + $0x18] sm:$0xff] %vm556_vm2, %v5000_v28  ;;  %s537_s17 = sand.u32 1, %s4982_s22  }
  0x1e   : > { %s4129_s27 = sshll.u32 %s542_s20, 5  ;;  %780 = vmatpush1.bf16.msra.mxu0 %v4659_v25  ;;  %561 = vst.msk [vmem:[#allocation2 + $0x20] sm:$0xff] %vm556_vm2, %v5000_v28  ;;  %562 = vst.msk [vmem:[#allocation2 + $0x28] sm:$0xff] %vm556_vm2, %v5000_v28  ;;  %s3941_s20 = sshll.u32 %s537_s17, 5 }
  0x1f   : > { %s5153_s29 = scalar_lea.vmem %s6321_s28, %s4129_s27  ;;  %781 = vmatprep.subr.bf16.mxu0 %v4660_v26  ;;  %s5003_s28 = smov 64   ;;  %563 = vst.msk [vmem:[#allocation2 + $0x30] sm:$0xff] %vm556_vm2, %v5000_v28  ;;  %564 = vst.msk [vmem:[#allocation2 + $0x38] sm:$0xff] %vm556_vm2, %v5000_v28 }
  0x20   : > { %v577_v0 = vld [vmem:[%s5153_s29] sm:$0xff]  ;;  %v579_v1 = vld [vmem:[%s5153_s29 + $0x10] sm:$0xff]  ;;  %v578_v2 = vld [vmem:[%s5153_s29 + $0x8] sm:$0xff]  ;;  %565 = vst.msk [vmem:[#allocation2 + $0x40] sm:$0xff] %vm556_vm2, %v5000_v28  ;;  %s539_s27 = scalar_lea.vmem [#allocation5], %s3941_s20  ;;  %s6243_s30 = scalar_lea.sflag [#allocation6], %s537_s17 }
  0x21   : > { %581 = vadd.xlane.f32.xlu0 %v577_v0  ;;  %585 = vadd.xlane.f32.xlu1 %v579_v1  ;;  %v580_v3 = vld [vmem:[%s5153_s29 + $0x18] sm:$0xff]  ;;  %v5233_v52 = vld [vmem:[%s6322_s1] sm:$0xff]  ;;  %566 = vst.msk [vmem:[#allocation2 + $0x48] sm:$0xff] %vm556_vm2, %v5000_v28  ;;  %567 = vst.msk [vmem:[#allocation2 + $0x50] sm:$0xff] %vm556_vm2, %v5000_v28 }
  0x22   : > { %782 = vmatpush1.bf16.msra.mxu0 %v4662_v27  ;;  %v629_v55 = vrot.slane %v5233_v52, %v628_v51  ;;  %v637_v57 = vrot.slane %v5233_v52, %v636_v54  ;;  %568 = vst.msk [vmem:[#allocation2 + $0x58] sm:$0xff] %vm556_vm2, %v5000_v28  ;;  %569 = vst.msk [vmem:[#allocation2 + $0x60] sm:$0xff] %vm556_vm2, %v5000_v28 }
  0x23   : > { %783 = vmatprep.subr.bf16.mxu0 %v4663_v29  ;;  %570 = vst.msk [vmem:[#allocation2 + $0x68] sm:$0xff] %vm556_vm2, %v5000_v28  ;;  %571 = vst.msk [vmem:[#allocation2 + $0x70] sm:$0xff] %vm556_vm2, %v5000_v28 }
  0x24   : > { %572 = vst.msk [vmem:[#allocation2 + $0x78] sm:$0xff] %vm556_vm2, %v5000_v28  ;;  %v5440_v28 = vld [vmem:[%s6293_s4 + $0x40] sm:$0xff]  }
  0x25   : > { %583 = vadd.xlane.f32.xlu0 %v578_v2  ;;  %587 = vadd.xlane.f32.xlu1 %v580_v3 }
  0x26   : > { %784 = vmatpush1.bf16.msra.mxu0 %v4665_v30 }
  0x27   : > { %785 = vmatprep.subr.bf16.mxu0 %v4666_v31 }
  0x2a   : > { %786 = vmatpush1.bf16.msra.mxu0 %v4668_v32 }
  0x2b   : > { %787 = vmatprep.subr.bf16.mxu0 %v4669_v33 }
  0x2e   : > { %788 = vmatpush1.bf16.msra.mxu0 %v4671_v34 }
  0x2f   : > { %789 = vmatprep.subr.bf16.mxu0 %v4672_v35  ;;  %v4675_v35 = vld [vmem:[%s6293_s4] sm:$0xff]  }
  0x30   : > { %4295 = vmatprep.subr.bf16.mxu1 %v4675_v35 }
  0x31   : > { %4296 = vmatpush3.bf16.msra.mxu1 %v4675_v35 }
  0x32   : > { %790 = vmatpush1.bf16.msra.mxu0 %v4674_v37  ;;  %v4676_v37 = vld [vmem:[%s6293_s4 + $0x8] sm:$0xff]  }
  0x33   : > { %4297 = vmatprep.subr.bf16.mxu1 %v4676_v37 }
  0x35   : > { %4298 = vmatpush3.bf16.msra.mxu1 %v4676_v37 }
  0xae   : > { %v582_v4 = vpop.xlane.xlu0 %581  ;;  %v586_v5 = vpop.xlane.xlu1 %585 }
  0xaf   : > { %v590_v6 = vmul.f32 0.0078125, %v582_v4  ;;  %v592_v7 = vmul.f32 0.0078125, %v586_v5 }
  0xb1   : > { %v5159_v8 = vsub.f32 %v579_v1, %v592_v7  ;;  %v5161_v9 = vsub.f32 %v577_v0, %v590_v6  ;;  %v642_v1 = vld [vmem:[#allocation3] sm:$0x1] }
  0xb2   : > { %v584_v10 = vpop.xlane.xlu0 %583  ;;  %v588_v11 = vpop.xlane.xlu1 %587 }
  0xb3   : > { %v591_v12 = vmul.f32 0.0078125, %v584_v10  ;;  %v598_v13 = vmul.f32 %v5161_v9, %v5161_v9  ;;  %v593_v14 = vmul.f32 0.0078125, %v588_v11  ;;  %v600_v16 = vmul.f32 %v5159_v8, %v5159_v8 }
  0xb5   : > { %602 = vadd.xlane.f32.xlu0 %v598_v13  ;;  %v5165_v15 = vsub.f32 %v580_v3, %v593_v14  ;;  %v5169_v17 = vsub.f32 %v578_v2, %v591_v12  ;;  %v667_v2 = vsub.s32 4, %v5227_v46 }
  0xb7   : > { %v599_v18 = vmul.f32 %v5169_v17, %v5169_v17  ;;  %v601_v19 = vmul.f32 %v5165_v15, %v5165_v15 }
  0xb9   : > { %606 = vadd.xlane.f32.xlu0 %v600_v16  ;;  %604 = vadd.xlane.f32.xlu1 %v599_v18 }
  0xbd   : > { %608 = vadd.xlane.f32.xlu1 %v601_v19 }
 0x142   : > { %v603_v38 = vpop.xlane.xlu0 %602 }
 0x143   : > { %v610_v39 = vmul.f32 0.0078125, %v603_v38 }
 0x145   : > { %v614_v41 = vadd.f32 1e-05, %v610_v39 }
 0x146   : > { %v605_v42 = vpop.xlane.xlu1 %604  ;;  %v607_v43 = vpop.xlane.xlu0 %606 }
 0x147   : > { %4785 = vrsqrt.f32 %v614_v41  ;;  %v611_v44 = vmul.f32 0.0078125, %v605_v42  ;;  %v612_v45 = vmul.f32 0.0078125, %v607_v43 }
 0x149   : > { %v615_v47 = vadd.f32 1e-05, %v611_v44  ;;  %v616_v48 = vadd.f32 1e-05, %v612_v45 }
 0x14a   : > { %v609_v49 = vpop.xlane.xlu1 %608 }
 0x14b   : > { %4787 = vrsqrt.f32 %v615_v47  ;;  %v613_v50 = vmul.f32 0.0078125, %v609_v49 }
 0x14c   : > { %4789 = vrsqrt.f32 %v616_v48 }
 0x14d   : > { %v617_v53 = vadd.f32 1e-05, %v613_v50 }
 0x14f   : > { %4791 = vrsqrt.f32 %v617_v53 }
 0x151   : > { %v4786_v56 = vpop.eup %4785 }
 0x152   : > { %v622_v58 = vmul.f32 %v4786_v56, %v5161_v9 }
 0x154   : > { %v630_v59 = vmul.f32 %v629_v55, %v622_v58 }
 0x155   : > { %v4788_v60 = vpop.eup %4787 }
 0x156   : > { %v4790_v61 = vpop.eup %4789  ;;  %v5243_v62 = vadd.f32 %v637_v57, %v630_v59  ;;  %v623_v63 = vmul.f32 %v4788_v60, %v5169_v17 }
 0x157   : > { %v624_v0 = vmul.f32 %v4790_v61, %v5159_v8  ;;  %v668_v8 = vrot.slane %v5233_v52, %v667_v2  ;;  %v4679_v2 = vld [vmem:[%s6294_s5 + $0x10] sm:$0xff]  }
 0x158   : > { %v631_v3 = vmul.f32 %v629_v55, %v623_v63  ;;  %v648_v4 = vrot.slane %v5243_v62, 7  ;;  %v4677_v63 = vld [vmem:[%s6294_s5] sm:$0xff]  }
 0x159   : > { %v4792_v5 = vpop.eup %4791  ;;  %v632_v6 = vmul.f32 %v629_v55, %v624_v0  ;;  %4303 = vmatprep.subr.bf16.mxu1 %v4677_v63 }
 0x15a   : > { %v5249_v7 = vadd.f32 %v637_v57, %v631_v3  ;;  %v625_v9 = vmul.f32 %v4792_v5, %v5165_v15  ;;  %v659_v10 = vsel %vm647_vm0, %v642_v1, %v648_v4  ;;  %v4678_v1 = vld [vmem:[%s6294_s5 + $0x8] sm:$0xff]   ;;  %v4680_v3 = vld [vmem:[%s6294_s5 + $0x18] sm:$0xff]  }
 0x15b   : > { %v5253_v11 = vadd.f32 %v637_v57, %v632_v6  ;;  %v5256_v12 = vsub.f32 %v659_v10, %v5243_v62  ;;  %v4682_v5 = vld [vmem:[%s6294_s5 + $0x28] sm:$0xff]   ;;  %v4683_v6 = vld [vmem:[%s6294_s5 + $0x30] sm:$0xff]  }
 0x15c   : > { %v633_v13 = vmul.f32 %v629_v55, %v625_v9  ;;  %v649_v14 = vrot.slane %v5249_v7, 7  ;;  %v4684_v9 = vld [vmem:[%s6294_s5 + $0x38] sm:$0xff]   ;;  %v4685_v10 = vld [vmem:[%s6293_s4 + $0x10] sm:$0xff]  }
 0x15d   : > { %v651_v16 = vrot.slane %v5253_v11, 7  ;;  %v669_v19 = vmul.f32 %v668_v8, %v5256_v12 }
 0x15e   : > { %v5261_v17 = vadd.f32 %v637_v57, %v633_v13  ;;  %v650_v18 = vsel %vm647_vm0, %v648_v4, %v649_v14  ;;  %v4681_v4 = vld [vmem:[%s6294_s5 + $0x20] sm:$0xff]  }
 0x15f   : > { %v5265_v15 = vsub.f32 %v650_v18, %v5249_v7  ;;  %v652_v20 = vsel %vm647_vm0, %v649_v14, %v651_v16  ;;  %v673_v24 = vadd.f32 %v669_v19, %v5243_v62 }
 0x160   : > { %660 = vst [vmem:[#allocation3 - $0x7] sm:$0x80] %v5261_v17  ;;  %v653_v21 = vrot.slane %v5261_v17, 7  ;;  %v5276_v26 = vsub.f32 %v652_v20, %v5253_v11 }
 0x161   : > { %v670_v22 = vmul.f32 %v668_v8, %v5265_v15 }
 0x162   : > { %v654_v23 = vsel %vm647_vm0, %v651_v16, %v653_v21  ;;  %v671_v31 = vmul.f32 %v668_v8, %v5276_v26 }
 0x163   : > { %v674_v25 = vadd.f32 %v670_v22, %v5249_v7  ;;  %v5279_v27 = vsub.f32 %v654_v23, %v5261_v17 }
 0x164   : > { %v675_v33 = vadd.f32 %v671_v31, %v5253_v11 }
 0x165   : > { %v677_v29 = vpack.c.bf16 %v674_v25, %v673_v24  ;;  %v672_v30 = vmul.f32 %v668_v8, %v5279_v27  ;;  %v3964_v8 = vld [vmem:[%s6291_s2] ss:$0 sm:$0xff] }
 0x167   : > { %808 = vmatmul.mubr.bf16.vlgmr.msra.gmra.mrb[0].mxu0 %v677_v29  ;;  %v676_v32 = vadd.f32 %v672_v30, %v5261_v17 }
 0x168   : > { %817 = vmatprep.mubr.bf16.mxu0 %v5001_v36 }
 0x169   : > { %v678_v34 = vpack.c.bf16 %v676_v32, %v675_v33 }
 0x16f   : > { %818 = vmatmul.mubr.bf16.gmra.mrb[4].mxu0 %v678_v34 }
 0x23a   : > { %v809_v38 = vpop.f32.mrb[0].mxu0 }
 0x23b   : > { %4793 = vtanh.f32 %v809_v38  ;;  %v811_v39 = vpop.f32.mrb[1].mxu0  ;;  %v4686_v38 = vld [vmem:[%s6293_s4 + $0x18] sm:$0xff]  }
 0x23c   : > { %4795 = vtanh.f32 %v811_v39  ;;  %v813_v41 = vpop.f32.mrb[2].mxu0 }
 0x23d   : > { %4797 = vtanh.f32 %v813_v41  ;;  %v815_v42 = vpop.f32.mrb[3].mxu0  ;;  %v4687_v41 = vld [vmem:[%s6293_s4 + $0x20] sm:$0xff]  }
 0x23e   : > { %4799 = vtanh.f32 %v815_v42 }
 0x242   : > { %v819_v43 = vpop.f32.mrb[4].mxu0 }
 0x243   : > { %4801 = vtanh.f32 %v819_v43  ;;  %v821_v44 = vpop.f32.mrb[5].mxu0  ;;  %v4688_v43 = vld [vmem:[%s6293_s4 + $0x28] sm:$0xff]  }
 0x244   : > { %4803 = vtanh.f32 %v821_v44  ;;  %v823_v45 = vpop.f32.mrb[6].mxu0 }
 0x245   : > { %v4794_v47 = vpop.eup %4793  ;;  %4805 = vtanh.f32 %v823_v45  ;;  %v825_v48 = vpop.f32.mrb[7].mxu0 }
 0x246   : > { %v5292_v49 = vpop.eup %4795  ;;  %4807 = vtanh.f32 %v825_v48 }
 0x247   : > { %v4798_v50 = vpop.eup %4797 }
 0x248   : > { %v5294_v53 = vpop.eup %4799  ;;  %v836_v55 = vpack.c.bf16 %v4798_v50, %v4794_v47  ;;  %v4689_v47 = vld [vmem:[%s6299_s10] sm:$0xff]  }
 0x249   : > { %v1770_v56 = vpack.c.bf16 %v5294_v53, %v5292_v49  ;;  %v4690_v50 = vld [vmem:[%s6295_s6] sm:$0xff]   ;;  %v4714_v49 = vld [vmem:[%s6300_s11 + $0x8] sm:$0xff]   ;;  %v4709_v53 = vld [vmem:[%s6298_s9 + $0x30] sm:$0xff]  }
 0x24a   : > { %1152 = vrot.lane.b32.xlu0 %v836_v55, %s5002_s19  ;;  %4299 = vmatprep.mubr.msk.bf16.mxu1 %vm855_vm1, %v836_v55 }
 0x24b   : > { %4323 = vmatprep.subr.bf16.mxu0 %v4690_v50 }
 0x24c   : > { %4324 = vmatpush3.bf16.msra.mxu0 %v4690_v50  ;;  %v4700_v50 = vld [vmem:[%s6298_s9 + $0x8] sm:$0xff]  }
 0x24d   : > { %v4802_v57 = vpop.eup %4801 }
 0x24e   : > { %v5299_v58 = vpop.eup %4803  ;;  %1360 = vrot.lane.b32.xlu0 %v836_v55, %s5003_s28 }
 0x24f   : > { %v4806_v59 = vpop.eup %4805 }
 0x250   : > { %v5302_v60 = vpop.eup %4807  ;;  %v837_v61 = vpack.c.bf16 %v4806_v59, %v4802_v57  ;;  %v4692_v57 = vld [vmem:[%s6295_s6 + $0x8] sm:$0xff]   ;;  %v4693_v59 = vld [vmem:[%s6299_s10 + $0x10] sm:$0xff]  }
 0x251   : > { %v1771_v0 = vpack.c.bf16 %v5302_v60, %v5299_v58  ;;  %4325 = vmatprep.subr.bf16.mxu0 %v4692_v57  ;;  %v4716_v58 = vld [vmem:[%s6300_s11 + $0x18] sm:$0xff]   ;;  %v4711_v60 = vld [vmem:[%s6293_s4 + $0x30] sm:$0xff]  }
 0x252   : > { %1154 = vrot.lane.b32.xlu1 %v837_v61, %s5002_s19  ;;  %4300 = vmatmul.mubr.msk.bf16.vlgmr.msra.gmra.mrb[0].mxu1 %vm855_vm1, %v837_v61  ;;  %s6323_s19 = sld [smem:[#allocation15_spill]] }
 0x253   : > { %4304 = vmatpush3.bf16.msra.mxu1 %v4677_v63  ;;  %4326 = vmatpush3.bf16.msra.mxu0 %v4692_v57  ;;  %v4695_v63 = vld [vmem:[%s6299_s10 + $0x18] sm:$0xff]  }
 0x254   : > { %4305 = vmatprep.subr.bf16.mxu1 %v4678_v1 }
 0x256   : > { %1568 = vrot.lane.b32.xlu1 %v836_v55, %s5004_s23  ;;  %v4691_v55 = vld [vmem:[%s6299_s10 + $0x8] sm:$0xff]  }
 0x257   : > { %4306 = vmatpush3.bf16.msra.mxu1 %v4678_v1  ;;  %v4696_v1 = vld [vmem:[%s6295_s6 + $0x18] sm:$0xff]  }
 0x258   : > { %4307 = vmatprep.subr.bf16.mxu1 %v4679_v2 }
 0x25a   : > { %1570 = vrot.lane.b32.xlu1 %v837_v61, %s5004_s23  ;;  %s3857_s23 = sshll.u32 %s539_s27, 4  ;;  %s6233_s23 = int_to_ptr.vmem [resolvable:$true] %s3857_s23 }
 0x25b   : > { %4308 = vmatpush3.bf16.msra.mxu1 %v4679_v2  ;;  %v4697_v2 = vld [vmem:[%s6299_s10 + $0x20] sm:$0xff]  }
 0x25c   : > { %4309 = vmatprep.subr.bf16.mxu1 %v4680_v3 }
 0x25e   : > { %1362 = vrot.lane.b32.xlu1 %v837_v61, %s5003_s28  ;;  %v4694_v61 = vld [vmem:[%s6295_s6 + $0x10] sm:$0xff]  }
 0x25f   : > { %4310 = vmatpush3.bf16.msra.mxu1 %v4680_v3  ;;  %4327 = vmatprep.subr.bf16.mxu0 %v4694_v61  ;;  %v5393_v3 = vld [vmem:[%s6298_s9] sm:$0xff]  }
 0x260   : > { %4311 = vmatprep.subr.bf16.mxu1 %v4681_v4  ;;  %4328 = vmatpush3.bf16.msra.mxu0 %v4694_v61 }
 0x261   : > { %4329 = vmatprep.subr.bf16.mxu0 %v4696_v1 }
 0x263   : > { %4312 = vmatpush3.bf16.msra.mxu1 %v4681_v4  ;;  %v4699_v4 = vld [vmem:[%s6299_s10 + $0x28] sm:$0xff]  }
 0x264   : > { %4313 = vmatprep.subr.bf16.mxu1 %v4682_v5  ;;  %4330 = vmatpush3.bf16.msra.mxu0 %v4696_v1 }
 0x265   : > { %4343 = vmatprep.subr.bf16.mxu0 %v5393_v3 }
 0x267   : > { %4314 = vmatpush3.bf16.msra.mxu1 %v4682_v5  ;;  %v4701_v5 = vld [vmem:[%s6299_s10 + $0x30] sm:$0xff]  }
 0x268   : > { %4315 = vmatprep.subr.bf16.mxu1 %v4683_v6 }
 0x26b   : > { %4316 = vmatpush3.bf16.msra.mxu1 %v4683_v6  ;;  %v4703_v6 = vld [vmem:[%s6299_s10 + $0x38] sm:$0xff]  }
 0x26c   : > { %4317 = vmatprep.subr.bf16.mxu1 %v4684_v9 }
 0x26f   : > { %4318 = vmatpush3.bf16.msra.mxu1 %v4684_v9 }
 0x270   : > { %4335 = vmatprep.subr.bf16.mxu1 %v4685_v10 }
 0x2bc   : > { %v1153_v39 = vpop.permute.xlu0 %1152 }
 0x2c0   : > { %v1361_v44 = vpop.permute.xlu0 %1360 }
 0x2c4   : > { %v1155_v35 = vpop.permute.xlu1 %1154 }
 0x2c8   : > { %v5353_v42 = vpop.permute.xlu1 %1568 }
 0x2cc   : > { %v5359_v45 = vpop.permute.xlu1 %1570 }
 0x2d0   : > { %v1363_v48 = vpop.permute.xlu1 %1362 }
 0x325   : > { %v4301_v13 = vpop.f32.mrb[0].mxu1 }
 0x326   : > { %v917_v14 = vadd.f32 %v4301_v13, %v3964_v8  ;;  %v896_v16 = vpop.f32.mrb[1].mxu1 }
 0x327   : > { %v915_v18 = vadd.f32 %v3964_v8, %v896_v16  ;;  %v4302_v19 = vpop.f32.mrb[2].mxu1 }
 0x328   : > { %v921_v20 = vmul.f32 %v917_v14, %v5276_v26  ;;  %v918_v21 = vadd.f32 %v4302_v19, %v3964_v8  ;;  %v899_v22 = vpop.f32.mrb[3].mxu1  ;;  %v3987_v14 = vld [vmem:[%s6291_s2 + $0x1] ss:$0 sm:$0xff] }
 0x329   : > { %v919_v23 = vmul.f32 %v915_v18, %v5256_v12  ;;  %v916_v24 = vadd.f32 %v3964_v8, %v899_v22 }
 0x32a   : > { %v922_v25 = vmul.f32 %v918_v21, %v5279_v27  ;;  %v925_v30 = vadd.f32 %v921_v20, %v5253_v11 }
 0x32b   : > { %v920_v29 = vmul.f32 %v916_v24, %v5265_v15  ;;  %v923_v32 = vadd.f32 %v919_v23, %v5243_v62 }
 0x32c   : > { %v926_v31 = vadd.f32 %v922_v25, %v5261_v17 }
 0x32d   : > { %v924_v33 = vadd.f32 %v920_v29, %v5249_v7 }
 0x32e   : > { %v928_v34 = vpack.c.bf16 %v926_v31, %v925_v30 }
 0x32f   : > { %v927_v37 = vpack.c.bf16 %v924_v33, %v923_v32 }
 0x331   : > { %4319 = vmatprep.mubr.bf16.mxu1 %v927_v37 }
 0x332   : > { %4320 = vmatmul.mubr.bf16.vlgmr.msra.gmra.mrb[4].mxu1 %v928_v34 }
 0x333   : > { %4336 = vmatpush3.bf16.msra.mxu1 %v4685_v10  ;;  %4339 = vmatprep.mubr.msk.bf16.mxu1 %vm855_vm1, %v1153_v39 }
 0x334   : > { %4337 = vmatprep.subr.bf16.mxu1 %v4686_v38 }
 0x337   : > { %4338 = vmatpush3.bf16.msra.mxu1 %v4686_v38  ;;  %v4004_v38 = vld [vmem:[%s6291_s2 + $0x2] ss:$0 sm:$0xff] }
 0x338   : > { %4363 = vmatprep.subr.bf16.mxu1 %v4687_v41 }
 0x33a   : > { %4340 = vmatmul.mubr.msk.bf16.vlgmr.msra.gmra.mrb[8].mxu1 %vm855_vm1, %v1155_v35 }
 0x33b   : > { %4364 = vmatpush3.bf16.msra.mxu1 %v4687_v41  ;;  %4367 = vmatprep.mubr.msk.bf16.mxu1 %vm855_vm1, %v1361_v44 }
 0x33c   : > { %4365 = vmatprep.subr.bf16.mxu1 %v4688_v43 }
 0x33f   : > { %4366 = vmatpush3.bf16.msra.mxu1 %v4688_v43 }
 0x340   : > { %4371 = vmatprep.subr.bf16.mxu1 %v4689_v47 }
 0x342   : > { %4368 = vmatmul.mubr.msk.bf16.vlgmr.msra.gmra.mrb[12].mxu1 %vm855_vm1, %v1363_v48 }
 0x343   : > { %4372 = vmatpush3.bf16.msra.mxu1 %v4689_v47 }
 0x344   : > { %4373 = vmatprep.subr.bf16.mxu1 %v4691_v55 }
 0x347   : > { %4374 = vmatpush3.bf16.msra.mxu1 %v4691_v55 }
 0x348   : > { %4375 = vmatprep.subr.bf16.mxu1 %v4693_v59 }
 0x34b   : > { %4376 = vmatpush3.bf16.msra.mxu1 %v4693_v59 }
 0x34c   : > { %4377 = vmatprep.subr.bf16.mxu1 %v4695_v63 }
 0x34f   : > { %4378 = vmatpush3.bf16.msra.mxu1 %v4695_v63 }
 0x350   : > { %4379 = vmatprep.subr.bf16.mxu1 %v4697_v2 }
 0x353   : > { %4380 = vmatpush3.bf16.msra.mxu1 %v4697_v2 }
 0x354   : > { %4381 = vmatprep.subr.bf16.mxu1 %v4699_v4 }
 0x357   : > { %4382 = vmatpush3.bf16.msra.mxu1 %v4699_v4 }
 0x358   : > { %4383 = vmatprep.subr.bf16.mxu1 %v4701_v5 }
 0x35b   : > { %4384 = vmatpush3.bf16.msra.mxu1 %v4701_v5 }
 0x35c   : > { %4385 = vmatprep.subr.bf16.mxu1 %v4703_v6 }
 0x35f   : > { %4386 = vmatpush3.bf16.msra.mxu1 %v4703_v6 }
 0x360   : > { %4419 = vmatprep.subr.bf16.mxu1 %v5440_v28 }
 0x405   : > { %v4321_v9 = vpop.f32.mrb[4].mxu1 }
 0x406   : > { %4809 = vtanh.f32 %v4321_v9  ;;  %v1027_v10 = vpop.f32.mrb[5].mxu1 }
 0x407   : > { %4811 = vtanh.f32 %v1027_v10  ;;  %v4322_v8 = vpop.f32.mrb[6].mxu1  ;;  %v4702_v10 = vld [vmem:[%s6298_s9 + $0x10] sm:$0xff]  }
 0x408   : > { %4813 = vtanh.f32 %v4322_v8  ;;  %v1030_v13 = vpop.f32.mrb[7].mxu1 }
 0x409   : > { %4815 = vtanh.f32 %v1030_v13 }
 0x40d   : > { %v4341_v16 = vpop.f32.mrb[8].mxu1 }
 0x40e   : > { %v1229_v18 = vadd.f32 %v4341_v16, %v3987_v14  ;;  %v1208_v19 = vpop.f32.mrb[9].mxu1 }
 0x40f   : > { %v1227_v20 = vadd.f32 %v3987_v14, %v1208_v19  ;;  %v4342_v21 = vpop.f32.mrb[10].mxu1  ;;  %v4704_v19 = vld [vmem:[%s6298_s9 + $0x18] sm:$0xff]  }
 0x410   : > { %v4810_v22 = vpop.eup %4809  ;;  %v1233_v23 = vmul.f32 %v1229_v18, %v5276_v26  ;;  %v1230_v24 = vadd.f32 %v4342_v21, %v3987_v14  ;;  %v1211_v25 = vpop.f32.mrb[11].mxu1 }
 0x411   : > { %v4812_v29 = vpop.eup %4811  ;;  %v1231_v30 = vmul.f32 %v1227_v20, %v5256_v12  ;;  %v1228_v31 = vadd.f32 %v3987_v14, %v1211_v25  ;;  %v4708_v25 = vld [vmem:[%s6298_s9 + $0x28] sm:$0xff]  }
 0x412   : > { %v4814_v32 = vpop.eup %4813  ;;  %v1234_v33 = vmul.f32 %v1230_v24, %v5279_v27  ;;  %v5454_v39 = vadd.f32 %v1233_v23, %v5253_v11  ;;  %v4706_v23 = vld [vmem:[%s6298_s9 + $0x20] sm:$0xff]  }
 0x413   : > { %v4816_v34 = vpop.eup %4815  ;;  %v1047_v35 = vpack.c.bf16 %v4814_v32, %v4810_v22  ;;  %v1232_v37 = vmul.f32 %v1228_v31, %v5265_v15  ;;  %v1235_v44 = vadd.f32 %v1231_v30, %v5243_v62  ;;  %v4707_v22 = vld [vmem:[%s6293_s4 + $0x48] sm:$0xff]   ;;  %v4713_v24 = vld [vmem:[%s6300_s11] sm:$0xff]  }
 0x414   : > { %v5457_v41 = vadd.f32 %v1234_v33, %v5261_v17  ;;  %v1046_v43 = vpack.c.bf16 %v4816_v34, %v4812_v29  ;;  %v4717_v29 = vld [vmem:[%s6300_s11 + $0x20] sm:$0xff]   ;;  %v4718_v30 = vld [vmem:[%s6300_s11 + $0x28] sm:$0xff]   ;;  %v4723_v33 = vld [vmem:[%s6297_s8 + $0x10] sm:$0xff]  }
 0x415   : > { %v1236_v47 = vadd.f32 %v1232_v37, %v5249_v7  ;;  %v4369_v48 = vpop.f32.mrb[12].mxu1  ;;  %v4721_v31 = vld [vmem:[%s6297_s8] sm:$0xff]   ;;  %v4722_v32 = vld [vmem:[%s6297_s8 + $0x8] sm:$0xff]   ;;  %v4724_v34 = vld [vmem:[%s6297_s8 + $0x18] sm:$0xff]  }
 0x416   : > { %v1240_v55 = vpack.c.bf16 %v5457_v41, %v5454_v39  ;;  %v1437_v57 = vadd.f32 %v4369_v48, %v4004_v38  ;;  %4331 = vmatprep.mubr.msk.bf16.mxu0 %vm556_vm2, %v1046_v43  ;;  %v1416_v59 = vpop.f32.mrb[13].mxu1  ;;  %v4726_v37 = vld [vmem:[%s6297_s8 + $0x28] sm:$0xff]   ;;  %v4728_v39 = vld [vmem:[%s6297_s8 + $0x38] sm:$0xff]   ;;  %v1138_v41 = vsub.s32 5, %v5227_v46 }
 0x417   : > { %v1435_v61 = vadd.f32 %v4004_v38, %v1416_v59  ;;  %4332 = vmatmul.mubr.msk.bf16.vlgmr.msra.gmra.mrb[8].mxu0 %vm556_vm2, %v1047_v35  ;;  %v4370_v63 = vpop.f32.mrb[14].mxu1  ;;  %v1239_v1 = vpack.c.bf16 %v1236_v47, %v1235_v44  ;;  %v4725_v35 = vld [vmem:[%s6297_s8 + $0x20] sm:$0xff]  }
 0x418   : > { %v1441_v2 = vmul.f32 %v1437_v57, %v5276_v26  ;;  %4344 = vmatpush3.bf16.msra.mxu0 %v5393_v3  ;;  %v1438_v4 = vadd.f32 %v4370_v63, %v4004_v38  ;;  %v1419_v5 = vpop.f32.mrb[15].mxu1  ;;  %v1139_v43 = vrot.slane %v5233_v52, %v1138_v41 }
 0x419   : > { %v1439_v6 = vmul.f32 %v1435_v61, %v5256_v12  ;;  %v1436_v9 = vadd.f32 %v4004_v38, %v1419_v5  ;;  %4359 = vmatprep.mubr.bf16.mxu0 %v1239_v1  ;;  %4345 = vmatprep.subr.bf16.mxu0 %v4700_v50  ;;  %v4727_v38 = vld [vmem:[%s6297_s8 + $0x30] sm:$0xff]  }
 0x41a   : > { %v1442_v8 = vmul.f32 %v1438_v4, %v5279_v27  ;;  %v1445_v14 = vadd.f32 %v1441_v2, %v5253_v11 }
 0x41b   : > { %v1440_v13 = vmul.f32 %v1436_v9, %v5265_v15  ;;  %v1443_v3 = vadd.f32 %v1439_v6, %v5243_v62 }
 0x41c   : > { %v1446_v16 = vadd.f32 %v1442_v8, %v5261_v17  ;;  %4346 = vmatpush3.bf16.msra.mxu0 %v4700_v50 }
 0x41d   : > { %v1444_v18 = vadd.f32 %v1440_v13, %v5249_v7  ;;  %4347 = vmatprep.subr.bf16.mxu0 %v4702_v10 }
 0x41e   : > { %v1448_v20 = vpack.c.bf16 %v1446_v16, %v1445_v14 }
 0x41f   : > { %v1447_v21 = vpack.c.bf16 %v1444_v18, %v1443_v3 }
 0x420   : > { %4348 = vmatpush3.bf16.msra.mxu0 %v4702_v10 }
 0x421   : > { %4387 = vmatprep.mubr.bf16.mxu1 %v1447_v21  ;;  %4349 = vmatprep.subr.bf16.mxu0 %v4704_v19 }
 0x422   : > { %4388 = vmatmul.mubr.bf16.vlgmr.msra.gmra.mrb[16].mxu1 %v1448_v20 }
 0x423   : > { %4420 = vmatpush3.bf16.msra.mxu1 %v5440_v28  ;;  %4423 = vmatprep.mubr.msk.bf16.mxu1 %vm855_vm1, %v1770_v56  ;;  %v4715_v56 = vld [vmem:[%s6300_s11 + $0x10] sm:$0xff]   ;;  %v4710_v28 = vld [vmem:[%s6298_s9 + $0x38] sm:$0xff]  }
 0x424   : > { %4350 = vmatpush3.bf16.msra.mxu0 %v4704_v19  ;;  %4421 = vmatprep.subr.bf16.mxu1 %v4707_v22  ;;  %v4038_v19 = vld [vmem:[%s6291_s2 + $0x4] ss:$0 sm:$0xff] }
 0x425   : > { %4351 = vmatprep.subr.bf16.mxu0 %v4706_v23 }
 0x427   : > { %4422 = vmatpush3.bf16.msra.mxu1 %v4707_v22 }
 0x428   : > { %4352 = vmatpush3.bf16.msra.mxu0 %v4706_v23  ;;  %4427 = vmatprep.subr.bf16.mxu1 %v4713_v24 }
 0x429   : > { %4353 = vmatprep.subr.bf16.mxu0 %v4708_v25 }
 0x42a   : > { %4424 = vmatmul.mubr.msk.bf16.vlgmr.msra.gmra.mrb[20].mxu1 %vm855_vm1, %v1771_v0  ;;  %v4712_v0 = vld [vmem:[%s6293_s4 + $0x38] sm:$0xff]  }
 0x42b   : > { %4428 = vmatpush3.bf16.msra.mxu1 %v4713_v24 }
 0x42c   : > { %4354 = vmatpush3.bf16.msra.mxu0 %v4708_v25  ;;  %4429 = vmatprep.subr.bf16.mxu1 %v4714_v49 }
 0x42d   : > { %4355 = vmatprep.subr.bf16.mxu0 %v4709_v53 }
 0x42f   : > { %4430 = vmatpush3.bf16.msra.mxu1 %v4714_v49 }
 0x430   : > { %4356 = vmatpush3.bf16.msra.mxu0 %v4709_v53  ;;  %4431 = vmatprep.subr.bf16.mxu1 %v4715_v56 }
 0x431   : > { %4357 = vmatprep.subr.bf16.mxu0 %v4710_v28 }
 0x433   : > { %4432 = vmatpush3.bf16.msra.mxu1 %v4715_v56 }
 0x434   : > { %4358 = vmatpush3.bf16.msra.mxu0 %v4710_v28  ;;  %4433 = vmatprep.subr.bf16.mxu1 %v4716_v58 }
 0x435   : > { %4391 = vmatprep.subr.bf16.mxu0 %v4711_v60 }
 0x437   : > { %4360 = vmatmul.mubr.bf16.vlgmr.msra.gmra.mrb[12].mxu0 %v1240_v55  ;;  %4434 = vmatpush3.bf16.msra.mxu1 %v4716_v58 }
 0x438   : > { %4392 = vmatpush3.bf16.msra.mxu0 %v4711_v60  ;;  %4395 = vmatprep.mubr.msk.bf16.mxu0 %vm855_vm1, %v5353_v42  ;;  %v4719_v42 = vld [vmem:[%s6300_s11 + $0x30] sm:$0xff]  }
 0x439   : > { %4393 = vmatprep.subr.bf16.mxu0 %v4712_v0  ;;  %4435 = vmatprep.subr.bf16.mxu1 %v4717_v29 }
 0x43b   : > { %4436 = vmatpush3.bf16.msra.mxu1 %v4717_v29 }
 0x43c   : > { %4394 = vmatpush3.bf16.msra.mxu0 %v4712_v0  ;;  %4437 = vmatprep.subr.bf16.mxu1 %v4718_v30 }
 0x43d   : > { %4399 = vmatprep.subr.bf16.mxu0 %v4721_v31 }
 0x43f   : > { %4396 = vmatmul.mubr.msk.bf16.vlgmr.msra.gmra.mrb[16].mxu0 %vm855_vm1, %v5359_v45  ;;  %4438 = vmatpush3.bf16.msra.mxu1 %v4718_v30  ;;  %v4720_v45 = vld [vmem:[%s6300_s11 + $0x38] sm:$0xff]  }
 0x440   : > { %4439 = vmatprep.subr.bf16.mxu1 %v4719_v42  ;;  %4400 = vmatpush3.bf16.msra.mxu0 %v4721_v31 }
 0x441   : > { %4401 = vmatprep.subr.bf16.mxu0 %v4722_v32 }
 0x443   : > { %4440 = vmatpush3.bf16.msra.mxu1 %v4719_v42 }
 0x444   : > { %4441 = vmatprep.subr.bf16.mxu1 %v4720_v45  ;;  %4402 = vmatpush3.bf16.msra.mxu0 %v4722_v32 }
 0x445   : > { %4403 = vmatprep.subr.bf16.mxu0 %v4723_v33 }
 0x447   : > { %4442 = vmatpush3.bf16.msra.mxu1 %v4720_v45 }
 0x448   : > { %4404 = vmatpush3.bf16.msra.mxu0 %v4723_v33 }
 0x449   : > { %4405 = vmatprep.subr.bf16.mxu0 %v4724_v34 }
 0x44c   : > { %4406 = vmatpush3.bf16.msra.mxu0 %v4724_v34 }
 0x44d   : > { %4407 = vmatprep.subr.bf16.mxu0 %v4725_v35 }
 0x450   : > { %4408 = vmatpush3.bf16.msra.mxu0 %v4725_v35 }
 0x451   : > { %4409 = vmatprep.subr.bf16.mxu0 %v4726_v37 }
 0x454   : > { %4410 = vmatpush3.bf16.msra.mxu0 %v4726_v37 }
 0x455   : > { %4411 = vmatprep.subr.bf16.mxu0 %v4727_v38 }
 0x458   : > { %4412 = vmatpush3.bf16.msra.mxu0 %v4727_v38 }
 0x459   : > { %4413 = vmatprep.subr.bf16.mxu0 %v4728_v39 }
 0x45c   : > { %4414 = vmatpush3.bf16.msra.mxu0 %v4728_v39 }
 0x4ea   : > { %v4333_v44 = vpop.f32.mrb[8].mxu0 }
 0x4eb   : > { %v1142_v47 = vadd.f32 %v4333_v44, %v1139_v43  ;;  %v1121_v48 = vpop.f32.mrb[9].mxu0 }
 0x4ec   : > { %v1140_v50 = vadd.f32 %v1139_v43, %v1121_v48  ;;  %v4334_v55 = vpop.f32.mrb[10].mxu0 }
 0x4ed   : > { %v2008_v57 = vmul.f32 1.442695, %v1142_v47  ;;  %v1143_v59 = vadd.f32 %v4334_v55, %v1139_v43  ;;  %v1124_v61 = vpop.f32.mrb[11].mxu0 }
 0x4ee   : > { %v2004_v63 = vmul.f32 1.442695, %v1140_v50  ;;  %v1141_v1 = vadd.f32 %v1139_v43, %v1124_v61 }
 0x4ef   : > { %4817 = vpow2.f32 %v2008_v57  ;;  %v2010_v2 = vmul.f32 1.442695, %v1143_v59 }
 0x4f0   : > { %4819 = vpow2.f32 %v2004_v63  ;;  %v2006_v4 = vmul.f32 1.442695, %v1141_v1 }
 0x4f1   : > { %4821 = vpow2.f32 %v2010_v2 }
 0x4f2   : > { %4823 = vpow2.f32 %v2006_v4 }
 0x4f5   : > { %v5570_v5 = vpop.f32.mrb[16].mxu1 }
 0x4f6   : > { %v5572_v6 = vpop.f32.mrb[17].mxu1 }
 0x4f7   : > { %v5574_v52 = vpop.f32.mrb[18].mxu1 }
 0x4f8   : > { %v5578_v9 = vpack.c.bf16 %v5574_v52, %v5570_v5  ;;  %v5580_v10 = vpop.f32.mrb[19].mxu1 }
 0x4f9   : > { %v4818_v8 = vpop.eup %4817  ;;  %v5584_v13 = vpack.c.bf16 %v5580_v10, %v5572_v6 }
 0x4fa   : > { %v4820_v14 = vpop.eup %4819  ;;  %v5586_v16 = vsub.f32 0.0, %v4818_v8 }
 0x4fb   : > { %v4822_v3 = vpop.eup %4821  ;;  %v5588_v18 = vsub.f32 0.0, %v4820_v14  ;;  %4455 = vmatprep.subr.bf16.mxu1 %v5584_v13 }
 0x4fc   : > { %v4824_v20 = vpop.eup %4823  ;;  %v5594_v21 = vsub.f32 0.0, %v4822_v3  ;;  %v2023_v25 = vrot.slane %v5586_v16, 7 }
 0x4fd   : > { %v2020_v22 = vrot.slane %v5588_v18, 7  ;;  %v5597_v23 = vsub.f32 0.0, %v4824_v20  ;;  %v4425_v24 = vpop.f32.mrb[20].mxu1 }
 0x4fe   : > { %v2025_v49 = vrot.slane %v5594_v21, 7  ;;  %v1851_v53 = vadd.f32 %v4425_v24, %v4038_v19  ;;  %v1830_v56 = vpop.f32.mrb[21].mxu1 }
 0x4ff   : > { %v2031_v28 = vsel %vm647_vm0, 0.0, %v2020_v22  ;;  %v2021_v58 = vrot.slane %v5597_v23, 7  ;;  %v4426_v60 = vpop.f32.mrb[22].mxu1  ;;  %v1849_v30 = vadd.f32 %v4038_v19, %v1830_v56 }
 0x500   : > { %v2032_v0 = vadd.f32 %v2031_v28, %v5588_v18  ;;  %v2026_v29 = vsel %vm647_vm0, %v2023_v25, %v2025_v49  ;;  %v1852_v42 = vadd.f32 %v4426_v60, %v4038_v19  ;;  %v1833_v45 = vpop.f32.mrb[23].mxu1  ;;  %v1855_v38 = vmul.f32 %v1851_v53, %v5276_v26 }
 0x501   : > { %v2035_v31 = vadd.f32 %v2026_v29, %v5594_v21  ;;  %v2022_v32 = vsel %vm647_vm0, %v2020_v22, %v2021_v58  ;;  %v2024_v33 = vsel %vm647_vm0, %v2021_v58, %v2023_v25  ;;  %v1850_v43 = vadd.f32 %v4038_v19, %v1833_v45 }
 0x502   : > { %v2041_v34 = vrot.slane %v2032_v0, 6  ;;  %v2033_v35 = vadd.f32 %v2022_v32, %v5597_v23  ;;  %v2034_v37 = vadd.f32 %v2024_v33, %v5586_v16  ;;  %v1856_v41 = vmul.f32 %v1852_v42, %v5279_v27 }
 0x503   : > { %v2046_v39 = vrot.slane %v2035_v31, 6  ;;  %v1853_v50 = vmul.f32 %v1849_v30, %v5256_v12  ;;  %v1854_v59 = vmul.f32 %v1850_v43, %v5265_v15  ;;  %v1859_v2 = vadd.f32 %v1855_v38, %v5253_v11 }
 0x504   : > { %v2052_v44 = vsel %vm2040_vm3, 0.0, %v2041_v34  ;;  %v2042_v47 = vrot.slane %v2033_v35, 6  ;;  %v2044_v48 = vrot.slane %v2034_v37, 6  ;;  %v1860_v57 = vadd.f32 %v1856_v41, %v5261_v17 }
 0x505   : > { %v2053_v55 = vadd.f32 %v2052_v44, %v2032_v0  ;;  %v1857_v19 = vadd.f32 %v1853_v50, %v5243_v62  ;;  %v1858_v22 = vadd.f32 %v1854_v59, %v5249_v7  ;;  %v4021_v50 = vld [vmem:[%s6291_s2 + $0x3] ss:$0 sm:$0xff] }
 0x506   : > { %v2043_v61 = vsel %vm2040_vm3, %v2041_v34, %v2042_v47  ;;  %v2045_v63 = vsel %vm2040_vm3, %v2042_v47, %v2044_v48  ;;  %v2047_v1 = vsel %vm2040_vm3, %v2044_v48, %v2046_v39  ;;  %v1862_v20 = vpack.c.bf16 %v1860_v57, %v1859_v2 }
 0x507   : > { %v2062_v4 = vrot.slane %v2053_v55, 4  ;;  %v2054_v8 = vadd.f32 %v2043_v61, %v2033_v35  ;;  %v2055_v14 = vadd.f32 %v2045_v63, %v2034_v37  ;;  %v2056_v3 = vadd.f32 %v2047_v1, %v2035_v31 }
 0x508   : > { %v1861_v58 = vpack.c.bf16 %v1858_v22, %v1857_v19 }
 0x509   : > { %v2073_v24 = vsel %vm2061_vm4, 0.0, %v2062_v4  ;;  %v2063_v25 = vrot.slane %v2054_v8, 4  ;;  %v2065_v49 = vrot.slane %v2055_v14, 4  ;;  %v2067_v53 = vrot.slane %v2056_v3, 4 }
 0x50a   : > { %v5623_v56 = vadd.f32 %v2073_v24, %v2053_v55  ;;  %v5625_v28 = vpop.f32.mrb[12].mxu0  ;;  %4443 = vmatprep.mubr.bf16.mxu1 %v1861_v58 }
 0x50b   : > { %v2064_v60 = vsel %vm2061_vm4, %v2062_v4, %v2063_v25  ;;  %v2066_v0 = vsel %vm2061_vm4, %v2063_v25, %v2065_v49  ;;  %v2068_v29 = vsel %vm2061_vm4, %v2065_v49, %v2067_v53  ;;  %v5630_v30 = vpop.f32.mrb[13].mxu0  ;;  %4444 = vmatmul.mubr.bf16.vlgmr.msra.gmra.mrb[24].mxu1 %v1862_v20 }
 0x50c   : > { %v2086_v42 = vsub.f32 %v5623_v56, %v5588_v18  ;;  %v2075_v45 = vadd.f32 %v2064_v60, %v2054_v8  ;;  %v2076_v31 = vadd.f32 %v2066_v0, %v2055_v14  ;;  %v2077_v32 = vadd.f32 %v2068_v29, %v2056_v3  ;;  %v5634_v33 = vpop.f32.mrb[14].mxu0  ;;  %4456 = vmatpush3.bf16.msra.mxu1 %v5584_v13 }
 0x50d   : > { %v2102_v34 = vsub.f32 0.0, %v5623_v56  ;;  %v5637_v35 = vpop.f32.mrb[15].mxu0  ;;  %4457 = vmatprep.subr.bf16.mxu1 %v5578_v9 }
 0x50e   : > { %v5640_v37 = vadd.f32 %v2075_v45, %v5623_v56  ;;  %v2080_v38 = vadd.f32 %v2076_v31, %v2075_v45  ;;  %v2081_v39 = vadd.f32 %v2077_v32, %v2076_v31  ;;  %v2122_v32 = vsub.s32 7, %v5227_v46 }
 0x50f   : > { %v2106_v41 = vmul.f32 1.442695, %v2102_v34 }
 0x510   : > { %v5645_v43 = vadd.f32 %v2081_v39, %v5640_v37  ;;  %v2087_v44 = vsub.f32 %v5640_v37, %v5597_v23  ;;  %v5650_v47 = vadd.f32 %v2080_v38, %v5623_v56  ;;  %v2103_v48 = vsub.f32 0.0, %v5640_v37  ;;  %4458 = vmatpush3.bf16.msra.mxu1 %v5578_v9 }
 0x511   : > { %4825 = vpow2.f32 %v2106_v41 }
 0x512   : > { %v2118_v55 = vmul.f32 1.442695, %v5645_v43  ;;  %v2104_v57 = vsub.f32 0.0, %v5650_v47  ;;  %v2105_v59 = vsub.f32 0.0, %v5645_v43  ;;  %v2108_v61 = vmul.f32 1.442695, %v2103_v48 }
 0x513   : > { %v4397_v63 = vpop.f32.mrb[16].mxu0  ;;  %v2088_v1 = vsub.f32 %v5650_v47, %v5586_v16  ;;  %v2089_v2 = vsub.f32 %v5645_v43, %v5594_v21 }
 0x514   : > { %v2110_v4 = vmul.f32 1.442695, %v2104_v57  ;;  %v2112_v8 = vmul.f32 1.442695, %v2105_v59  ;;  %v1645_v14 = vadd.f32 %v4397_v63, %v4021_v50  ;;  %v1624_v3 = vpop.f32.mrb[17].mxu0  ;;  %4827 = vpow2.f32 %v2118_v55 }
 0x515   : > { %v1643_v19 = vadd.f32 %v4021_v50, %v1624_v3  ;;  %v4398_v20 = vpop.f32.mrb[18].mxu0 }
 0x516   : > { %4829 = vpow2.f32 %v2110_v4  ;;  %v1649_v22 = vmul.f32 %v1645_v14, %v5276_v26  ;;  %v1646_v24 = vadd.f32 %v4398_v20, %v4021_v50  ;;  %v1627_v25 = vpop.f32.mrb[19].mxu0 }
 0x517   : > { %4831 = vpow2.f32 %v2112_v8  ;;  %v1647_v49 = vmul.f32 %v1643_v19, %v5256_v12  ;;  %v1644_v53 = vadd.f32 %v4021_v50, %v1627_v25  ;;  %v2094_v25 = vmul.f32 1.442695, %v2088_v1 }
 0x518   : > { %4833 = vpow2.f32 %v2108_v61  ;;  %v1650_v58 = vmul.f32 %v1646_v24, %v5279_v27  ;;  %v1653_v0 = vadd.f32 %v1649_v22, %v5253_v11 }
 0x519   : > { %v1648_v60 = vmul.f32 %v1644_v53, %v5265_v15  ;;  %v1651_v31 = vadd.f32 %v1647_v49, %v5243_v62  ;;  %v2090_v49 = vmul.f32 1.442695, %v2086_v42  ;;  %v2096_v53 = vmul.f32 1.442695, %v2089_v2 }
 0x51a   : > { %v1654_v29 = vadd.f32 %v1650_v58, %v5261_v17  ;;  %v2092_v58 = vmul.f32 1.442695, %v2087_v44  ;;  %4835 = vpow2.f32 %v2094_v25 }
 0x51b   : > { %v4826_v45 = vpop.eup %4825  ;;  %v1652_v26 = vadd.f32 %v1648_v60, %v5249_v7  ;;  %4837 = vpow2.f32 %v2090_v49 }
 0x51c   : > { %v2114_v34 = vmul.f32 %v4826_v45, %v5630_v30  ;;  %v1656_v12 = vpack.c.bf16 %v1654_v29, %v1653_v0  ;;  %4839 = vpow2.f32 %v2096_v53 }
 0x51d   : > { %v1655_v38 = vpack.c.bf16 %v1652_v26, %v1651_v31  ;;  %4841 = vpow2.f32 %v2092_v58 }
 0x51e   : > { %v5674_v39 = vpop.eup %4827 }
 0x51f   : > { %4415 = vmatprep.mubr.bf16.mxu0 %v1655_v38  ;;  %v2123_v11 = vrot.slane %v5674_v39, %v2122_v32 }
 0x520   : > { %v4830_v27 = vpop.eup %4829  ;;  %4416 = vmatmul.mubr.bf16.vlgmr.msra.gmra.mrb[20].mxu0 %v1656_v12 }
 0x521   : > { %v4832_v17 = vpop.eup %4831  ;;  %v2116_v62 = vmul.f32 %v4830_v27, %v5625_v28  ;;  %v2124_v41 = vmul.f32 %v2123_v11, %v2114_v34 }
 0x522   : > { %v4834_v15 = vpop.eup %4833  ;;  %v2117_v7 = vmul.f32 %v4832_v17, %v5634_v33  ;;  %v4051_v17 = vld [vmem:[%s6296_s7] ss:$0 sm:$0xff] }
 0x523   : > { %v2126_v48 = vmul.f32 %v2123_v11, %v2116_v62  ;;  %v2115_v50 = vmul.f32 %v4834_v15, %v5637_v35 }
 0x524   : > { %v2127_v55 = vmul.f32 %v2123_v11, %v2117_v7  ;;  %v2232_v57 = vpack.c.bf16 %v2117_v7, %v2116_v62  ;;  %v4836_v16 = vpop.eup %4835 }
 0x525   : > { %v2125_v59 = vmul.f32 %v2123_v11, %v2115_v50  ;;  %v2231_v61 = vpack.c.bf16 %v2115_v50, %v2114_v34  ;;  %v4838_v29 = vpop.eup %4837 }
 0x526   : > { %2647 = vrot.lane.b32.xlu1 %v2232_v57, %s5003_s28  ;;  %v2245_v4 = vsel %vm556_vm2, %v2232_v57, 0  ;;  %v4840_v21 = vpop.eup %4839 }
 0x527   : > { %2645 = vrot.lane.b32.xlu0 %v2231_v61, %s5003_s28  ;;  %4583 = vmatprep.subr.msk.bf16.mxu0 %vm556_vm2, %v2231_v61  ;;  %v2242_v63 = vsel %vm556_vm2, %v2231_v61, 0  ;;  %v4842_v37 = vpop.eup %4841 }
 0x528   : > { %4448 = vmatpush3.bf16.xpose.msra.mxu0 %v2242_v63 }
 0x529   : > { %4584 = vmatprep.subr.msk.bf16.mxu0 %vm556_vm2, %v2232_v57  ;;  %v2222_v57 = vld [vmem:[#allocation2 + $0x8] sm:$0xff] }
 0x530   : > { %4450 = vmatpush3.bf16.xpose.msra.mxu0 %v2245_v4 }
 0x531   : > { %4475 = vmatprep.subr.bf16.mxu0 %v5584_v13 }
 0x545   : > { %2178 = vxpose.xlu0.b32.start [1/4] (short) %v2124_v41, 128 }
 0x549   : > { %2179 = vxpose.xlu0.b32.cont [2/4] (short) %v2125_v59, 128 }
 0x54d   : > { %2180 = vxpose.xlu0.b32.cont [3/4] (short) %v2126_v48, 128 }
 0x551   : > { %2181 = vxpose.xlu0.b32.end [4/4] (short) %v2127_v55, 128  ;;  %v2221_v55 = vld [vmem:[#allocation2] sm:$0xff] }
 0x552   : > { %v5751_v59 = vpack.c.bf16 %v2222_v57, %v2221_v55  ;;  %v2225_v55 = vld [vmem:[#allocation2 + $0x20] sm:$0xff]  ;;  %v2226_v57 = vld [vmem:[#allocation2 + $0x28] sm:$0xff] }
 0x554   : > { %4463 = vmatprep.subr.bf16.mxu1 %v5751_v59 }
 0x57a   : > { %4649 = vset.pattern.permute.xlu0 %v5001_v36 }
 0x598   : > { %v2648_v41 = vpop.permute.xlu1 %2647 }
 0x599   : > { %v2646_v8 = vpop.permute.xlu0 %2645  ;;  %v2659_v48 = vsel %vm556_vm2, %v2648_v41, 0 }
 0x59a   : > { %v2656_v7 = vsel %vm556_vm2, %v2646_v8, 0 }
 0x5c5   : > { %v2194_v14 = vpop.trf.xlu0 }
 0x5c9   : > { %v2195_v24 = vpop.trf.xlu0 }
 0x5ca   : > { %v2478_v27 = vpack.c.bf16 %v2195_v24, %v2194_v14 }
 0x5cd   : > { %v2196_v60 = vpop.trf.xlu0 }
 0x5d1   : > { %v2197_v0 = vpop.trf.xlu0 }
 0x5d5   : > { %v2198_v1 = vpop.trf.xlu0 }
 0x5de   : > { %v5690_v3 = vpop.f32.mrb[24].mxu1 }
 0x5df   : > { %v5692_v19 = vpop.f32.mrb[25].mxu1 }
 0x5e0   : > { %v5694_v20 = vpop.f32.mrb[26].mxu1 }
 0x5e1   : > { %v5696_v22 = vpop.f32.mrb[27].mxu1 }
 0x5f3   : > { %v4417_v47 = vpop.f32.mrb[20].mxu0 }
 0x5f4   : > { %v2100_v18 = vmul.f32 %v4836_v16, %v4417_v47  ;;  %v2130_v56 = vmul.f32 %v4417_v47, %v5625_v28  ;;  %v1755_v42 = vpop.f32.mrb[21].mxu0  ;;  %v2199_v28 = vpop.trf.xlu0 }
 0x5f5   : > { %v2098_v43 = vmul.f32 %v4838_v29, %v1755_v42  ;;  %v2128_v2 = vmul.f32 %v1755_v42, %v5630_v30  ;;  %v4418_v23 = vpop.f32.mrb[22].mxu0 }
 0x5f6   : > { %v2101_v44 = vmul.f32 %v4840_v21, %v4418_v23  ;;  %v2131_v45 = vmul.f32 %v4418_v23, %v5634_v33  ;;  %v1758_v31 = vpop.f32.mrb[23].mxu0  ;;  %v2479_v33 = vpack.c.bf16 %v2197_v0, %v2196_v60 }
 0x5f7   : > { %v2099_v26 = vmul.f32 %v4842_v37, %v1758_v31  ;;  %v2129_v34 = vmul.f32 %v1758_v31, %v5637_v35  ;;  %v2480_v35 = vpack.c.bf16 %v2199_v28, %v2198_v1  ;;  %v5740_v15 = vmul.f32 %v4051_v17, %v2128_v2 }
 0x5f8   : > { %v5714_v12 = vpack.c.bf16 %v2101_v44, %v2100_v18  ;;  %v2200_v30 = vpop.trf.xlu0  ;;  %v2142_v50 = vmul.f32 %v4051_v17, %v2131_v45  ;;  %v5791_v28 = vadd.s32 8, %v5227_v46 }
 0x5f9   : > { %v5716_v38 = vpack.c.bf16 %v2099_v26, %v2098_v43  ;;  %v5782_v26 = vadd.s32 16, %v5227_v46 }
 0x5fa   : > { %v2309_v45 = vsel %vm556_vm2, %v2142_v50, 0.0 }
 0x5fb   : > { %2639 = vrot.lane.b32.xlu1 %v5716_v38, %s5003_s28  ;;  %4451 = vmatprep.mubr.msk.bf16.mxu0 %vm556_vm2, %v5716_v38 }
 0x5fc   : > { %4452 = vmatmul.mubr.msk.bf16.vlgmr.msra.gmra.mrb[24].mxu0 %vm556_vm2, %v5714_v12  ;;  %v2201_v11 = vpop.trf.xlu0 }
 0x5fd   : > { %4476 = vmatpush3.bf16.msra.mxu0 %v5584_v13  ;;  %4479 = vmatprep.mubr.msk.bf16.mxu0 %vm855_vm1, %v2478_v27  ;;  %v2481_v62 = vpack.c.bf16 %v2201_v11, %v2200_v30  ;;  %v5788_v27 = vadd.s32 24, %v5227_v46 }
 0x5fe   : > { %4477 = vmatprep.subr.bf16.mxu0 %v5578_v9 }
 0x5ff   : > { %2641 = vrot.lane.b32.xlu1 %v5714_v12, %s5003_s28 }
 0x600   : > { %v2202_v61 = vpop.trf.xlu0 }
 0x601   : > { %4478 = vmatpush3.bf16.msra.mxu0 %v5578_v9 }
 0x602   : > { %4585 = vmatprep.subr.msk.bf16.mxu0 %vm556_vm2, %v2646_v8 }
 0x603   : > { %2750 = vrot.lane.b32.xlu1 %v5584_v13, %s5003_s28  ;;  %v2141_v13 = vmul.f32 %v4051_v17, %v2130_v56 }
 0x604   : > { %4480 = vmatmul.mubr.msk.bf16.vlgmr.msra.gmra.mrb[28].mxu0 %vm855_vm1, %v2479_v33  ;;  %v2203_v4 = vpop.trf.xlu0 }
 0x605   : > { %4483 = vmatprep.mubr.msk.bf16.mxu0 %vm855_vm1, %v2480_v35  ;;  %v2932_v14 = vpack.c.bf16 %v2203_v4, %v2202_v61  ;;  %v2306_v37 = vsel %vm556_vm2, %v2141_v13, 0.0 }
 0x607   : > { %2752 = vrot.lane.b32.xlu1 %v5578_v9, %s5003_s28  ;;  %v2140_v9 = vmul.f32 %v4051_v17, %v2129_v34  ;;  %v5785_v34 = vand.u32 127, %v626_v40 }
 0x608   : > { %v2204_v24 = vpop.trf.xlu0 }
 0x609   : > { %v2303_v43 = vsel %vm556_vm2, %v2140_v9, 0.0  ;;  %vm2219_vm5 = vcmp.gt.s32.totalorder %v5782_v26, %v5785_v34  ;;  %vm2220_vm6 = vcmp.gt.s32.totalorder %v5788_v27, %v5785_v34  ;;  %vm2217_vm7 = vcmp.gt.s32.totalorder %v5227_v46, %v5785_v34  ;;  %v2633_v26 = vld [vmem:[#allocation2 + $0x60] sm:$0xff] }
 0x60a   : > { %4488 = vmatpush3.bf16.xpose.msra.mxu0 %v2656_v7  ;;  %vm2218_vm8 = vcmp.gt.s32.totalorder %v5791_v28, %v5785_v34  ;;  %v2224_v7 = vld [vmem:[#allocation2 + $0x18] sm:$0xff] }
 0x60b   : > { %4586 = vmatprep.subr.msk.bf16.mxu0 %vm556_vm2, %v2648_v41  ;;  %2718 = vrot.lane.b32.xlu1 %v5740_v15, %s5003_s28 }
 0x60c   : > { %4484 = vmatmul.mubr.msk.bf16.gmra.mrb[32].mxu0 %vm855_vm1, %v2481_v62  ;;  %v2205_v49 = vpop.trf.xlu0  ;;  %v2223_v62 = vld [vmem:[#allocation2 + $0x10] sm:$0xff] }
 0x60d   : > { %v2933_v58 = vpack.c.bf16 %v2205_v49, %v2204_v24  ;;  %v2227_v49 = vld [vmem:[#allocation2 + $0x30] sm:$0xff] }
 0x60f   : > { %2722 = vrot.lane.b32.xlu1 %v2141_v13, %s5003_s28 }
 0x610   : > { %v2206_v60 = vpop.trf.xlu0 }
 0x612   : > { %4490 = vmatpush3.bf16.xpose.msra.mxu0 %v2659_v48 }
 0x613   : > { %2720 = vrot.lane.b32.xlu1 %v2140_v9, %s5003_s28 }
 0x614   : > { %v2207_v47 = vpop.trf.xlu0 }
 0x615   : > { %v2934_v29 = vpack.c.bf16 %v2207_v47, %v2206_v60 }
 0x617   : > { %2724 = vrot.lane.b32.xlu1 %v2142_v50, %s5003_s28  ;;  %v2374_v50 = vpack.c.bf16 %v2224_v7, %v2223_v62 }
 0x618   : > { %v2208_v23 = vpop.trf.xlu0 }
 0x61c   : > { %v2209_v44 = vpop.trf.xlu0 }
 0x61d   : > { %v2935_v31 = vpack.c.bf16 %v2209_v44, %v2208_v23 }
 0x66d   : > { %v5754_v63 = vpop.permute.xlu1 %2639 }
 0x66e   : > { %4491 = vmatprep.mubr.msk.bf16.mxu0 %vm556_vm2, %v5754_v63 }
 0x671   : > { %v5758_v8 = vpop.permute.xlu1 %2641 }
 0x672   : > { %4492 = vmatmul.mubr.msk.bf16.vlgmr.msra.gmra.mrb[36].mxu0 %vm556_vm2, %v5758_v8 }
 0x673   : > { %4519 = vmatprep.mubr.msk.bf16.mxu0 %vm855_vm1, %v2932_v14  ;;  %v2375_v14 = vpack.c.bf16 %v2226_v57, %v2225_v55 }
 0x675   : > { %v5763_v25 = vpop.permute.xlu1 %2750 }
 0x676   : > { %4515 = vmatprep.subr.bf16.mxu0 %v5763_v25 }
 0x677   : > { %4516 = vmatpush3.bf16.msra.mxu0 %v5763_v25 }
 0x679   : > { %v5767_v53 = vpop.permute.xlu1 %2752 }
 0x67a   : > { %4517 = vmatprep.subr.bf16.mxu0 %v5767_v53 }
 0x67b   : > { %4518 = vmatpush3.bf16.msra.mxu0 %v5767_v53 }
 0x67d   : > { %v2719_v0 = vpop.permute.xlu1 %2718 }
 0x67e   : > { %v2730_v16 = vsel %vm556_vm2, %v2719_v0, 0.0  ;;  %4520 = vmatmul.mubr.msk.bf16.vlgmr.msra.gmra.mrb[40].mxu0 %vm855_vm1, %v2933_v58  ;;  %v2228_v58 = vld [vmem:[#allocation2 + $0x38] sm:$0xff] }
 0x67f   : > { %2731 = vadd.xlane.f32.xlu1 %v2730_v16  ;;  %4523 = vmatprep.mubr.msk.bf16.mxu0 %vm855_vm1, %v2934_v29  ;;  %v2376_v0 = vpack.c.bf16 %v2228_v58, %v2227_v49  ;;  %v2630_v29 = vld [vmem:[#allocation2 + $0x48] sm:$0xff] }
 0x681   : > { %v2723_v1 = vpop.permute.xlu1 %2722 }
 0x682   : > { %v2736_v18 = vsel %vm556_vm2, %v2723_v1, 0.0  ;;  %v2629_v1 = vld [vmem:[#allocation2 + $0x40] sm:$0xff] }
 0x683   : > { %2737 = vadd.xlane.f32.xlu1 %v2736_v18  ;;  %v2827_v18 = vpack.c.bf16 %v2630_v29, %v2629_v1 }
 0x685   : > { %v2721_v56 = vpop.permute.xlu1 %2720 }
 0x686   : > { %v2733_v42 = vsel %vm556_vm2, %v2721_v56, 0.0  ;;  %4524 = vmatmul.mubr.msk.bf16.gmra.mrb[44].mxu0 %vm855_vm1, %v2935_v31 }
 0x687   : > { %2734 = vadd.xlane.f32.xlu0 %v2733_v42 }
 0x689   : > { %v2725_v21 = vpop.permute.xlu1 %2724 }
 0x68a   : > { %v2739_v2 = vsel %vm556_vm2, %v2725_v21, 0.0 }
 0x68b   : > { %2304 = vadd.xlane.f32.xlu0 %v2303_v43  ;;  %2740 = vadd.xlane.f32.xlu1 %v2739_v2 }
 0x68f   : > { %2307 = vadd.xlane.f32.xlu0 %v2306_v37 }
 0x693   : > { %2310 = vadd.xlane.f32.xlu0 %v2309_v45 }
 0x6cf   : > { %v4453_v30 = vpop.f32.mrb[24].mxu0 }
 0x6d0   : > { %v2281_v33 = vpop.f32.mrb[25].mxu0  ;;  %v2298_v35 = vsel %vm2219_vm5, %v4453_v30, 0.0 }
 0x6d1   : > { %v4454_v40 = vpop.f32.mrb[26].mxu0  ;;  %v2296_v41 = vsel %vm2217_vm7, %v2281_v33, 0.0 }
 0x6d2   : > { %v2299_v11 = vsel %vm2220_vm6, %v4454_v40, 0.0  ;;  %v2284_v17 = vpop.f32.mrb[27].mxu0  ;;  %v2631_v40 = vld [vmem:[#allocation2 + $0x50] sm:$0xff] }
 0x6d3   : > { %v2313_v13 = vpack.c.bf16 %v2299_v11, %v2298_v35  ;;  %v2297_v48 = vsel %vm2218_vm8, %v2284_v17, 0.0  ;;  %v2632_v35 = vld [vmem:[#allocation2 + $0x58] sm:$0xff] }
 0x6d4   : > { %v2312_v9 = vpack.c.bf16 %v2297_v48, %v2296_v41  ;;  %v2828_v7 = vpack.c.bf16 %v2632_v35, %v2631_v40  ;;  %v2634_v41 = vld [vmem:[#allocation2 + $0x68] sm:$0xff]  ;;  %v2636_v48 = vld [vmem:[#allocation2 + $0x78] sm:$0xff] }
 0x6d5   : > { %v2829_v27 = vpack.c.bf16 %v2634_v41, %v2633_v26 }
 0x6d6   : > { %4459 = vmatprep.mubr.msk.bf16.mxu1 %vm855_vm1, %v2312_v9 }
 0x6d7   : > { %4460 = vmatmul.mubr.msk.bf16.vlgmr.msra.gmra.mrb[28].mxu1 %vm855_vm1, %v2313_v13  ;;  %v5815_v61 = vpop.f32.mrb[28].mxu0  ;;  %v2635_v13 = vld [vmem:[#allocation2 + $0x70] sm:$0xff] }
 0x6d8   : > { %4464 = vmatpush3.bf16.msra.mxu1 %v5751_v59  ;;  %4471 = vmatprep.mubr.msk.bf16.mxu1 %vm556_vm2, %v5716_v38  ;;  %v5820_v4 = vpop.f32.mrb[29].mxu0  ;;  %v2830_v34 = vpack.c.bf16 %v2636_v48, %v2635_v13 }
 0x6d9   : > { %4465 = vmatprep.subr.bf16.mxu1 %v2374_v50  ;;  %v5822_v24 = vpop.f32.mrb[30].mxu0 }
 0x6da   : > { %v5824_v60 = vpop.f32.mrb[31].mxu0 }
 0x6dc   : > { %4466 = vmatpush3.bf16.msra.mxu1 %v2374_v50 }
 0x6dd   : > { %4467 = vmatprep.subr.bf16.mxu1 %v2375_v14 }
 0x6df   : > { %v5826_v16 = vpop.f32.mrb[32].mxu0 }
 0x6e0   : > { %4468 = vmatpush3.bf16.msra.mxu1 %v2375_v14  ;;  %v5828_v59 = vpop.f32.mrb[33].mxu0 }
 0x6e1   : > { %4469 = vmatprep.subr.bf16.mxu1 %v2376_v0  ;;  %v5830_v38 = vpop.f32.mrb[34].mxu0 }
 0x6e2   : > { %v5832_v47 = vpop.f32.mrb[35].mxu0 }
 0x6e4   : > { %4470 = vmatpush3.bf16.msra.mxu1 %v2376_v0 }
 0x6e5   : > { %4495 = vmatprep.subr.bf16.mxu1 %v5763_v25 }
 0x6e7   : > { %4472 = vmatmul.mubr.msk.bf16.vlgmr.msra.gmra.mrb[28].mxu1 %vm556_vm2, %v5714_v12 }
 0x6e8   : > { %4496 = vmatpush3.bf16.msra.mxu1 %v5763_v25 }
 0x6e9   : > { %4497 = vmatprep.subr.bf16.mxu1 %v5767_v53 }
 0x6ec   : > { %4498 = vmatpush3.bf16.msra.mxu1 %v5767_v53  ;;  %v2300_v53 = vsel %vm556_vm2, %v5740_v15, 0.0 }
 0x6ed   : > { %4503 = vmatprep.subr.bf16.mxu1 %v2827_v18 }
 0x70c   : > { %v2732_v56 = vpop.xlane.xlu1 %2731 }
 0x70d   : > { %v2744_v43 = vmul.f32 %v2732_v56, %v5572_v6 }
 0x710   : > { %v2738_v42 = vpop.xlane.xlu1 %2737 }
 0x711   : > { %v2746_v21 = vmul.f32 %v5570_v5, %v2738_v42 }
 0x713   : > { %2764 = vrot.lane.b32.xlu1 %v2746_v21, %s5003_s28 }
 0x714   : > { %v2735_v2 = vpop.xlane.xlu0 %2734 }
 0x715   : > { %v2745_v12 = vmul.f32 %v2735_v2, %v5580_v10 }
 0x717   : > { %2760 = vrot.lane.b32.xlu1 %v2744_v43, %s5003_s28 }
 0x718   : > { %v2741_v25 = vpop.xlane.xlu1 %2740  ;;  %v2305_v28 = vpop.xlane.xlu0 %2304 }
 0x719   : > { %v2747_v23 = vmul.f32 %v5574_v52, %v2741_v25  ;;  %v2315_v0 = vmul.f32 %v2305_v28, %v5580_v10 }
 0x71b   : > { %2762 = vrot.lane.b32.xlu1 %v2745_v12, %s5003_s28 }
 0x71c   : > { %v2308_v9 = vpop.xlane.xlu0 %2307 }
 0x71f   : > { %2766 = vrot.lane.b32.xlu1 %v2747_v23, %s5003_s28 }
 0x720   : > { %v2311_v50 = vpop.xlane.xlu0 %2310 }
 0x721   : > { %v2317_v14 = vmul.f32 %v5574_v52, %v2311_v50 }
 0x743   : > { %2301 = vadd.xlane.f32.xlu1 %v2300_v53 }
 0x745   : > { %v4493_v37 = vpop.f32.mrb[36].mxu0 }
 0x746   : > { %v2695_v44 = vpop.f32.mrb[37].mxu0  ;;  %v2712_v31 = vsel %vm2219_vm5, %v4493_v37, 0.0 }
 0x747   : > { %v4494_v45 = vpop.f32.mrb[38].mxu0  ;;  %v2710_v11 = vsel %vm2217_vm7, %v2695_v44, 0.0 }
 0x748   : > { %v2713_v30 = vsel %vm2220_vm6, %v4494_v45, 0.0  ;;  %v2698_v33 = vpop.f32.mrb[39].mxu0 }
 0x749   : > { %v2743_v15 = vpack.c.bf16 %v2713_v30, %v2712_v31  ;;  %v2711_v17 = vsel %vm2218_vm8, %v2698_v33, 0.0 }
 0x74a   : > { %v2742_v62 = vpack.c.bf16 %v2711_v17, %v2710_v11 }
 0x74c   : > { %4499 = vmatprep.mubr.msk.bf16.mxu1 %vm855_vm1, %v2742_v62 }
 0x74d   : > { %4500 = vmatmul.mubr.msk.bf16.vlgmr.msra.gmra.mrb[32].mxu1 %vm855_vm1, %v2743_v15 }
 0x74e   : > { %4504 = vmatpush3.bf16.msra.mxu1 %v2827_v18  ;;  %4511 = vmatprep.mubr.msk.bf16.mxu1 %vm556_vm2, %v5754_v63  ;;  %v2316_v63 = vmul.f32 %v5570_v5, %v2308_v9 }
 0x74f   : > { %4505 = vmatprep.subr.bf16.mxu1 %v2828_v7 }
 0x751   : > { %v5878_v42 = vpop.f32.mrb[40].mxu0 }
 0x752   : > { %4506 = vmatpush3.bf16.msra.mxu1 %v2828_v7  ;;  %v5880_v21 = vpop.f32.mrb[41].mxu0 }
 0x753   : > { %4507 = vmatprep.subr.bf16.mxu1 %v2829_v27  ;;  %v5882_v5 = vpop.f32.mrb[42].mxu0 }
 0x754   : > { %v5884_v52 = vpop.f32.mrb[43].mxu0 }
 0x756   : > { %4508 = vmatpush3.bf16.msra.mxu1 %v2829_v27 }
 0x757   : > { %4509 = vmatprep.subr.bf16.mxu1 %v2830_v34 }
 0x759   : > { %v5886_v2 = vpop.f32.mrb[44].mxu0 }
 0x75a   : > { %4510 = vmatpush3.bf16.msra.mxu1 %v2830_v34  ;;  %v5888_v12 = vpop.f32.mrb[45].mxu0 }
 0x75b   : > { %v5890_v10 = vpop.f32.mrb[46].mxu0 }
 0x75c   : > { %v5892_v25 = vpop.f32.mrb[47].mxu0 }
 0x75d   : > { %4512 = vmatmul.mubr.msk.bf16.vlgmr.msra.gmra.mrb[32].mxu1 %vm556_vm2, %v5758_v8 }
 0x75e   : > { %3472 = vmatprep.mubr.bf16.mxu1 %v5001_v36 }
 0x785   : > { %v2765_v55 = vpop.permute.xlu1 %2764 }
 0x789   : > { %v2761_v56 = vpop.permute.xlu1 %2760 }
 0x78d   : > { %v2763_v43 = vpop.permute.xlu1 %2762 }
 0x791   : > { %v2767_v23 = vpop.permute.xlu1 %2766 }
 0x7ba   : > { %v4473_v57 = vpop.f32.mrb[28].mxu1 }
 0x7bb   : > { %v5871_v49 = vadd.f32 %v4473_v57, %v2316_v63  ;;  %v2411_v58 = vpop.f32.mrb[29].mxu1 }
 0x7bc   : > { %v4474_v1 = vpop.f32.mrb[30].mxu1 }
 0x7bd   : > { %v5874_v29 = vadd.f32 %v4474_v1, %v2317_v14  ;;  %v2414_v8 = vpop.f32.mrb[31].mxu1  ;;  %v2581_v27 = vsel %vm556_vm2, %v5871_v49, 0.0 }
 0x7be   : > { %v5876_v18 = vadd.f32 %v2414_v8, %v2315_v0 }
 0x7bf   : > { %v2584_v13 = vsel %vm556_vm2, %v5874_v29, 0.0 }
 0x7c0   : > { %v2578_v41 = vsel %vm556_vm2, %v5876_v18, 0.0 }
 0x7d0   : > { %v2302_v53 = vpop.xlane.xlu1 %2301 }
 0x7d1   : > { %v2314_v37 = vmul.f32 %v2302_v53, %v5572_v6 }
 0x7d3   : > { %v4568_v44 = vadd.f32 %v2411_v58, %v2314_v37 }
 0x7d5   : > { %v2575_v26 = vsel %vm556_vm2, %v4568_v44, 0.0 }
 0x830   : > { %v4513_v45 = vpop.f32.mrb[32].mxu1 }
 0x831   : > { %v2865_v31 = vpop.f32.mrb[33].mxu1  ;;  %v4571_v35 = vadd.f32 %v4513_v45, %v2765_v55 }
 0x832   : > { %v4572_v30 = vadd.f32 %v2865_v31, %v2761_v56  ;;  %v4514_v33 = vpop.f32.mrb[34].mxu1 }
 0x833   : > { %v2868_v40 = vpop.f32.mrb[35].mxu1  ;;  %v4573_v17 = vadd.f32 %v4514_v33, %v2767_v23  ;;  %v3035_v7 = vsel %vm556_vm2, %v4571_v35, 0.0 }
 0x834   : > { %v4574_v11 = vadd.f32 %v2868_v40, %v2763_v43  ;;  %v3029_v15 = vsel %vm556_vm2, %v4572_v30, 0.0 }
 0x835   : > { %3030 = vadd.xlane.f32.xlu1 %v3029_v15  ;;  %v3038_v6 = vsel %vm556_vm2, %v4573_v17, 0.0 }
 0x836   : > { %v3032_v62 = vsel %vm556_vm2, %v4574_v11, 0.0 }
 0x837   : > { %3033 = vadd.xlane.f32.xlu0 %v3032_v62 }
 0x839   : > { %3036 = vadd.xlane.f32.xlu1 %v3035_v7 }
 0x83b   : > { %3039 = vadd.xlane.f32.xlu0 %v3038_v6 }
 0x83d   : > { %2576 = vadd.xlane.f32.xlu1 %v2575_v26 }
 0x83f   : > { %2579 = vadd.xlane.f32.xlu0 %v2578_v41 }
 0x841   : > { %2582 = vadd.xlane.f32.xlu1 %v2581_v27 }
 0x843   : > { %2585 = vadd.xlane.f32.xlu0 %v2584_v13 }
 0x8c2   : > { %v3031_v48 = vpop.xlane.xlu1 %3030 }
 0x8c3   : > { %v3041_v34 = vmul.f32 0.015625, %v3031_v48 }
 0x8c4   : > { %v3034_v28 = vpop.xlane.xlu0 %3033 }
 0x8c5   : > { %v5906_v9 = vsub.f32 %v4572_v30, %v3041_v34  ;;  %v3042_v50 = vmul.f32 0.015625, %v3034_v28 }
 0x8c6   : > { %v3037_v63 = vpop.xlane.xlu1 %3036 }
 0x8c7   : > { %v5908_v55 = vsub.f32 %v4574_v11, %v3042_v50  ;;  %v3043_v57 = vmul.f32 0.015625, %v3037_v63  ;;  %v3049_v14 = vmul.f32 %v5906_v9, %v5906_v9  ;;  %v4730_v50 = vld [vmem:[%s6301_s12 + $0x8] sm:$0xff]   ;;  %v4731_v63 = vld [vmem:[%s6301_s12 + $0x10] sm:$0xff]  }
 0x8c8   : > { %v3040_v58 = vpop.xlane.xlu0 %3039 }
 0x8c9   : > { %v5912_v0 = vsub.f32 %v4571_v35, %v3043_v57  ;;  %v3044_v1 = vmul.f32 0.015625, %v3040_v58  ;;  %v3053_v8 = vsel %vm556_vm2, %v3049_v14, 0.0  ;;  %v3050_v56 = vmul.f32 %v5908_v55, %v5908_v55  ;;  %v4732_v57 = vld [vmem:[%s6301_s12 + $0x18] sm:$0xff]  }
 0x8ca   : > { %v2577_v43 = vpop.xlane.xlu1 %2576  ;;  %3054 = vadd.xlane.f32.xlu1 %v3053_v8 }
 0x8cb   : > { %v5917_v23 = vsub.f32 %v4573_v17, %v3044_v1  ;;  %v2588_v53 = vmul.f32 0.015625, %v2577_v43  ;;  %v3056_v37 = vsel %vm556_vm2, %v3050_v56, 0.0  ;;  %v3051_v45 = vmul.f32 %v5912_v0, %v5912_v0 }
 0x8cc   : > { %3057 = vadd.xlane.f32.xlu0 %v3056_v37  ;;  %v2580_v31 = vpop.xlane.xlu0 %2579 }
 0x8cd   : > { %v5922_v30 = vsub.f32 %v4568_v44, %v2588_v53  ;;  %v2589_v33 = vmul.f32 0.015625, %v2580_v31  ;;  %v3059_v40 = vsel %vm556_vm2, %v3051_v45, 0.0  ;;  %v3052_v35 = vmul.f32 %v5917_v23, %v5917_v23  ;;  %v4733_v45 = vld [vmem:[%s6301_s12 + $0x20] sm:$0xff]  }
 0x8ce   : > { %3060 = vadd.xlane.f32.xlu1 %v3059_v40  ;;  %v2583_v11 = vpop.xlane.xlu1 %2582 }
 0x8cf   : > { %v5928_v15 = vsub.f32 %v5876_v18, %v2589_v33  ;;  %v2590_v17 = vmul.f32 0.015625, %v2583_v11  ;;  %v3062_v62 = vsel %vm556_vm2, %v3052_v35, 0.0  ;;  %v2596_v7 = vmul.f32 %v5922_v30, %v5922_v30  ;;  %v4734_v11 = vld [vmem:[%s6301_s12 + $0x28] sm:$0xff]  }
 0x8d0   : > { %3063 = vadd.xlane.f32.xlu0 %v3062_v62  ;;  %v2586_v44 = vpop.xlane.xlu0 %2585 }
 0x8d1   : > { %v5934_v6 = vsub.f32 %v5871_v49, %v2590_v17  ;;  %v2591_v26 = vmul.f32 0.015625, %v2586_v44  ;;  %v2600_v41 = vsel %vm556_vm2, %v2596_v7, 0.0  ;;  %v2597_v27 = vmul.f32 %v5928_v15, %v5928_v15  ;;  %v4735_v17 = vld [vmem:[%s6301_s12 + $0x30] sm:$0xff]  }
 0x8d2   : > { %2601 = vadd.xlane.f32.xlu1 %v2600_v41 }
 0x8d3   : > { %v5940_v18 = vsub.f32 %v5874_v29, %v2591_v26  ;;  %v2603_v13 = vsel %vm556_vm2, %v2597_v27, 0.0  ;;  %v2598_v48 = vmul.f32 %v5934_v6, %v5934_v6  ;;  %v4729_v29 = vld [vmem:[%s6301_s12] sm:$0xff]   ;;  %v4736_v26 = vld [vmem:[%s6301_s12 + $0x38] sm:$0xff]  }
 0x8d4   : > { %2604 = vadd.xlane.f32.xlu0 %v2603_v13  ;;  %4527 = vmatprep.subr.bf16.mxu0 %v4729_v29 }
 0x8d5   : > { %v2606_v34 = vsel %vm556_vm2, %v2598_v48, 0.0  ;;  %v2599_v49 = vmul.f32 %v5940_v18, %v5940_v18  ;;  %4528 = vmatpush3.bf16.msra.mxu0 %v4729_v29 }
 0x8d6   : > { %2607 = vadd.xlane.f32.xlu1 %v2606_v34  ;;  %4529 = vmatprep.subr.bf16.mxu0 %v4730_v50  ;;  %v4047_v34 = vmul.f32 -1.442695, %v5692_v19 }
 0x8d7   : > { %v2609_v28 = vsel %vm556_vm2, %v2599_v49, 0.0  ;;  %v4048_v49 = vmul.f32 -1.442695, %v5696_v22 }
 0x8d8   : > { %2610 = vadd.xlane.f32.xlu0 %v2609_v28 }
 0x8d9   : > { %4530 = vmatpush3.bf16.msra.mxu0 %v4730_v50 }
 0x8da   : > { %4531 = vmatprep.subr.bf16.mxu0 %v4731_v63 }
 0x8dd   : > { %4532 = vmatpush3.bf16.msra.mxu0 %v4731_v63 }
 0x8de   : > { %4533 = vmatprep.subr.bf16.mxu0 %v4732_v57 }
 0x8e1   : > { %4534 = vmatpush3.bf16.msra.mxu0 %v4732_v57 }
 0x8e2   : > { %4535 = vmatprep.subr.bf16.mxu0 %v4733_v45 }
 0x8e5   : > { %4536 = vmatpush3.bf16.msra.mxu0 %v4733_v45 }
 0x8e6   : > { %4537 = vmatprep.subr.bf16.mxu0 %v4734_v11 }
 0x8e9   : > { %4538 = vmatpush3.bf16.msra.mxu0 %v4734_v11  ;;  %v3103_v11 = vsub.s32 6, %v5227_v46 }
 0x8ea   : > { %4539 = vmatprep.subr.bf16.mxu0 %v4735_v17 }
 0x8ed   : > { %4540 = vmatpush3.bf16.msra.mxu0 %v4735_v17 }
 0x8ee   : > { %4541 = vmatprep.subr.bf16.mxu0 %v4736_v26 }
 0x8f1   : > { %4542 = vmatpush3.bf16.msra.mxu0 %v4736_v26 }
 0x957   : > { %v3055_v14 = vpop.xlane.xlu1 %3054 }
 0x958   : > { %v3065_v58 = vmul.f32 0.015625, %v3055_v14 }
 0x959   : > { %v3058_v1 = vpop.xlane.xlu0 %3057 }
 0x95a   : > { %v3069_v8 = vadd.f32 2e-05, %v3065_v58  ;;  %v3066_v56 = vmul.f32 0.015625, %v3058_v1 }
 0x95b   : > { %v3061_v43 = vpop.xlane.xlu1 %3060 }
 0x95c   : > { %4843 = vrsqrt.f32 %v3069_v8  ;;  %v3070_v53 = vadd.f32 2e-05, %v3066_v56  ;;  %v3067_v37 = vmul.f32 0.015625, %v3061_v43 }
 0x95d   : > { %v3064_v31 = vpop.xlane.xlu0 %3063 }
 0x95e   : > { %4845 = vrsqrt.f32 %v3070_v53  ;;  %v3071_v33 = vadd.f32 2e-05, %v3067_v37  ;;  %v3068_v40 = vmul.f32 0.015625, %v3064_v31 }
 0x95f   : > { %v2602_v28 = vpop.xlane.xlu1 %2601 }
 0x960   : > { %4847 = vrsqrt.f32 %v3071_v33  ;;  %v3072_v35 = vadd.f32 2e-05, %v3068_v40  ;;  %v2612_v50 = vmul.f32 0.015625, %v2602_v28 }
 0x961   : > { %v2605_v29 = vpop.xlane.xlu0 %2604 }
 0x962   : > { %4849 = vrsqrt.f32 %v3072_v35  ;;  %v2613_v57 = vmul.f32 0.015625, %v2605_v29 }
 0x963   : > { %4851 = vpow2.f32 %v4047_v34  ;;  %v2608_v63 = vpop.xlane.xlu1 %2607 }
 0x964   : > { %4853 = vpow2.f32 %v4048_v49  ;;  %v2614_v14 = vmul.f32 0.015625, %v2608_v63  ;;  %v2617_v1 = vadd.f32 2e-05, %v2613_v57 }
 0x965   : > { %v2611_v58 = vpop.xlane.xlu0 %2610 }
 0x966   : > { %v4844_v62 = vpop.eup %4843  ;;  %v2618_v43 = vadd.f32 2e-05, %v2614_v14  ;;  %v2615_v53 = vmul.f32 0.015625, %v2611_v58 }
 0x967   : > { %v3077_v7 = vmul.f32 %v4844_v62, %v5906_v9 }
 0x968   : > { %v4846_v44 = vpop.eup %4845  ;;  %v2619_v31 = vadd.f32 2e-05, %v2615_v53 }
 0x969   : > { %3085 = vrot.lane.b32.xlu1 %v3077_v7, %s5003_s28  ;;  %v3078_v41 = vmul.f32 %v4846_v44, %v5908_v55  ;;  %v4049_v55 = vmul.f32 -1.442695, %v5690_v3  ;;  %v5989_v44 = vld [vmem:[%s6322_s1] sm:$0xff] }
 0x96a   : > { %v4848_v27 = vpop.eup %4847  ;;  %v3104_v26 = vrot.slane %v5989_v44, %v3103_v11 }
 0x96b   : > { %3087 = vrot.lane.b32.xlu0 %v3078_v41, %s5003_s28  ;;  %v3079_v13 = vmul.f32 %v4848_v27, %v5912_v0  ;;  %v4050_v0 = vmul.f32 -1.442695, %v5694_v20  ;;  %4855 = vpow2.f32 %v4049_v55 }
 0x96c   : > { %v4850_v48 = vpop.eup %4849 }
 0x96d   : > { %3089 = vrot.lane.b32.xlu1 %v3079_v13, %s5003_s28  ;;  %v3080_v9 = vmul.f32 %v4850_v48, %v5917_v23  ;;  %4857 = vpow2.f32 %v4050_v0  ;;  %v2616_v23 = vadd.f32 2e-05, %v2612_v50  ;;  %v4852_v8 = vpop.eup %4851  ;;  %v3112_v13 = vrot.slane %v5989_v44, %v2122_v32 }
 0x96e   : > { %v4854_v56 = vpop.eup %4853  ;;  %v1988_v37 = vadd.f32 1.0, %v4852_v8 }
 0x96f   : > { %4859 = vrsqrt.f32 %v2616_v23  ;;  %v1989_v45 = vadd.f32 1.0, %v4854_v56 }
 0x970   : > { %4861 = vrsqrt.f32 %v2617_v1 }
 0x971   : > { %3091 = vrot.lane.b32.xlu1 %v3080_v9, %s5003_s28  ;;  %4863 = vrsqrt.f32 %v2618_v43  ;;  %s4130_s28 = sshll.u32 %s4990_s24, 9  ;;  %s4920_s24 = scalar_lea.vmem %s6233_s23, 512 }
 0x972   : > { %4865 = vrcp.f32 %v1988_v37  ;;  %s6239_s21 = scalar_lea.hbm %s6323_s19, %s4130_s28  ;;  %p4921_p12 = scmp.ne.s32.totalorder %s6233_s23, %s4920_s24 }
 0x973   : > { %4867 = vrcp.f32 %v1989_v45 }
 0x974   : > { %4869 = vrsqrt.f32 %v2619_v31  ;;  %p4922_p13 = pnand %p4921_p12, %p5133_p4 }
 0x975   : > { %v4856_v33 = vpop.eup %4855 }
 0x976   : > { %v1990_v35 = vadd.f32 1.0, %v4856_v33  ;;  %p4923_p0 = pneg %p4922_p13 }
 0x977   : > { %v4858_v40 = vpop.eup %4857 }
 0x978   : > { %v1991_v17 = vadd.f32 1.0, %v4858_v40  ;;  %4871 = vrcp.f32 %v1990_v35 }
 0x979   : > { %v4860_v62 = vpop.eup %4859 }
 0x97a   : > { %v4862_v7 = vpop.eup %4861  ;;  %4873 = vrcp.f32 %v1991_v17  ;;  %v2624_v41 = vmul.f32 %v4860_v62, %v5922_v30 }
 0x97b   : > { %v4864_v27 = vpop.eup %4863  ;;  %v2625_v34 = vmul.f32 %v4862_v7, %v5928_v15 }
 0x97c   : > { %v4866_v49 = vpop.eup %4865  ;;  %v2626_v50 = vmul.f32 %v4864_v27, %v5934_v6 }
 0x97d   : > { %v4868_v29 = vpop.eup %4867  ;;  %v2000_v32 = vmul.f32 %v4866_v49, %v5692_v19 }
 0x97e   : > { %v4870_v63 = vpop.eup %4869  ;;  %v2001_v58 = vmul.f32 %v4868_v29, %v5696_v22 }
 0x97f   : > { %v2627_v8 = vmul.f32 %v4870_v63, %v5940_v18 }
 0x982   : > { %v4872_v56 = vpop.eup %4871 }
 0x983   : > { %v2002_v19 = vmul.f32 %v4872_v56, %v5690_v3  ;;  %v4902_v3 = vld [vmem:[%s5153_s29 + $0x10] sm:$0xff] }
 0x984   : > { %v4874_v6 = vpop.eup %4873 }
 0x985   : > { %v2003_v22 = vmul.f32 %v4874_v6, %v5694_v20  ;;  %v4740_v6 = vld [vmem:[%s6302_s13 + $0x10] ss:$8 sps:$4 sm:$0xff]  }
 0x9db   : > { %v3086_v48 = vpop.permute.xlu1 %3085 }
 0x9dc   : > { %v3097_v9 = vsel %vm556_vm2, %v2624_v41, %v3086_v48  ;;  %v4900_v41 = vld [vmem:[%s5153_s29] sm:$0xff] }
 0x9dd   : > { %v3105_v28 = vmul.f32 %v3104_v26, %v3097_v9  ;;  %v3088_v55 = vpop.permute.xlu0 %3087  ;;  %v4901_v9 = vld [vmem:[%s5153_s29 + $0x8] sm:$0xff] }
 0x9de   : > { %v3098_v0 = vsel %vm556_vm2, %v2625_v34, %v3088_v55  ;;  %v4739_v55 = vld [vmem:[%s6302_s13 + $0x4] ss:$8 sps:$4 sm:$0xff]  }
 0x9df   : > { %v3113_v30 = vadd.f32 %v3112_v13, %v3105_v28  ;;  %v3106_v57 = vmul.f32 %v3104_v26, %v3098_v0  ;;  %v3090_v23 = vpop.permute.xlu1 %3089  ;;  %v4737_v28 = vld [vmem:[%s6302_s13] ss:$8 sps:$4 sm:$0xff]   ;;  %3440 = vmatprep.subr.bf16.mxu1 %v4739_v55 }
 0x9e0   : > { %v3099_v14 = vsel %vm556_vm2, %v2626_v50, %v3090_v23  ;;  %3441 = vmatpush1.bf16.msra.mxu1 %v4737_v28 }
 0x9e1   : > { %v3114_v1 = vadd.f32 %v3112_v13, %v3106_v57  ;;  %v3107_v15 = vmul.f32 %v3104_v26, %v3099_v14  ;;  %v3117_v53 = vmul.f32 %v3113_v30, %v2000_v32 }
 0x9e3   : > { %v3092_v43 = vpop.permute.xlu1 %3091  ;;  %v3118_v37 = vmul.f32 %v3114_v1, %v2001_v58  ;;  %v3115_v31 = vadd.f32 %v3112_v13, %v3107_v15 }
 0x9e4   : > { %v3100_v45 = vsel %vm556_vm2, %v2627_v8, %v3092_v43 }
 0x9e5   : > { %v3108_v33 = vmul.f32 %v3104_v26, %v3100_v45  ;;  %v3121_v40 = vpack.c.bf16 %v3118_v37, %v3117_v53  ;;  %v3119_v18 = vmul.f32 %v3115_v31, %v2002_v19  ;;  %v4742_v37 = vld [vmem:[%s6302_s13 + $0x14] ss:$8 sps:$4 sm:$0xff]   ;;  %v4745_v45 = vld [vmem:[%s6302_s13 + $0x24] ss:$8 sps:$4 sm:$0xff]   ;;  %v4743_v31 = vld [vmem:[%s6302_s13 + $0x20] ss:$8 sps:$4 sm:$0xff]  }
 0x9e6   : > { %3442 = vmatprep.subr.bf16.mxu1 %v4742_v37  ;;  %v4751_v19 = vld [vmem:[%s6302_s13 + $0x44] ss:$8 sps:$4 sm:$0xff]  }
 0x9e7   : > { %v3116_v35 = vadd.f32 %v3112_v13, %v3108_v33  ;;  %4543 = vmatprep.mubr.bf16.mxu0 %v3121_v40  ;;  %v4903_v13 = vld [vmem:[%s5153_s29 + $0x18] sm:$0xff]  ;;  %3443 = vmatpush1.bf16.msra.mxu1 %v4740_v6  ;;  %s5005_s29 = smov [#allocation5]  }
 0x9e8   : > { %3444 = vmatprep.subr.bf16.mxu1 %v4745_v45  ;;  %v4748_v33 = vld [vmem:[%s6302_s13 + $0x34] ss:$8 sps:$4 sm:$0xff]   ;;  %v4746_v40 = vld [vmem:[%s6302_s13 + $0x30] ss:$8 sps:$4 sm:$0xff]   ;;  %v576_v45 = vld [vmem:[%s6322_s1 + $0x8] sm:$0x3] }
 0x9e9   : > { %v3120_v11 = vmul.f32 %v3116_v35, %v2003_v22  ;;  %v4749_v22 = vld [vmem:[%s6302_s13 + $0x40] ss:$8 sps:$4 sm:$0xff]   ;;  %v4754_v35 = vld [vmem:[%s6302_s13 + $0x54] ss:$8 sps:$4 sm:$0xff]   ;;  %s4924_s20 = sshll.u32 %s5005_s29, 4  ;;  %s4925_s20 = int_to_ptr.vmem [resolvable:$false] %s4924_s20 }
 0x9ea   : > { %s4926_s1 = scalar_lea.vmem %s4925_s20, 1024  ;;  %p4927_p1 = scmp.lt.s32.totalorder %s6233_s23, %s4925_s20 }
 0x9eb   : > { %v3122_v17 = vpack.c.bf16 %v3120_v11, %v3119_v18  ;;  %3445 = vmatpush1.bf16.msra.mxu1 %v4743_v31  ;;  %v4752_v18 = vld [vmem:[%s6302_s13 + $0x50] ss:$8 sps:$4 sm:$0xff]   ;;  %v4757_v11 = vld [vmem:[%s6302_s13 + $0x64] ss:$8 sps:$4 sm:$0xff]   ;;  %p4928_p2 = scmp.lt.s32.totalorder %s4926_s1, %s4920_s24 }
 0x9ec   : > { %3446 = vmatprep.subr.bf16.mxu1 %v4748_v33 }
 0x9ed   : > { %4544 = vmatmul.mubr.bf16.vlgmr.msra.gmra.mrb[48].mxu0 %v3122_v17  ;;  %v4755_v17 = vld [vmem:[%s6302_s13 + $0x60] ss:$8 sps:$4 sm:$0xff]   ;;  %p4929_p3 = por %p4928_p2, %p4927_p1 }
 0x9ef   : > { %3447 = vmatpush1.bf16.msra.mxu1 %v4746_v40  ;;  %p4930_p5 = pnand %p4929_p3, %p4923_p0 }
 0x9f0   : > { %3448 = vmatprep.subr.bf16.mxu1 %v4751_v19 }
 0x9f3   : > { %3449 = vmatpush1.bf16.msra.mxu1 %v4749_v22  ;;  %v3300_v22 = vld [vmem:[#allocation4] sm:$0x1] }
 0x9f4   : > { %3450 = vmatprep.subr.bf16.mxu1 %v4754_v35  ;;  %v3321_v35 = vrot.slane %v576_v45, %v628_v51 }
 0x9f7   : > { %3451 = vmatpush1.bf16.msra.mxu1 %v4752_v18 }
 0x9f8   : > { %3452 = vmatprep.subr.bf16.mxu1 %v4757_v11 }
 0x9fb   : > { %3453 = vmatpush1.bf16.msra.mxu1 %v4755_v17 }
 0xac0   : > { %v4545_v62 = vpop.f32.mrb[48].mxu0 }
 0xac1   : > { %v3221_v7 = vpop.f32.mrb[49].mxu0  ;;  %v6015_v20 = vadd.f32 %v4902_v3, %v4545_v62  ;;  %v4758_v62 = vld [vmem:[%s6302_s13 + $0x70] ss:$8 sps:$4 sm:$0xff]  }
 0xac2   : > { %v6008_v27 = vadd.f32 %v4900_v41, %v3221_v7  ;;  %v4546_v26 = vpop.f32.mrb[50].mxu0  ;;  %v4760_v7 = vld [vmem:[%s6302_s13 + $0x74] ss:$8 sps:$4 sm:$0xff]   ;;  %v6094_v41 = vld [vmem:[%s6304_s15] sm:$0xff]  }
 0xac3   : > { %v3224_v48 = vpop.f32.mrb[51].mxu0  ;;  %v6020_v49 = vadd.f32 %v4903_v13, %v4546_v26  ;;  %3454 = vmatprep.subr.bf16.mxu1 %v4760_v7  ;;  %v2144_v26 = vrot.slane %v5674_v39, 7 }
 0xac4   : > { %v6011_v34 = vadd.f32 %v4901_v9, %v3224_v48  ;;  %3240 = vadd.xlane.f32.xlu0 %v6008_v27  ;;  %3455 = vmatpush1.bf16.msra.mxu1 %v4758_v62 }
 0xac5   : > { %4547 = vmatprep.subr.bf16.mxu1 %v6094_v41 }
 0xac6   : > { %3242 = vadd.xlane.f32.xlu1 %v6011_v34 }
 0xac8   : > { %3244 = vadd.xlane.f32.xlu0 %v6015_v20 }
 0xacc   : > { %3246 = vadd.xlane.f32.xlu0 %v6020_v49 }
 0xb51   : > { %v3241_v29 = vpop.xlane.xlu0 %3240 }
 0xb52   : > { %v3248_v0 = vmul.f32 0.0078125, %v3241_v29 }
 0xb53   : > { %v3243_v50 = vpop.xlane.xlu1 %3242 }
 0xb54   : > { %v6030_v63 = vsub.f32 %v6008_v27, %v3248_v0  ;;  %v3249_v30 = vmul.f32 0.0078125, %v3243_v50 }
 0xb55   : > { %v3245_v57 = vpop.xlane.xlu0 %3244 }
 0xb56   : > { %v6033_v23 = vsub.f32 %v6011_v34, %v3249_v30  ;;  %v3250_v14 = vmul.f32 0.0078125, %v3245_v57  ;;  %v3256_v32 = vmul.f32 %v6030_v63, %v6030_v63 }
 0xb58   : > { %v6038_v58 = vsub.f32 %v6015_v20, %v3250_v14  ;;  %3260 = vadd.xlane.f32.xlu1 %v3256_v32  ;;  %v3257_v1 = vmul.f32 %v6033_v23, %v6033_v23  ;;  %v3286_v14 = vsub.s32 2, %v5227_v46  ;;  %v3294_v32 = vsub.s32 3, %v5227_v46  ;;  %v4763_v46 = vld [vmem:[%s6304_s15 + $0x10] sm:$0xff]  }
 0xb59   : > { %v3247_v15 = vpop.xlane.xlu0 %3246 }
 0xb5a   : > { %v3251_v8 = vmul.f32 0.0078125, %v3247_v15  ;;  %3262 = vadd.xlane.f32.xlu0 %v3257_v1  ;;  %v3258_v56 = vmul.f32 %v6038_v58, %v6038_v58  ;;  %v3287_v1 = vrot.slane %v5989_v44, %v3286_v14 }
 0xb5c   : > { %v6045_v43 = vsub.f32 %v6020_v49, %v3251_v8  ;;  %3264 = vadd.xlane.f32.xlu1 %v3258_v56  ;;  %v3295_v56 = vrot.slane %v5989_v44, %v3294_v32 }
 0xb5e   : > { %v3259_v53 = vmul.f32 %v6045_v43, %v6045_v43 }
 0xb60   : > { %3266 = vadd.xlane.f32.xlu0 %v3259_v53 }
 0xb8f   : > { %2146 = vxpose.xlu1.b32.start.end [1/1] (short) %v2144_v26, 128 }
 0xbad   : > { %4650 = vset.pattern.permute.xlu1 %v5001_v36 }
 0xbe5   : > { %v3261_v48 = vpop.xlane.xlu1 %3260 }
 0xbe6   : > { %v3268_v9 = vmul.f32 0.0078125, %v3261_v48 }
 0xbe7   : > { %v3263_v3 = vpop.xlane.xlu0 %3262 }
 0xbe8   : > { %v3272_v13 = vadd.f32 1e-05, %v3268_v9  ;;  %v3269_v28 = vmul.f32 0.0078125, %v3263_v3 }
 0xbe9   : > { %v3265_v55 = vpop.xlane.xlu1 %3264 }
 0xbea   : > { %4875 = vrsqrt.f32 %v3272_v13  ;;  %v3273_v29 = vadd.f32 1e-05, %v3269_v28  ;;  %v3270_v0 = vmul.f32 0.0078125, %v3265_v55 }
 0xbec   : > { %4877 = vrsqrt.f32 %v3273_v29  ;;  %v3274_v50 = vadd.f32 1e-05, %v3270_v0 }
 0xbed   : > { %v3267_v30 = vpop.xlane.xlu0 %3266 }
 0xbee   : > { %4879 = vrsqrt.f32 %v3274_v50  ;;  %v3271_v57 = vmul.f32 0.0078125, %v3267_v30  ;;  %v4762_v50 = vld [vmem:[%s6304_s15 + $0x8] sm:$0xff]  }
 0xbf0   : > { %v3275_v39 = vadd.f32 1e-05, %v3271_v57 }
 0xbf2   : > { %4881 = vrsqrt.f32 %v3275_v39 }
 0xbf4   : > { %v4876_v15 = vpop.eup %4875 }
 0xbf5   : > { %v3280_v8 = vmul.f32 %v4876_v15, %v6030_v63 }
 0xbf6   : > { %v4878_v53 = vpop.eup %4877 }
 0xbf7   : > { %v3288_v37 = vmul.f32 %v3287_v1, %v3280_v8  ;;  %v3281_v6 = vmul.f32 %v4878_v53, %v6033_v23 }
 0xbf8   : > { %v4880_v31 = vpop.eup %4879 }
 0xbf9   : > { %v3289_v33 = vmul.f32 %v3287_v1, %v3281_v6  ;;  %v3282_v40 = vmul.f32 %v4880_v31, %v6038_v58  ;;  %v3296_v19 = vadd.f32 %v3295_v56, %v3288_v37  ;;  %v4765_v37 = vld [vmem:[%s6304_s15 + $0x20] sm:$0xff]  }
 0xbfb   : > { %v3297_v63 = vadd.f32 %v3295_v56, %v3289_v33  ;;  %v3305_v18 = vrot.slane %v3296_v19, 7  ;;  %v3290_v44 = vmul.f32 %v3287_v1, %v3282_v40  ;;  %v4767_v33 = vld [vmem:[%s6304_s15 + $0x30] sm:$0xff]  }
 0xbfc   : > { %v4882_v11 = vpop.eup %4881 }
 0xbfd   : > { %v3283_v17 = vmul.f32 %v4882_v11, %v6045_v43  ;;  %v3306_v23 = vrot.slane %v3297_v63, 7  ;;  %v3316_v62 = vsel %vm647_vm0, %v3300_v22, %v3305_v18  ;;  %v6113_v7 = vadd.f32 %v3295_v56, %v3290_v44  ;;  %v4768_v22 = vld [vmem:[%s6304_s15 + $0x38] sm:$0xff]  }
 0xbfe   : > { %v3322_v26 = vmul.f32 %v3321_v35, %v3316_v62  ;;  %v3333_v43 = vrot.slane %v576_v45, %v636_v54  ;;  %v4766_v45 = vld [vmem:[%s6304_s15 + $0x28] sm:$0xff]  }
 0xbff   : > { %v3291_v48 = vmul.f32 %v3287_v1, %v3283_v17  ;;  %v3307_v58 = vsel %vm647_vm0, %v3305_v18, %v3306_v23  ;;  %v3308_v9 = vrot.slane %v6113_v7, 7 }
 0xc00   : > { %v3323_v3 = vmul.f32 %v3321_v35, %v3307_v58  ;;  %v3326_v51 = vadd.f32 %v3322_v26, %v3296_v19  ;;  %v3335_v57 = vmul.f32 %v3333_v43, %v3307_v58  ;;  %v3334_v32 = vmul.f32 %v3333_v43, %v3316_v62 }
 0xc01   : > { %v3299_v13 = vadd.f32 %v3295_v56, %v3291_v48  ;;  %v3309_v55 = vsel %vm647_vm0, %v3306_v23, %v3308_v9 }
 0xc02   : > { %v3327_v28 = vadd.f32 %v3323_v3, %v3297_v63  ;;  %v3324_v14 = vmul.f32 %v3321_v35, %v3309_v55  ;;  %v3339_v1 = vadd.f32 %v3335_v57, %v3297_v63  ;;  %v3338_v8 = vadd.f32 %v3334_v32, %v3296_v19  ;;  %v4776_v57 = vld [vmem:[%s6303_s14 + $0x18] sm:$0xff]   ;;  %v4779_v32 = vld [vmem:[%s6303_s14 + $0x68] sm:$0xff]  }
 0xc03   : > { %v3310_v29 = vrot.slane %v3299_v13, 7  ;;  %3317 = vst [vmem:[#allocation4 - $0x7] sm:$0x80] %v3299_v13 }
 0xc04   : > { %v3342_v0 = vpack.c.bf16 %v3327_v28, %v3326_v51  ;;  %v3328_v15 = vadd.f32 %v3324_v14, %v6113_v7  ;;  %v3690_v53 = vpack.c.bf16 %v3339_v1, %v3338_v8  ;;  %v4770_v51 = vld [vmem:[%s6303_s14] sm:$0xff]   ;;  %v4782_v1 = vld [vmem:[%s6303_s14 + $0x30] sm:$0xff]   ;;  %v4784_v8 = vld [vmem:[%s6303_s14 + $0x38] sm:$0xff]  }
 0xc05   : > { %v3311_v30 = vsel %vm647_vm0, %v3308_v9, %v3310_v29  ;;  %v4772_v29 = vld [vmem:[%s6303_s14 + $0x8] sm:$0xff]   ;;  %v4777_v14 = vld [vmem:[%s6303_s14 + $0x60] sm:$0xff]  }
 0xc06   : > { %3473 = vmatmul.mubr.bf16.vlgmr.msra.gmra.mrb[36].mxu1 %v3342_v0  ;;  %v3325_v39 = vmul.f32 %v3321_v35, %v3311_v30  ;;  %v3337_v19 = vmul.f32 %v3333_v43, %v3311_v30  ;;  %v3336_v35 = vmul.f32 %v3333_v43, %v3309_v55  ;;  %v4771_v55 = vld [vmem:[%s6303_s14 + $0x48] sm:$0xff]   ;;  %v4773_v0 = vld [vmem:[%s6303_s14 + $0x50] sm:$0xff]   ;;  %v4775_v30 = vld [vmem:[%s6303_s14 + $0x58] sm:$0xff]  }
 0xc07   : > { %4548 = vmatpush3.bf16.msra.mxu1 %v6094_v41  ;;  %3482 = vmatprep.mubr.bf16.mxu1 %v5001_v36  ;;  %v4764_v41 = vld [vmem:[%s6304_s15 + $0x18] sm:$0xff]  }
 0xc08   : > { %4549 = vmatprep.subr.bf16.mxu1 %v4762_v50  ;;  %v3329_v54 = vadd.f32 %v3325_v39, %v3299_v13  ;;  %v3341_v18 = vadd.f32 %v3337_v19, %v3299_v13  ;;  %v3340_v44 = vadd.f32 %v3336_v35, %v6113_v7  ;;  %v4769_v13 = vld [vmem:[%s6303_s14 + $0x40] sm:$0xff]  }
 0xc09   : > { %4257 = vmatprep.subr.bf16.mxu0 %v4769_v13  ;;  %v4778_v39 = vld [vmem:[%s6303_s14 + $0x20] sm:$0xff]  }
 0xc0a   : > { %v3343_v56 = vpack.c.bf16 %v3329_v54, %v3328_v15  ;;  %v3691_v17 = vpack.c.bf16 %v3341_v18, %v3340_v44  ;;  %4258 = vmatpush3.bf16.msra.mxu0 %v4770_v51  ;;  %v4781_v54 = vld [vmem:[%s6303_s14 + $0x70] sm:$0xff]   ;;  %v4783_v15 = vld [vmem:[%s6303_s14 + $0x78] sm:$0xff]  }
 0xc0b   : > { %4550 = vmatpush3.bf16.msra.mxu1 %v4762_v50  ;;  %4259 = vmatprep.subr.bf16.mxu0 %v4771_v55  ;;  %v4774_v50 = vld [vmem:[%s6303_s14 + $0x10] sm:$0xff]  }
 0xc0c   : > { %4551 = vmatprep.subr.bf16.mxu1 %v4763_v46 }
 0xc0e   : > { %3483 = vmatmul.mubr.bf16.gmra.mrb[40].mxu1 %v3343_v56  ;;  %4260 = vmatpush3.bf16.msra.mxu0 %v4772_v29 }
 0xc0f   : > { %4552 = vmatpush3.bf16.msra.mxu1 %v4763_v46  ;;  %4563 = vmatprep.mubr.bf16.mxu1 %v3690_v53  ;;  %v2162_v36 = vpop.trf.xlu1  ;;  %v4780_v46 = vld [vmem:[%s6303_s14 + $0x28] sm:$0xff]  }
 0xc10   : > { %2432 = vperm.xlu0 %4649, %v2162_v36   ;;  %4553 = vmatprep.subr.bf16.mxu1 %v4764_v41 }
 0xc11   : > { %4261 = vmatprep.subr.bf16.mxu0 %v4773_v0 }
 0xc12   : > { %4262 = vmatpush3.bf16.msra.mxu0 %v4774_v50 }
 0xc13   : > { %4554 = vmatpush3.bf16.msra.mxu1 %v4764_v41  ;;  %v2163_v6 = vpop.trf.xlu1  ;;  %4263 = vmatprep.subr.bf16.mxu0 %v4775_v30  ;;  %v4904_v41 = vld [vmem:[#allocation2] sm:$0xff]  ;;  %v4914_v30 = vld [vmem:[#allocation2 + $0x50] sm:$0xff] }
 0xc14   : > { %2437 = vperm.xlu0 %4649, %v2163_v6   ;;  %4555 = vmatprep.subr.bf16.mxu1 %v4765_v37  ;;  %v4905_v6 = vld [vmem:[#allocation2 + $0x8] sm:$0xff] }
 0xc16   : > { %4264 = vmatpush3.bf16.msra.mxu0 %v4776_v57 }
 0xc17   : > { %4556 = vmatpush3.bf16.msra.mxu1 %v4765_v37  ;;  %v2164_v31 = vpop.trf.xlu1  ;;  %4265 = vmatprep.subr.bf16.mxu0 %v4777_v14 }
 0xc18   : > { %2442 = vperm.xlu0 %4649, %v2164_v31   ;;  %4557 = vmatprep.subr.bf16.mxu1 %v4766_v45 }
 0xc1a   : > { %4266 = vmatpush3.bf16.msra.mxu0 %v4778_v39  ;;  %v4915_v39 = vld [vmem:[#allocation2 + $0x58] sm:$0xff] }
 0xc1b   : > { %4558 = vmatpush3.bf16.msra.mxu1 %v4766_v45  ;;  %v2165_v40 = vpop.trf.xlu1  ;;  %4267 = vmatprep.subr.bf16.mxu0 %v4779_v32 }
 0xc1c   : > { %2447 = vperm.xlu1 %4650, %v2165_v40   ;;  %4559 = vmatprep.subr.bf16.mxu1 %v4767_v33  ;;  %v4906_v40 = vld [vmem:[#allocation2 + $0x10] sm:$0xff] }
 0xc1e   : > { %4268 = vmatpush3.bf16.msra.mxu0 %v4780_v46 }
 0xc1f   : > { %4560 = vmatpush3.bf16.msra.mxu1 %v4767_v33  ;;  %v2166_v63 = vpop.trf.xlu1  ;;  %4269 = vmatprep.subr.bf16.mxu0 %v4781_v54  ;;  %v4916_v54 = vld [vmem:[#allocation2 + $0x60] sm:$0xff] }
 0xc20   : > { %2452 = vperm.xlu0 %4649, %v2166_v63   ;;  %4561 = vmatprep.subr.bf16.mxu1 %v4768_v22  ;;  %v4907_v63 = vld [vmem:[#allocation2 + $0x18] sm:$0xff] }
 0xc22   : > { %4270 = vmatpush3.bf16.msra.mxu0 %v4782_v1 }
 0xc23   : > { %4562 = vmatpush3.bf16.msra.mxu1 %v4768_v22  ;;  %v2167_v11 = vpop.trf.xlu1  ;;  %4271 = vmatprep.subr.bf16.mxu0 %v4783_v15 }
 0xc24   : > { %2457 = vperm.xlu0 %4649, %v2167_v11   ;;  %v4908_v11 = vld [vmem:[#allocation2 + $0x20] sm:$0xff] }
 0xc26   : > { %4564 = vmatmul.mubr.bf16.vlgmr.msra.gmra.mrb[44].mxu1 %v3691_v17  ;;  %4272 = vmatpush3.bf16.msra.mxu0 %v4784_v8  ;;  %v4917_v8 = vld [vmem:[#allocation2 + $0x68] sm:$0xff] }
 0xc27   : > { %v2168_v23 = vpop.trf.xlu1 }
 0xc28   : > { %2462 = vperm.xlu0 %4649, %v2168_v23  }
 0xc2b   : > { %v2169_v62 = vpop.trf.xlu1 }
 0xc2c   : > { %2467 = vperm.xlu0 %4649, %v2169_v62   ;;  %v4909_v62 = vld [vmem:[#allocation2 + $0x28] sm:$0xff] }
 0xc2f   : > { %v2170_v26 = vpop.trf.xlu1 }
 0xc30   : > { %2886 = vperm.xlu0 %4649, %v2170_v26  }
 0xc33   : > { %v2171_v48 = vpop.trf.xlu1 }
 0xc34   : > { %2891 = vperm.xlu0 %4649, %v2171_v48  }
 0xc37   : > { %v2172_v58 = vpop.trf.xlu1 }
 0xc38   : > { %2896 = vperm.xlu0 %4649, %v2172_v58   ;;  %v4910_v58 = vld [vmem:[#allocation2 + $0x30] sm:$0xff] }
 0xc3b   : > { %v2173_v9 = vpop.trf.xlu1 }
 0xc3c   : > { %2901 = vperm.xlu0 %4649, %v2173_v9  }
 0xc3f   : > { %v2174_v3 = vpop.trf.xlu1 }
 0xc40   : > { %2906 = vperm.xlu0 %4649, %v2174_v3  }
 0xc43   : > { %v2175_v7 = vpop.trf.xlu1 }
 0xc44   : > { %2911 = vperm.xlu0 %4649, %v2175_v7   ;;  %v4911_v7 = vld [vmem:[#allocation2 + $0x38] sm:$0xff] }
 0xc47   : > { %v2176_v28 = vpop.trf.xlu1 }
 0xc48   : > { %2916 = vperm.xlu0 %4649, %v2176_v28   ;;  %v4912_v28 = vld [vmem:[#allocation2 + $0x40] sm:$0xff] }
 0xc4b   : > { %v2177_v43 = vpop.trf.xlu1 }
 0xc4c   : > { %2921 = vperm.xlu0 %4649, %v2177_v43   ;;  %v4913_v43 = vld [vmem:[#allocation2 + $0x48] sm:$0xff] }
 0xc8f   : > { %v2433_v56 = vpop.permute.xlu0 %2432 }
 0xc90   : > { %v2470_v53 = vmul.f32 %v4904_v41, %v2433_v56 }
 0xc92   : > { %v2559_v36 = vadd.f32 %v5820_v4, %v2470_v53  ;;  %v4918_v53 = vld [vmem:[#allocation2 + $0x70] sm:$0xff] }
 0xc93   : > { %v2438_v37 = vpop.permute.xlu0 %2437 }
 0xc94   : > { %2567 = vst.msk [vmem:[#allocation2] sm:$0xff] %vm556_vm2, %v2559_v36  ;;  %v2471_v45 = vmul.f32 %v4905_v6, %v2438_v37  ;;  %v4919_v6 = vld [vmem:[#allocation2 + $0x78] sm:$0xff] }
 0xc96   : > { %v2560_v31 = vadd.f32 %v5824_v60, %v2471_v45 }
 0xc97   : > { %v2443_v33 = vpop.permute.xlu0 %2442 }
 0xc98   : > { %2568 = vst.msk [vmem:[#allocation2 + $0x8] sm:$0xff] %vm556_vm2, %v2560_v31  ;;  %v2472_v19 = vmul.f32 %v4906_v40, %v2443_v33 }
 0xc9a   : > { %v2561_v22 = vadd.f32 %v5815_v61, %v2472_v19 }
 0xc9b   : > { %v2448_v35 = vpop.permute.xlu1 %2447 }
 0xc9c   : > { %2569 = vst.msk [vmem:[#allocation2 + $0x10] sm:$0xff] %vm556_vm2, %v2561_v22  ;;  %v2473_v18 = vmul.f32 %v4907_v63, %v2448_v35 }
 0xc9e   : > { %v2562_v4 = vadd.f32 %v5822_v24, %v2473_v18 }
 0xc9f   : > { %v2453_v44 = vpop.permute.xlu0 %2452 }
 0xca0   : > { %2570 = vst.msk [vmem:[#allocation2 + $0x18] sm:$0xff] %vm556_vm2, %v2562_v4  ;;  %v2474_v17 = vmul.f32 %v4908_v11, %v2453_v44 }
 0xca2   : > { %v2563_v60 = vadd.f32 %v5828_v59, %v2474_v17 }
 0xca3   : > { %v2458_v23 = vpop.permute.xlu0 %2457 }
 0xca4   : > { %2571 = vst.msk [vmem:[#allocation2 + $0x20] sm:$0xff] %vm556_vm2, %v2563_v60  ;;  %v2475_v26 = vmul.f32 %v4909_v62, %v2458_v23 }
 0xca6   : > { %v2564_v61 = vadd.f32 %v5832_v47, %v2475_v26 }
 0xca7   : > { %v2463_v48 = vpop.permute.xlu0 %2462 }
 0xca8   : > { %2572 = vst.msk [vmem:[#allocation2 + $0x28] sm:$0xff] %vm556_vm2, %v2564_v61  ;;  %v2476_v9 = vmul.f32 %v4910_v58, %v2463_v48 }
 0xcaa   : > { %v2565_v24 = vadd.f32 %v5826_v16, %v2476_v9 }
 0xcab   : > { %v2468_v3 = vpop.permute.xlu0 %2467 }
 0xcac   : > { %2573 = vst.msk [vmem:[#allocation2 + $0x30] sm:$0xff] %vm556_vm2, %v2565_v24  ;;  %v2477_v13 = vmul.f32 %v4911_v7, %v2468_v3 }
 0xcae   : > { %v2566_v59 = vadd.f32 %v5830_v38, %v2477_v13 }
 0xcaf   : > { %v2887_v51 = vpop.permute.xlu0 %2886 }
 0xcb0   : > { %2574 = vst.msk [vmem:[#allocation2 + $0x38] sm:$0xff] %vm556_vm2, %v2566_v59  ;;  %v2924_v55 = vmul.f32 %v4912_v28, %v2887_v51 }
 0xcb2   : > { %v3013_v47 = vadd.f32 %v5880_v21, %v2924_v55 }
 0xcb3   : > { %v2892_v29 = vpop.permute.xlu0 %2891 }
 0xcb4   : > { %3021 = vst.msk [vmem:[#allocation2 + $0x40] sm:$0xff] %vm556_vm2, %v3013_v47  ;;  %v2925_v0 = vmul.f32 %v4913_v43, %v2892_v29 }
 0xcb6   : > { %v3014_v16 = vadd.f32 %v5884_v52, %v2925_v0 }
 0xcb7   : > { %v2897_v50 = vpop.permute.xlu0 %2896 }
 0xcb8   : > { %3022 = vst.msk [vmem:[#allocation2 + $0x48] sm:$0xff] %vm556_vm2, %v3014_v16  ;;  %v2926_v57 = vmul.f32 %v4914_v30, %v2897_v50 }
 0xcba   : > { %v3015_v38 = vadd.f32 %v5878_v42, %v2926_v57 }
 0xcbb   : > { %v2902_v14 = vpop.permute.xlu0 %2901 }
 0xcbc   : > { %3023 = vst.msk [vmem:[#allocation2 + $0x50] sm:$0xff] %vm556_vm2, %v3015_v38  ;;  %v2927_v32 = vmul.f32 %v4915_v39, %v2902_v14 }
 0xcbe   : > { %v3016_v21 = vadd.f32 %v5882_v5, %v2927_v32 }
 0xcbf   : > { %v2907_v46 = vpop.permute.xlu0 %2906 }
 0xcc0   : > { %3024 = vst.msk [vmem:[#allocation2 + $0x58] sm:$0xff] %vm556_vm2, %v3016_v21  ;;  %v2928_v1 = vmul.f32 %v4916_v54, %v2907_v46 }
 0xcc2   : > { %v3017_v52 = vadd.f32 %v5888_v12, %v2928_v1 }
 0xcc3   : > { %v2912_v15 = vpop.permute.xlu0 %2911 }
 0xcc4   : > { %3025 = vst.msk [vmem:[#allocation2 + $0x60] sm:$0xff] %vm556_vm2, %v3017_v52  ;;  %v2929_v56 = vmul.f32 %v4917_v8, %v2912_v15 }
 0xcc6   : > { %v3018_v42 = vadd.f32 %v5892_v25, %v2929_v56 }
 0xcc7   : > { %v2917_v41 = vpop.permute.xlu0 %2916 }
 0xcc8   : > { %3026 = vst.msk [vmem:[#allocation2 + $0x68] sm:$0xff] %vm556_vm2, %v3018_v42  ;;  %v2930_v36 = vmul.f32 %v4918_v53, %v2917_v41 }
 0xcca   : > { %v3019_v5 = vadd.f32 %v5886_v2, %v2930_v36 }
 0xccb   : > { %v2922_v37 = vpop.permute.xlu0 %2921 }
 0xccc   : > { %3027 = vst.msk [vmem:[#allocation2 + $0x70] sm:$0xff] %vm556_vm2, %v3019_v5  ;;  %v2931_v45 = vmul.f32 %v4919_v6, %v2922_v37 }
 0xcce   : > { %v3020_v12 = vadd.f32 %v5890_v10, %v2931_v45 }
 0xcd0   : > { %3028 = vst.msk [vmem:[#allocation2 + $0x78] sm:$0xff] %vm556_vm2, %v3020_v12 }
 0xcd9   : > { %v3474_v31 = vpop.f32.mrb[36].mxu1 }
 0xcda   : > { %v3493_v33 = vmax.f32 %v3474_v31, 0.0  ;;  %v3476_v40 = vpop.f32.mrb[37].mxu1 }
 0xcdb   : > { %v3494_v25 = vmax.f32 %v3476_v40, 0.0  ;;  %v3478_v19 = vpop.f32.mrb[38].mxu1 }
 0xcdc   : > { %v3495_v22 = vmax.f32 %v3478_v19, 0.0  ;;  %v3480_v35 = vpop.f32.mrb[39].mxu1  ;;  %v3501_v18 = vmul.f32 %v3493_v33, %v3493_v33 }
 0xcdd   : > { %v3496_v63 = vmax.f32 %v3480_v35, 0.0  ;;  %v3502_v2 = vmul.f32 %v3494_v25, %v3494_v25 }
 0xcde   : > { %v3503_v4 = vmul.f32 %v3495_v22, %v3495_v22 }
 0xcdf   : > { %v3504_v44 = vmul.f32 %v3496_v63, %v3496_v63 }
 0xce0   : > { %v3509_v11 = vpack.c.bf16 %v3503_v4, %v3501_v18 }
 0xce1   : > { %v3510_v17 = vpack.c.bf16 %v3504_v44, %v3502_v2  ;;  %v3484_v60 = vpop.f32.mrb[40].mxu1 }
 0xce2   : > { %v3497_v23 = vmax.f32 %v3484_v60, 0.0  ;;  %v3486_v62 = vpop.f32.mrb[41].mxu1 }
 0xce3   : > { %v3498_v10 = vmax.f32 %v3486_v62, 0.0  ;;  %v3488_v26 = vpop.f32.mrb[42].mxu1  ;;  %3673 = vmatprep.mubr.bf16.mxu0 %v3510_v17 }
 0xce4   : > { %v3499_v61 = vmax.f32 %v3488_v26, 0.0  ;;  %v3490_v48 = vpop.f32.mrb[43].mxu1  ;;  %3674 = vmatmul.mubr.bf16.vlgmr.msra.gmra.mrb[52].mxu0 %v3509_v11  ;;  %v3505_v9 = vmul.f32 %v3497_v23, %v3497_v23 }
 0xce5   : > { %v3500_v58 = vmax.f32 %v3490_v48, 0.0  ;;  %v3506_v3 = vmul.f32 %v3498_v10, %v3498_v10 }
 0xce6   : > { %v3507_v24 = vmul.f32 %v3499_v61, %v3499_v61 }
 0xce7   : > { %v3508_v7 = vmul.f32 %v3500_v58, %v3500_v58 }
 0xce8   : > { %v3511_v13 = vpack.c.bf16 %v3507_v24, %v3505_v9 }
 0xce9   : > { %v3512_v59 = vpack.c.bf16 %v3508_v7, %v3506_v3 }
 0xceb   : > { %3681 = vmatprep.mubr.bf16.mxu0 %v3512_v59 }
 0xcec   : > { %3682 = vmatmul.mubr.bf16.gmra.mrb[56].mxu0 %v3511_v13 }
 0xcf9   : > { %v4565_v51 = vpop.f32.mrb[44].mxu1 }
 0xcfa   : > { %v3790_v28 = vpop.f32.mrb[45].mxu1  ;;  %v4122_v0 = vmul.f32 -1.442695, %v4565_v51 }
 0xcfb   : > { %v4566_v55 = vpop.f32.mrb[46].mxu1  ;;  %v4120_v29 = vmul.f32 -1.442695, %v3790_v28 }
 0xcfc   : > { %v3793_v47 = vpop.f32.mrb[47].mxu1  ;;  %v4123_v16 = vmul.f32 -1.442695, %v4566_v55 }
 0xcfd   : > { %v4121_v43 = vmul.f32 -1.442695, %v3793_v47  ;;  %4883 = vpow2.f32 %v4120_v29 }
 0xcff   : > { %4885 = vpow2.f32 %v4121_v43 }
 0xd00   : > { %4887 = vpow2.f32 %v4122_v0 }
 0xd01   : > { %4889 = vpow2.f32 %v4123_v16 }
 0xd07   : > { %v4884_v50 = vpop.eup %4883 }
 0xd08   : > { %v3817_v57 = vadd.f32 1.0, %v4884_v50 }
 0xd09   : > { %v4886_v30 = vpop.eup %4885 }
 0xd0a   : > { %v3818_v38 = vadd.f32 1.0, %v4886_v30  ;;  %4891 = vrcp.f32 %v3817_v57  ;;  %v4888_v14 = vpop.eup %4887 }
 0xd0b   : > { %v4890_v39 = vpop.eup %4889  ;;  %v3819_v32 = vadd.f32 1.0, %v4888_v14 }
 0xd0c   : > { %4893 = vrcp.f32 %v3818_v38  ;;  %v3820_v21 = vadd.f32 1.0, %v4890_v39 }
 0xd0d   : > { %4895 = vrcp.f32 %v3819_v32 }
 0xd0e   : > { %4897 = vrcp.f32 %v3820_v21 }
 0xd14   : > { %v4892_v15 = vpop.eup %4891 }
 0xd16   : > { %v4894_v41 = vpop.eup %4893 }
 0xd17   : > { %v4896_v31 = vpop.eup %4895 }
 0xd18   : > { %v4898_v19 = vpop.eup %4897 }
 0xdb7   : > { %v4273_v46 = vpop.f32.mrb[52].mxu0 }
 0xdb8   : > { %v4274_v54 = vpop.f32.mrb[53].mxu0 }
 0xdb9   : > { %v4275_v1 = vadd.f32 %v4274_v54, %v4273_v46  ;;  %v4276_v52 = vpop.f32.mrb[54].mxu0 }
 0xdba   : > { %v4277_v8 = vpop.f32.mrb[55].mxu0 }
 0xdbb   : > { %v3829_v56 = vmul.f32 %v4892_v15, %v4275_v1  ;;  %v4278_v42 = vadd.f32 %v4277_v8, %v4276_v52 }
 0xdbd   : > { %v3833_v53 = vadd.f32 %v3829_v56, %v6008_v27  ;;  %v3830_v36 = vmul.f32 %v4894_v41, %v4278_v42 }
 0xdbf   : > { %3837 = vst [vmem:[%s539_s27] sm:$0xff] %v3833_v53  ;;  %v3834_v5 = vadd.f32 %v3830_v36, %v6011_v34  ;;  %v4279_v37 = vpop.f32.mrb[56].mxu0 }
 0xdc0   : > { %v4280_v6 = vpop.f32.mrb[57].mxu0 }
 0xdc1   : > { %3838 = vst [vmem:[%s539_s27 + $0x8] sm:$0xff] %v3834_v5  ;;  %v4281_v45 = vadd.f32 %v4280_v6, %v4279_v37  ;;  %v4282_v12 = vpop.f32.mrb[58].mxu0 }
 0xdc2   : > { %v4283_v33 = vpop.f32.mrb[59].mxu0 }
 0xdc3   : > { %v3831_v40 = vmul.f32 %v4896_v31, %v4281_v45  ;;  %v4284_v25 = vadd.f32 %v4283_v33, %v4282_v12 }
 0xdc5   : > { %v3835_v27 = vadd.f32 %v3831_v40, %v6015_v20  ;;  %v3832_v22 = vmul.f32 %v4898_v19, %v4284_v25 }
 0xdc7   : > { %3839 = vst [vmem:[%s539_s27 + $0x10] sm:$0xff] %v3835_v27  ;;  %v3836_v34 = vadd.f32 %v3832_v22, %v6020_v49 }
 0xdc9   : > { %3840 = vst [vmem:[%s539_s27 + $0x18] sm:$0xff] %v3836_v34 }
 0xdca   : > { %4933 = shalt.err (!%p4930_p5)
}
 0xdcb   : > { %s4934_s17 = scalar_lea.hbm %s6239_s21, 512  ;;  %s4938_s25 = scalar_lea.hbm %s6323_s19, 1024 }
 0xdcc   : > { %p4935_p6 = scmp.ne.s32.totalorder %s6239_s21, %s4934_s17  ;;  %p4939_p10 = scmp.lt.u32.totalorder %s6239_s21, %s6323_s19 }
 0xdcd   : > { %p4940_p11 = scmp.lt.u32.totalorder %s4938_s25, %s4934_s17  ;;  %p4942_p13 = scmp.lt.u32.totalorder %s4934_s17, %s6239_s21 }
 0xdce   : > { %p4936_p7 = pnand %p4935_p6, %p5133_p4 }
 0xdcf   : > { %p4941_p12 = por %p4940_p11, %p4939_p10 }
 0xdd0   : > { %p4937_p9 = pneg %p4936_p7 }
 0xdd1   : > { %p4943_p0 = por %p4942_p13, %p4941_p12 }
 0xdd3   : > { %p4944_p1 = pnand %p4943_p0, %p4937_p9 }
 0xdd5   : > { %4947 = shalt.err (!%p4944_p1)
}
 0xdd6   : > { %s5006_s1 = smov 128   ;;  %s5007_s24 = smov 8  }
 0xdd7   : > { %4587 = dma.vmem_to_hbm [thread:$0]  (%p5133_p4), %s6233_s23, 512, %s6239_s21, %s6243_s30, %s5006_s1, %s5006_s1, %s5007_s24  }
 0xdd8 PF: > { %s6324_s20 = sld [smem:[#allocation8_spill]]  ;;  %p4593_p2 = scmp.ge.s32.totalorder %s4998_s26, 2 }
 0xdda   : > { %p4590_p3 = pnand %p4593_p2, %p5140_p8 }
 0xdde   : > { %s3872_s27 = sand.u32 1, %s6324_s20  }
 0xddf   : > { %s3873_s17 = scalar_lea.sflag [#allocation6], %s3872_s27 }
 0xde0   : > { %4973 = dma.done.wait (!%p4590_p3), %s3873_s17, 512  }
 0xde1   : > { %4975 = vsyncadd (!%p4590_p3), %s3873_s17, 4294966784  ;;  %s29_s26 = sadd.s32 1, %s4998_s26   ;;  %s6325_s28 = sld [smem:[#allocation9_spill]] }
 0xde2   : > { %p26_p5 = scmp.ge.s32.totalorder %s29_s26, 4   ;;  %s6326_s23 = sld [smem:[#allocation12_spill]] }
 0xde3   : > { %s6327_s24 = sld [smem:[#allocation10_spill]]  ;;  %s6328_s25 = sld [smem:[#allocation11_spill]] }
 0xde4   : > { %s6329_s21 = smov %s4982_s22  ;;  %28 = sbr.rel (!%p26_p5) target bundleno = 8 (0x8), region = 128 }
 0xde7   : > { %s6330_s22 = smov %s6325_s28 }
 0xdeb   :  { %3878 = vsyncpa [#allocation6], 1 }
 0xdec   :  { %3880 = vsyncpa [#allocation6 + $0x1], 1 }

</bundles_post_ra>
